<compile_context>
chip_gen: v5e
topology: v5e:2x2
jax: 0.10.0
libtpu: 0.0.40
codegen_flags: <defaults>
</compile_context>

<pallas_src>
import jax
import jax.numpy as jnp
from jax import lax
from jax.experimental import pallas as pl
from jax.experimental.pallas import tpu as pltpu

BRANCH_C = 64     # width of each branch
OUT_C = 448       # concat-conv output channels
BN_EPS = 1e-5


# ----------------------------------------------------------------------------
# Kernel
# ----------------------------------------------------------------------------
def incresb_kernel(x_ref, w01_ref, b01_ref, w12_ref, w13_ref, b23_ref, wc_ref,
                   out_ref, hpad_ref):
    """Fused IncResB forward for a block of Bt images.

    x_ref   : (Bt, H, W, Cin)  bf16 NHWC input block
    w01_ref : (Cin, 128)       fused branch0|branch1_1 1x1 weights (BN-folded, bf16)
    b01_ref : (1, 128)         fused folded biases (f32)
    w12_ref : (192, 64)        (1,3) conv, taps stacked along K (bf16)
    w13_ref : (192, 64)        (3,1) conv, taps stacked along K (bf16)
    b23_ref : (2, 64)          row 0 = branch1_2 bias, row 1 = branch1_3 bias (f32)
    wc_ref  : (128, 448)       concat-conv weight (bf16)
    out_ref : (Bt, H, W, 448)  bf16 output block
    hpad_ref: (Bt, H+2, W, 64) bf16 VMEM scratch for the H-direction halo
    """
    bt, H, W, Cin = x_ref.shape
    C = BRANCH_C
    M = bt * H * W

    # ---- fused branch0 + branch1_1 1x1 convs: one (M,Cin)x(Cin,128) MXU dot.
    x = x_ref[...].reshape(M, Cin)                                    # bf16
    act01 = jnp.dot(x, w01_ref[...], preferred_element_type=jnp.float32)
    act01 = jnp.maximum(act01 + b01_ref[...], 0.0)                    # (M,128) f32
    b0 = act01[:, :C].astype(jnp.bfloat16)        # branch0, reused for final mix
    b1 = act01[:, C:].reshape(bt * H, W, C)       # branch1_1, f32

    # ---- branch1_2: (1,3) conv along W ('same') as ONE K=192 dot.
    # Shifted taps via XLU sublane rolls + edge masks (no padded W+2 slab).
    w_idx = lax.broadcasted_iota(jnp.int32, (W, C), 0)
    left = jnp.where(w_idx == 0, 0.0, pltpu.roll(b1, shift=1, axis=1))       # x[w-1]
    right = jnp.where(w_idx == W - 1, 0.0, pltpu.roll(b1, shift=W - 1, axis=1))  # x[w+1]
    lhs = jnp.concatenate([left, b1, right], axis=-1)                 # (bt*H, W, 192)
    lhs = lhs.astype(jnp.bfloat16).reshape(M, 3 * C)
    act = jnp.dot(lhs, w12_ref[...], preferred_element_type=jnp.float32)
    b1 = jnp.maximum(act + b23_ref[0:1, :], 0.0)
    b1 = b1.astype(jnp.bfloat16).reshape(bt, H, W, C)

    # ---- branch1_3: (3,1) conv along H ('same') as ONE K=192 dot.
    # Zero-padded VMEM scratch: H+-1 taps are cheap aligned outer-dim slices.
    zrow = jnp.zeros((bt, 1, W, C), jnp.bfloat16)
    hpad_ref[:, 0:1] = zrow
    hpad_ref[:, H + 1:H + 2] = zrow
    hpad_ref[:, 1:H + 1] = b1
    up = hpad_ref[:, 0:H]                                             # x[h-1]
    down = hpad_ref[:, 2:H + 2]                                       # x[h+1]
    lhs = jnp.concatenate([up, b1, down], axis=-1).reshape(M, 3 * C)  # bf16
    act = jnp.dot(lhs, w13_ref[...], preferred_element_type=jnp.float32)
    b1 = jnp.maximum(act + b23_ref[1:2, :], 0.0).astype(jnp.bfloat16)  # (M, 64)

    # ---- concat([branch0, branch1]) -> 1x1 conv (128 -> 448): ONE K=128 dot.
    cat = jnp.concatenate([b0, b1], axis=-1)                          # (M, 128) bf16
    mixed = jnp.dot(cat, wc_ref[...], preferred_element_type=jnp.float32)
    out_ref[...] = mixed.reshape(bt, H, W, OUT_C).astype(out_ref.dtype)


# ----------------------------------------------------------------------------
# Pallas wrapper
# ----------------------------------------------------------------------------
def incresb_pallas(x_nhwc, kp, *, block_b=2):
    """x_nhwc: (B,H,W,Cin) bf16 -> (B,H,W,448) bf16 (single fused pallas_call)."""
    B, H, W, Cin = x_nhwc.shape
    # Largest batch-block <= block_b that divides B; block_b=2 keeps >=2 grid
    # steps per TensorCore on v7x at small B while giving M = bt*H*W MXU rows.
    bt = max(d for d in range(1, min(block_b, B) + 1) if B % d == 0)
    grid = (B // bt,)

    w01, b01, w12, w13, b23, wc = (kp[k] for k in
                                   ("w01", "b01", "w12", "w13", "b23", "wc"))

    weight_bytes = sum(int(a.size) * a.dtype.itemsize
                       for a in (w01, b01, w12, w13, b23, wc))
    flops = 2 * B * H * W * (Cin * 2 * BRANCH_C          # fused 1x1 convs
                             + 3 * BRANCH_C * BRANCH_C   # (1,3) conv
                             + 3 * BRANCH_C * BRANCH_C   # (3,1) conv
                             + 2 * BRANCH_C * OUT_C)     # 128 -> 448 mix
    bytes_accessed = (B * H * W * Cin * 2 + B * H * W * OUT_C * 2 + weight_bytes)
    cost = pl.CostEstimate(flops=flops, transcendentals=0,
                           bytes_accessed=bytes_accessed)

    def rep(shape):  # weights/biases: same block every step -> stay resident
        return pl.BlockSpec(shape, lambda b: (0, 0))

    in_specs = [
        pl.BlockSpec((bt, H, W, Cin), lambda b: (b, 0, 0, 0)),
        rep((Cin, 2 * BRANCH_C)),
        rep((1, 2 * BRANCH_C)),
        rep((3 * BRANCH_C, BRANCH_C)),
        rep((3 * BRANCH_C, BRANCH_C)),
        rep((2, BRANCH_C)),
        rep((2 * BRANCH_C, OUT_C)),
    ]
    out_specs = pl.BlockSpec((bt, H, W, OUT_C), lambda b: (b, 0, 0, 0))

    return pl.pallas_call(
        incresb_kernel,
        out_shape=jax.ShapeDtypeStruct((B, H, W, OUT_C), jnp.bfloat16),
        grid=grid,
        in_specs=in_specs,
        out_specs=out_specs,
        scratch_shapes=[pltpu.VMEM((bt, H + 2, W, BRANCH_C), jnp.bfloat16)],
        compiler_params=pltpu.CompilerParams(
            dimension_semantics=("parallel",),        # megacore over batch steps
            vmem_limit_bytes=32 * 1024 * 1024),
        cost_estimate=cost,
    )(x_nhwc, w01, b01, w12, w13, b23, wc)


@jax.jit
def incresb_forward(x_nchw, kp):
    """x: (B, Cin, H, W) -> (B, 448, H, W) bf16, matching the PyTorch forward."""
    # Cast first so the NCHW->NHWC relayout (and the one back) moves bf16 bytes.
    x = jnp.transpose(x_nchw.astype(jnp.bfloat16), (0, 2, 3, 1))      # NHWC bf16
    out = incresb_pallas(x, kp)                                       # NHWC bf16
    return jnp.transpose(out, (0, 3, 1, 2))                           # NCHW bf16


# ----------------------------------------------------------------------------
# Parameter init (PyTorch-style conv init) + inference-mode BN folding/packing
# ----------------------------------------------------------------------------
def _conv_weight(key, cout, cin, kh, kw):
    fan_in = cin * kh * kw
    bound = 1.0 / (fan_in ** 0.5)
    return jax.random.uniform(key, (cout, cin, kh, kw), jnp.float32, -bound, bound)


def _bn_params(key, c):
    k1, k2, k3, k4 = jax.random.split(key, 4)
    gamma = 1.0 + 0.1 * jax.random.normal(k1, (c,), jnp.float32)
    beta = 0.1 * jax.random.normal(k2, (c,), jnp.float32)
    mean = 0.1 * jax.random.normal(k3, (c,), jnp.float32)
    var = 1.0 + 0.1 * jnp.abs(jax.random.normal(k4, (c,), jnp.float32))
    return gamma, beta, mean, var


def _fold_bn(w_oihw, bn):
    gamma, beta, mean, var = bn
    s = gamma / jnp.sqrt(var + BN_EPS)              # per-output-channel scale
    return w_oihw * s[:, None, None, None], beta - mean * s


def init_params(key, in_channels):
    ks = jax.random.split(key, 9)
    w0 = _conv_weight(ks[0], BRANCH_C, in_channels, 1, 1)
    w11 = _conv_weight(ks[1], BRANCH_C, in_channels, 1, 1)
    w12 = _conv_weight(ks[2], BRANCH_C, BRANCH_C, 1, 3)
    w13 = _conv_weight(ks[3], BRANCH_C, BRANCH_C, 3, 1)
    wc = _conv_weight(ks[4], OUT_C, 2 * BRANCH_C, 1, 1)

    w0f, b0f = _fold_bn(w0, _bn_params(ks[5], BRANCH_C))
    w11f, b11f = _fold_bn(w11, _bn_params(ks[6], BRANCH_C))
    w12f, b12f = _fold_bn(w12, _bn_params(ks[7], BRANCH_C))
    w13f, b13f = _fold_bn(w13, _bn_params(ks[8], BRANCH_C))

    bf16 = jnp.bfloat16
    # branch0 / branch1_1 fused into one (Cin, 128) weight (lanes [:64]/[64:]).
    w01 = jnp.concatenate([w0f[:, :, 0, 0].T, w11f[:, :, 0, 0].T], axis=1)
    # (1,3)/(3,1) conv taps stacked along K -> (192, 64), order kw/kh = 0,1,2.
    w12k = jnp.concatenate([w12f[:, :, 0, kw].T for kw in range(3)], axis=0)
    w13k = jnp.concatenate([w13f[:, :, kh, 0].T for kh in range(3)], axis=0)

    return {
        "w01": w01.astype(bf16),                              # (Cin, 128)
        "w12": w12k.astype(bf16),                             # (192, 64)
        "w13": w13k.astype(bf16),                             # (192, 64)
        "wc":  wc[:, :, 0, 0].T.astype(bf16),                 # (128, 448)
        # folded biases stay f32 (elementwise math stays f32 in-kernel)
        "b01": jnp.concatenate([b0f, b11f]).reshape(1, 2 * BRANCH_C),
        "b23": jnp.stack([b12f, b13f], axis=0),               # (2, 64)
    }


# ----------------------------------------------------------------------------
# Pure-JAX (f32, XLA conv) reference for correctness
# ----------------------------------------------------------------------------
def reference_forward(x_nchw, kp):
    x = jnp.transpose(x_nchw, (0, 2, 3, 1))
    x = x.astype(jnp.bfloat16).astype(jnp.float32)   # match kernel's bf16 input

    def conv(h, w_hwio):
        return lax.conv_general_dilated(
            h, w_hwio, window_strides=(1, 1), padding="SAME",
            dimension_numbers=("NHWC", "HWIO", "NHWC"))

    f32 = lambda a: a.astype(jnp.float32)
    w01 = f32(kp["w01"]); b01 = f32(kp["b01"])[0]
    b0 = jax.nn.relu(conv(x, w01[:, :BRANCH_C][None, None]) + b01[:BRANCH_C])
    b1 = jax.nn.relu(conv(x, w01[:, BRANCH_C:][None, None]) + b01[BRANCH_C:])

    w12 = f32(kp["w12"]).reshape(3, BRANCH_C, BRANCH_C)       # (kw, in, out)
    b1 = jax.nn.relu(conv(b1, w12[None]) + kp["b23"][0])       # HWIO (1,3,64,64)
    w13 = f32(kp["w13"]).reshape(3, BRANCH_C, BRANCH_C)       # (kh, in, out)
    b1 = jax.nn.relu(conv(b1, w13[:, None]) + kp["b23"][1])    # HWIO (3,1,64,64)

    cat = jnp.concatenate([b0, b1], axis=-1)                   # (B,H,W,128)
    mixed = conv(cat, f32(kp["wc"])[None, None])               # (B,H,W,448)
    return jnp.transpose(mixed, (0, 3, 1, 2))                  # NCHW f32


# ----------------------------------------------------------------------------
if __name__ == "__main__":
    B, Cin, H, W = 8, 32, 16, 16

    key = jax.random.PRNGKey(0)
    xkey, pkey = jax.random.split(key)
    x = jax.random.normal(xkey, (B, Cin, H, W), jnp.float32)
    kp = init_params(pkey, Cin)

    out = incresb_forward(x, kp)
    out = jax.block_until_ready(out)
    assert out.shape == (B, OUT_C, H, W)

    ref = reference_forward(x, kp)
    out32 = out.astype(jnp.float32)
    max_err = float(jnp.max(jnp.abs(out32 - ref)))
    # Tolerance accounts for bf16 matmul operands / bf16 activations + output
    # (f32 accumulation inside the kernel) vs the pure-f32 XLA reference.
    assert jnp.allclose(out32, ref, rtol=5e-2, atol=5e-2), max_err

    print("KERNEL_OK")
</pallas_src>

<mosaic_0001>
module attributes {stable_mosaic.version = 11 : i64} {
  func.func @incresb_kernel(%arg0: i32, %arg1: memref<2x16x16x32xbf16, #tpu.memory_space<vmem>>, %arg2: memref<32x128xbf16, #tpu.memory_space<vmem>>, %arg3: memref<1x128xf32, #tpu.memory_space<vmem>>, %arg4: memref<192x64xbf16, #tpu.memory_space<vmem>>, %arg5: memref<192x64xbf16, #tpu.memory_space<vmem>>, %arg6: memref<2x64xf32, #tpu.memory_space<vmem>>, %arg7: memref<128x448xbf16, #tpu.memory_space<vmem>>, %arg8: memref<2x16x16x448xbf16, #tpu.memory_space<vmem>>, %arg9: memref<2x18x16x64xbf16, #tpu.memory_space<vmem>>) attributes {dimension_semantics = [#tpu.dimension_semantics<parallel>], iteration_bounds = array<i64: 4>, scalar_prefetch = 0 : i64, scratch_operands = 1 : i64, tpu.core_type = #tpu.core_type<tc>, window_params = [{transform_indices = @transform_0, window_bounds = array<i64: 2, 16, 16, 32>}, {pipeline_mode = #tpu.pipeline_mode<synchronous>, transform_indices = @transform_1, window_bounds = array<i64: 32, 128>}, {pipeline_mode = #tpu.pipeline_mode<synchronous>, transform_indices = @transform_2, window_bounds = array<i64: 1, 128>}, {pipeline_mode = #tpu.pipeline_mode<synchronous>, transform_indices = @transform_3, window_bounds = array<i64: 192, 64>}, {pipeline_mode = #tpu.pipeline_mode<synchronous>, transform_indices = @transform_4, window_bounds = array<i64: 192, 64>}, {pipeline_mode = #tpu.pipeline_mode<synchronous>, transform_indices = @transform_5, window_bounds = array<i64: 2, 64>}, {pipeline_mode = #tpu.pipeline_mode<synchronous>, transform_indices = @transform_6, window_bounds = array<i64: 128, 448>}, {transform_indices = @transform_7, window_bounds = array<i64: 2, 16, 16, 448>}]} {
    %c0 = arith.constant 0 : index
    %c0_0 = arith.constant 0 : index
    %c0_1 = arith.constant 0 : index
    %c0_2 = arith.constant 0 : index
    %0 = vector.load %arg1[%c0, %c0_0, %c0_1, %c0_2] : memref<2x16x16x32xbf16, #tpu.memory_space<vmem>>, vector<2x16x16x32xbf16>
    %1 = vector.shape_cast %0 : vector<2x16x16x32xbf16> to vector<512x32xbf16>
    %c0_3 = arith.constant 0 : index
    %c0_4 = arith.constant 0 : index
    %2 = vector.load %arg2[%c0_3, %c0_4] : memref<32x128xbf16, #tpu.memory_space<vmem>>, vector<32x128xbf16>
    %cst = arith.constant dense<0.000000e+00> : vector<512x128xf32>
    %3 = tpu.matmul %1, %2, %cst {dimension_numbers = #tpu.dot_dimension_numbers<[1], [0], [0], [1], [0, 0, 1, 1], [], []>} : vector<512x32xbf16>, vector<32x128xbf16>, vector<512x128xf32> -> vector<512x128xf32>
    %c0_5 = arith.constant 0 : index
    %c0_6 = arith.constant 0 : index
    %4 = vector.load %arg3[%c0_5, %c0_6] : memref<1x128xf32, #tpu.memory_space<vmem>>, vector<1x128xf32>
    %5 = vector.broadcast %4 : vector<1x128xf32> to vector<512x128xf32>
    %6 = arith.addf %3, %5 : vector<512x128xf32>
    %cst_7 = arith.constant 0.000000e+00 : f32
    %7 = vector.broadcast %cst_7 : f32 to vector<512x128xf32>
    %8 = arith.maximumf %6, %7 : vector<512x128xf32>
    %9 = vector.extract_strided_slice %8 {offsets = [0, 0], sizes = [512, 64], strides = [1, 1]} : vector<512x128xf32> to vector<512x64xf32>
    %10 = arith.truncf %9 : vector<512x64xf32> to vector<512x64xbf16>
    %11 = vector.extract_strided_slice %8 {offsets = [0, 64], sizes = [512, 64], strides = [1, 1]} : vector<512x128xf32> to vector<512x64xf32>
    %12 = vector.shape_cast %11 : vector<512x64xf32> to vector<32x16x64xf32>
    %13 = tpu.iota {dimensions = array<i32: 0>} : vector<16x64xi32>
    %c0_i32 = arith.constant 0 : i32
    %14 = vector.broadcast %c0_i32 : i32 to vector<16x64xi32>
    %15 = arith.cmpi eq, %13, %14 : vector<16x64xi32>
    %c1_i32 = arith.constant 1 : i32
    %16 = tpu.dynamic_rotate %12 by %c1_i32 dim 1 : vector<32x16x64xf32>, i32 -> vector<32x16x64xf32>
    %cst_8 = arith.constant 0.000000e+00 : f32
    %17 = vector.shape_cast %15 : vector<16x64xi1> to vector<1x16x64xi1>
    %18 = vector.broadcast %17 : vector<1x16x64xi1> to vector<32x16x64xi1>
    %19 = vector.broadcast %cst_8 : f32 to vector<32x16x64xf32>
    %20 = arith.select %18, %19, %16 : vector<32x16x64xi1>, vector<32x16x64xf32>
    %c15_i32 = arith.constant 15 : i32
    %21 = vector.broadcast %c15_i32 : i32 to vector<16x64xi32>
    %22 = arith.cmpi eq, %13, %21 : vector<16x64xi32>
    %c15_i32_9 = arith.constant 15 : i32
    %23 = tpu.dynamic_rotate %12 by %c15_i32_9 dim 1 : vector<32x16x64xf32>, i32 -> vector<32x16x64xf32>
    %cst_10 = arith.constant 0.000000e+00 : f32
    %24 = vector.shape_cast %22 : vector<16x64xi1> to vector<1x16x64xi1>
    %25 = vector.broadcast %24 : vector<1x16x64xi1> to vector<32x16x64xi1>
    %26 = vector.broadcast %cst_10 : f32 to vector<32x16x64xf32>
    %27 = arith.select %25, %26, %23 : vector<32x16x64xi1>, vector<32x16x64xf32>
    %28 = tpu.concatenate %20, %12, %27 in 2 : vector<32x16x64xf32>, vector<32x16x64xf32>, vector<32x16x64xf32> -> vector<32x16x192xf32>
    %29 = arith.truncf %28 : vector<32x16x192xf32> to vector<32x16x192xbf16>
    %30 = vector.shape_cast %29 : vector<32x16x192xbf16> to vector<512x192xbf16>
    %c0_11 = arith.constant 0 : index
    %c0_12 = arith.constant 0 : index
    %31 = vector.load %arg4[%c0_11, %c0_12] : memref<192x64xbf16, #tpu.memory_space<vmem>>, vector<192x64xbf16>
    %cst_13 = arith.constant dense<0.000000e+00> : vector<512x64xf32>
    %32 = tpu.matmul %30, %31, %cst_13 {dimension_numbers = #tpu.dot_dimension_numbers<[1], [0], [0], [1], [0, 0, 1, 1], [], []>} : vector<512x192xbf16>, vector<192x64xbf16>, vector<512x64xf32> -> vector<512x64xf32>
    %c0_14 = arith.constant 0 : index
    %c0_15 = arith.constant 0 : index
    %33 = vector.load %arg6[%c0_14, %c0_15] : memref<2x64xf32, #tpu.memory_space<vmem>>, vector<1x64xf32>
    %34 = vector.broadcast %33 : vector<1x64xf32> to vector<512x64xf32>
    %35 = arith.addf %32, %34 : vector<512x64xf32>
    %cst_16 = arith.constant 0.000000e+00 : f32
    %36 = vector.broadcast %cst_16 : f32 to vector<512x64xf32>
    %37 = arith.maximumf %35, %36 : vector<512x64xf32>
    %38 = arith.truncf %37 : vector<512x64xf32> to vector<512x64xbf16>
    %39 = vector.shape_cast %38 : vector<512x64xbf16> to vector<2x16x16x64xbf16>
    %cst_17 = arith.constant 0.000000e+00 : bf16
    %40 = vector.broadcast %cst_17 : bf16 to vector<2x1x16x64xbf16>
    %c0_18 = arith.constant 0 : index
    %c0_19 = arith.constant 0 : index
    %c0_20 = arith.constant 0 : index
    %c0_21 = arith.constant 0 : index
    %41 = vector.load %arg9[%c0_18, %c0_19, %c0_20, %c0_21] : memref<2x18x16x64xbf16, #tpu.memory_space<vmem>>, vector<2x1x16x64xbf16>
    tpu.vector_store %arg9[%c0_18, %c0_19, %c0_20, %c0_21], %40 {strides = array<i32>} : memref<2x18x16x64xbf16, #tpu.memory_space<vmem>>, vector<2x1x16x64xbf16>,
    %c0_22 = arith.constant 0 : index
    %c17 = arith.constant 17 : index
    %c0_23 = arith.constant 0 : index
    %c0_24 = arith.constant 0 : index
    %42 = vector.load %arg9[%c0_22, %c17, %c0_23, %c0_24] : memref<2x18x16x64xbf16, #tpu.memory_space<vmem>>, vector<2x1x16x64xbf16>
    tpu.vector_store %arg9[%c0_22, %c17, %c0_23, %c0_24], %40 {strides = array<i32>} : memref<2x18x16x64xbf16, #tpu.memory_space<vmem>>, vector<2x1x16x64xbf16>,
    %c0_25 = arith.constant 0 : index
    %c1 = arith.constant 1 : index
    %c0_26 = arith.constant 0 : index
    %c0_27 = arith.constant 0 : index
    %43 = vector.load %arg9[%c0_25, %c1, %c0_26, %c0_27] : memref<2x18x16x64xbf16, #tpu.memory_space<vmem>>, vector<2x16x16x64xbf16>
    tpu.vector_store %arg9[%c0_25, %c1, %c0_26, %c0_27], %39 {strides = array<i32>} : memref<2x18x16x64xbf16, #tpu.memory_space<vmem>>, vector<2x16x16x64xbf16>,
    %c0_28 = arith.constant 0 : index
    %c0_29 = arith.constant 0 : index
    %c0_30 = arith.constant 0 : index
    %c0_31 = arith.constant 0 : index
    %44 = vector.load %arg9[%c0_28, %c0_29, %c0_30, %c0_31] : memref<2x18x16x64xbf16, #tpu.memory_space<vmem>>, vector<2x16x16x64xbf16>
    %c0_32 = arith.constant 0 : index
    %c2 = arith.constant 2 : index
    %c0_33 = arith.constant 0 : index
    %c0_34 = arith.constant 0 : index
    %45 = vector.load %arg9[%c0_32, %c2, %c0_33, %c0_34] : memref<2x18x16x64xbf16, #tpu.memory_space<vmem>>, vector<2x16x16x64xbf16>
    %46 = tpu.concatenate %44, %39, %45 in 3 : vector<2x16x16x64xbf16>, vector<2x16x16x64xbf16>, vector<2x16x16x64xbf16> -> vector<2x16x16x192xbf16>
    %47 = vector.shape_cast %46 : vector<2x16x16x192xbf16> to vector<512x192xbf16>
    %c0_35 = arith.constant 0 : index
    %c0_36 = arith.constant 0 : index
    %48 = vector.load %arg5[%c0_35, %c0_36] : memref<192x64xbf16, #tpu.memory_space<vmem>>, vector<192x64xbf16>
    %cst_37 = arith.constant dense<0.000000e+00> : vector<512x64xf32>
    %49 = tpu.matmul %47, %48, %cst_37 {dimension_numbers = #tpu.dot_dimension_numbers<[1], [0], [0], [1], [0, 0, 1, 1], [], []>} : vector<512x192xbf16>, vector<192x64xbf16>, vector<512x64xf32> -> vector<512x64xf32>
    %c1_38 = arith.constant 1 : index
    %c0_39 = arith.constant 0 : index
    %50 = vector.load %arg6[%c1_38, %c0_39] : memref<2x64xf32, #tpu.memory_space<vmem>>, vector<1x64xf32>
    %51 = vector.broadcast %50 : vector<1x64xf32> to vector<512x64xf32>
    %52 = arith.addf %49, %51 : vector<512x64xf32>
    %cst_40 = arith.constant 0.000000e+00 : f32
    %53 = vector.broadcast %cst_40 : f32 to vector<512x64xf32>
    %54 = arith.maximumf %52, %53 : vector<512x64xf32>
    %55 = arith.truncf %54 : vector<512x64xf32> to vector<512x64xbf16>
    %56 = tpu.concatenate %10, %55 in 1 : vector<512x64xbf16>, vector<512x64xbf16> -> vector<512x128xbf16>
    %c0_41 = arith.constant 0 : index
    %c0_42 = arith.constant 0 : index
    %57 = vector.load %arg7[%c0_41, %c0_42] : memref<128x448xbf16, #tpu.memory_space<vmem>>, vector<128x448xbf16>
    %cst_43 = arith.constant dense<0.000000e+00> : vector<512x448xf32>
    %58 = tpu.matmul %56, %57, %cst_43 {dimension_numbers = #tpu.dot_dimension_numbers<[1], [0], [0], [1], [0, 0, 1, 1], [], []>} : vector<512x128xbf16>, vector<128x448xbf16>, vector<512x448xf32> -> vector<512x448xf32>
    %59 = vector.shape_cast %58 : vector<512x448xf32> to vector<2x16x16x448xf32>
    %60 = arith.truncf %59 : vector<2x16x16x448xf32> to vector<2x16x16x448xbf16>
    %c0_44 = arith.constant 0 : index
    %c0_45 = arith.constant 0 : index
    %c0_46 = arith.constant 0 : index
    %c0_47 = arith.constant 0 : index
    %61 = vector.load %arg8[%c0_44, %c0_45, %c0_46, %c0_47] : memref<2x16x16x448xbf16, #tpu.memory_space<vmem>>, vector<2x16x16x448xbf16>
    tpu.vector_store %arg8[%c0_44, %c0_45, %c0_46, %c0_47], %60 {strides = array<i32>} : memref<2x16x16x448xbf16, #tpu.memory_space<vmem>>, vector<2x16x16x448xbf16>,
    return
  }
  func.func @transform_0(%arg0: i32) -> (i32, i32, i32, i32) {
    %c0_i32 = arith.constant 0 : i32
    %c0_i32_0 = arith.constant 0 : i32
    %c0_i32_1 = arith.constant 0 : i32
    %c0_i32_2 = arith.constant 0 : i32
    return %arg0, %c0_i32, %c0_i32_0, %c0_i32_1 : i32, i32, i32, i32
  }
  func.func @transform_1(%arg0: i32) -> (i32, i32) {
    %c0_i32 = arith.constant 0 : i32
    %c0_i32_0 = arith.constant 0 : i32
    %c0_i32_1 = arith.constant 0 : i32
    return %c0_i32, %c0_i32_0 : i32, i32
  }
  func.func @transform_2(%arg0: i32) -> (i32, i32) {
    %c0_i32 = arith.constant 0 : i32
    %c0_i32_0 = arith.constant 0 : i32
    %c0_i32_1 = arith.constant 0 : i32
    return %c0_i32, %c0_i32_0 : i32, i32
  }
  func.func @transform_3(%arg0: i32) -> (i32, i32) {
    %c0_i32 = arith.constant 0 : i32
    %c0_i32_0 = arith.constant 0 : i32
    %c0_i32_1 = arith.constant 0 : i32
    return %c0_i32, %c0_i32_0 : i32, i32
  }
  func.func @transform_4(%arg0: i32) -> (i32, i32) {
    %c0_i32 = arith.constant 0 : i32
    %c0_i32_0 = arith.constant 0 : i32
    %c0_i32_1 = arith.constant 0 : i32
    return %c0_i32, %c0_i32_0 : i32, i32
  }
  func.func @transform_5(%arg0: i32) -> (i32, i32) {
    %c0_i32 = arith.constant 0 : i32
    %c0_i32_0 = arith.constant 0 : i32
    %c0_i32_1 = arith.constant 0 : i32
    return %c0_i32, %c0_i32_0 : i32, i32
  }
  func.func @transform_6(%arg0: i32) -> (i32, i32) {
    %c0_i32 = arith.constant 0 : i32
    %c0_i32_0 = arith.constant 0 : i32
    %c0_i32_1 = arith.constant 0 : i32
    return %c0_i32, %c0_i32_0 : i32, i32
  }
  func.func @transform_7(%arg0: i32) -> (i32, i32, i32, i32) {
    %c0_i32 = arith.constant 0 : i32
    %c0_i32_0 = arith.constant 0 : i32
    %c0_i32_1 = arith.constant 0 : i32
    %c0_i32_2 = arith.constant 0 : i32
    return %arg0, %c0_i32, %c0_i32_0, %c0_i32_1 : i32, i32, i32, i32
  }
}

</mosaic_0001>

<bundles_post_ra>
// kernel: incresb_forward.1
= control target key start
LH: loop header
LB: loop body
LE: loop exit
PB: predicated region body
PF: predicated region fallthrough
CT: control target
= control target key end

     0   :  { %12 = vsyncpa [#allocation4], 0  ;;  %s10083_s0 = inlined_call_operand.vmem [shape: bf16[8,16,16,32], index: 0, kind: input, shape index: {}]   ;;  %s10084_s1 = inlined_call_operand.hbm [shape: bf16[32,128], index: 1, kind: input, shape index: {}]   ;;  %s10085_s2 = inlined_call_operand.hbm [shape: f32[1,128], index: 2, kind: input, shape index: {}]   ;;  %s10086_s3 = inlined_call_operand.vmem [shape: bf16[192,64], index: 3, kind: input, shape index: {}]   ;;  %s10087_s4 = inlined_call_operand.vmem [shape: bf16[192,64], index: 4, kind: input, shape index: {}]   ;;  %s10088_s5 = inlined_call_operand.hbm [shape: f32[2,64], index: 5, kind: input, shape index: {}]   ;;  %s10089_s6 = inlined_call_operand.vmem [shape: bf16[128,448], index: 6, kind: input, shape index: {}]   ;;  %s10090_s7 = inlined_call_operand.hbm [shape: bf16[8,16,16,448], index: 7, kind: output, shape index: {}]  }
   0x1   :  { %13 = vsyncpa [#allocation7], 0 }
   0x2   :  { %14 = vsyncpa [#allocation5], 0 }
   0x3   :  { %16 = vsyncpa [#allocation5 + $0x1], 0  ;;  %s7347_s24 = smov 0   ;;  %s7349_s25 = smov 0  }
   0x4   :  { %s7351_s26 = smov 0   ;;  %s7353_s27 = smov 0  }
   0x5 LB: > { %s7368_s28 = sadd.s32 4294967295, %s7296_s27   ;;  %s5987_s29 = sadd.s32 4294967294, %s7296_s27   ;;  %s7296_s27 = sphi %s7353_s27, %s10327_s27   ;;  %s7292_s26 = sphi %s7351_s26, %s10326_s26   ;;  %s7288_s25 = sphi %s7349_s25, %s10325_s25   ;;  %s7284_s24 = sphi %s7347_s24, %s10324_s24  }
   0x6   : > { %s7372_s30 = sadd.s32 1, %s7296_s27   ;;  %s181_s8 = sadd.s32 1, %s7292_s26 }
   0x7   : > { %s178_s9 = ssub.s32 %s7296_s27, %s7372_s30  ;;  %p191_p0 = scmp.ne.s32.totalorder %s7292_s26, %s7288_s25 }
   0x8   : > { %p179_p1 = scmp.eq.s32.totalorder %s178_s9, 0  ;;  %p192_p2 = scmp.eq.s32.totalorder %s7368_s28, 3 }
   0x9   : > { %p197_p3 = scmp.ne.s32.totalorder %s7288_s25, %s7284_s24  ;;  %p198_p4 = scmp.eq.s32.totalorder %s5987_s29, 3 }
   0xa   : > { %s7383_s10 = scalar_select %p179_p1, %s7292_s26, %s181_s8  }
   0xb   : > { %p7385_p5 = por %p192_p2, %p191_p0  ;;  %p7389_p6 = por %p198_p4, %p197_p3 }
   0xc   : > { %p5988_p7 = scmp.ge.s32.totalorder %s7296_s27, 1  ;;  %p205_p8 = scmp.lt.s32.totalorder %s7296_s27, 5 }
   0xd   : > { %p6918_p9 = scmp.eq.s32.totalorder %s7368_s28, 0  ;;  %s231_s16 = sshll.u32 %s10085_s2, 4  ;;  %s232_s16 = int_to_ptr.hbm [resolvable:$true] %s231_s16 }
   0xe   : > { %p7396_p10 = pnand %p5988_p7, %p205_p8  ;;  %s7298_s17 = smov [#allocation6]  }
   0xf   : > { %s233_s18 = sshll.u32 %s7298_s17, 4  ;;  %s216_s21 = sshll.u32 %s10084_s1, 4  ;;  %s234_s18 = int_to_ptr.vmem [resolvable:$true] %s233_s18  ;;  %s217_s21 = int_to_ptr.hbm [resolvable:$true] %s216_s21 }
  0x10   : > { %p6904_p11 = pneg %p7396_p10  ;;  %s7299_s23 = smov [#allocation3]  }
  0x11   : > { %s218_s29 = sshll.u32 %s7299_s23, 4  ;;  %s7300_s8 = smov 64   ;;  %s219_s29 = int_to_ptr.vmem [resolvable:$true] %s218_s29 }
  0x12   : > { %p7410_p12 = pnand %p6918_p9, %p6904_p11  ;;  %s7301_s9 = smov 4  }
  0x13   : > { %s249_s17 = sshll.u32 %s10088_s5, 4  ;;  %s7302_s19 = smov [#allocation8]   ;;  %s250_s17 = int_to_ptr.hbm [resolvable:$true] %s249_s17 }
  0x14   : > { %6910 = dma.hbm_to_vmem [thread:$0]  (!%p7410_p12), %s232_s16, 16, %s234_s18, [#allocation7]  }
  0x15   : > { %6907 = dma.hbm_to_vmem [thread:$0]  (!%p7410_p12), %s217_s21, 256, %s219_s29, [#allocation4], %s7300_s8, %s7300_s8, %s7301_s9  }
  0x16   : > { %s251_s20 = sshll.u32 %s7302_s19, 4  ;;  %277 = sbr.rel (%p7396_p10) target bundleno = 1867 (0x74b), region = 48  ;;  %s252_s20 = int_to_ptr.vmem [resolvable:$true] %s251_s20 }
  0x17   : > { %6913 = dma.hbm_to_vmem [thread:$0]  (!%p7410_p12), %s250_s17, 32, %s252_s20, [#allocation7]  }
  0x1b   : > { %7271 = dma.done.wait (%p6918_p9), [#allocation4], 256  }
  0x1c   : > { %7273 = vsyncadd (%p6918_p9), [#allocation4], 4294967040 }
  0x1d   : > { %7275 = dma.done.wait (%p6918_p9), [#allocation7], 48  }
  0x1e   : > { %7277 = vsyncadd (%p6918_p9), [#allocation7], 4294967248  ;;  %s5998_s16 = sshll.u32 %s7368_s28, 1  ;;  %v6753_v0 = vld [vmem:[#allocation3 + $0x8] sm:$0xff]  ;;  %v6752_v1 = vld [vmem:[#allocation3] sm:$0xff]  ;;  %vm574_vm0 = vcmask 261120  }
  0x1f   : > { %p322_p13 = scmp.lt.s32.totalorder %s5998_s16, 7  ;;  %677 = vmatpush.bf16.msra.mxu0 %v6753_v0  ;;  %6876 = vmatpush.bf16.msra.mxu1 %v6753_v0  ;;  %v6765_v13 = vld [vmem:[%s10086_s3 + $0x58] sm:$0xff]  ;;  %v7478_v22 = vld [vmem:[#allocation6] ss:$0 sm:$0xff]  ;;  %s7303_s20 = smov 64   ;;  %v6759_v35 = vld [vmem:[%s10086_s3 + $0x28] sm:$0xff] }
  0x20   : > { %6877 = vmatpush.bf16.msra.mxu2 %v6753_v0  ;;  %6878 = vmatpush.bf16.msra.mxu3 %v6753_v0  ;;  %v6761_v19 = vld [vmem:[%s10086_s3 + $0x38] sm:$0xff]  ;;  %v6760_v25 = vld [vmem:[%s10086_s3 + $0x30] sm:$0xff]  ;;  %v6758_v44 = vld [vmem:[%s10086_s3 + $0x20] sm:$0xff]  ;;  %vm1625_vm5 = vcmask 523264   ;;  %vm2702_vm6 = vcmask 519168   ;;  %vm5747_vm7 = vcmask 1043456  }
  0x21   : > { %s10329_s16 = smov (!%p322_p13, %s5998_s16), 7  ;;  %v6764_v26 = vld [vmem:[%s10086_s3 + $0x50] sm:$0xff]  ;;  %v6763_v45 = vld [vmem:[%s10086_s3 + $0x48] sm:$0xff]  ;;  %v6757_v56 = vld [vmem:[%s10086_s3 + $0x18] sm:$0xff]  ;;  %vm5748_vm8 = vcmask 523268  }
  0x22   : > { %s6719_s18 = sshll.u32 %s10329_s16, 7  ;;  %vm9460_vm9 = vmor %vm5748_vm8, %vm5747_vm7  ;;  %s7246_s16 = scalar_lea.hbm %s10090_s7, 4096 }
  0x23   : > { %s7437_s22 = scalar_lea.vmem %s10083_s0, %s6719_s18  ;;  %678 = vmatpush.bf16.msra.mxu0 %v6752_v1  ;;  %6879 = vmatpush.bf16.msra.mxu1 %v6752_v1  ;;  %s318_s18 = sand.u32 1, %s7288_s25  }
  0x24   : > { %v6720_v2 = vld [vmem:[%s7437_s22] sm:$0xff]  ;;  %6880 = vmatpush.bf16.msra.mxu2 %v6752_v1  ;;  %6881 = vmatpush.bf16.msra.mxu3 %v6752_v1  ;;  %v6721_v3 = vld [vmem:[%s7437_s22 + $0x8] sm:$0xff]  ;;  %v6722_v4 = vld [vmem:[%s7437_s22 + $0x10] sm:$0xff]  ;;  %s5997_s13 = sshll.u32 %s318_s18, 10 }
  0x25   : > { %v6729_v5 = vld [vmem:[%s7437_s22 + $0x48] sm:$0xff]  ;;  %v6723_v6 = vld [vmem:[%s7437_s22 + $0x18] sm:$0xff]  ;;  %v6730_v7 = vld [vmem:[%s7437_s22 + $0x50] sm:$0xff]  ;;  %s9410_s21 = scalar_lea.vmem [#allocation9], %s5997_s13 }
  0x26   : > { %6137 = vmatmul.msk.bf16.vlgmr.msra.gmra.mxu0 %vm574_vm0, %v6720_v2  ;;  %6146 = vmatmul.msk.bf16.vlgmr.msra.gmra.mxu1 %vm574_vm0, %v6729_v5  ;;  %v6724_v8 = vld [vmem:[%s7437_s22 + $0x20] sm:$0xff]  ;;  %v6731_v9 = vld [vmem:[%s7437_s22 + $0x58] sm:$0xff]  ;;  %v6725_v10 = vld [vmem:[%s7437_s22 + $0x28] sm:$0xff]  ;;  %s5891_s9 = sshll.u32 %s9410_s21, 4  ;;  %s5892_s9 = int_to_ptr.vmem [resolvable:$true] %s5891_s9 }
  0x27   : > { %v6732_v11 = vld [vmem:[%s7437_s22 + $0x60] sm:$0xff]  ;;  %v6737_v12 = vld [vmem:[%s7437_s22 + $0x88] sm:$0xff]  ;;  %v6726_v14 = vld [vmem:[%s7437_s22 + $0x30] sm:$0xff]  ;;  %2236 = vmatpush.bf16.msrb.mxu1 %v6761_v19 }
  0x28   : > { %6154 = vmatmul.msk.bf16.vlgmr.msra.gmra.mxu2 %vm574_vm0, %v6737_v12  ;;  %v6738_v15 = vld [vmem:[%s7437_s22 + $0x90] sm:$0xff]  ;;  %v6727_v16 = vld [vmem:[%s7437_s22 + $0x38] sm:$0xff]  ;;  %v6733_v17 = vld [vmem:[%s7437_s22 + $0x68] sm:$0xff] }
  0x29   : > { %2409 = vmatpush.bf16.msrb.mxu2 %v6765_v13  ;;  %v6739_v18 = vld [vmem:[%s7437_s22 + $0x98] sm:$0xff]  ;;  %v6728_v20 = vld [vmem:[%s7437_s22 + $0x40] sm:$0xff]  ;;  %v6741_v33 = vld [vmem:[%s7437_s22 + $0xa8] sm:$0xff] }
  0x2a   : > { %v6740_v23 = vld [vmem:[%s7437_s22 + $0xa0] sm:$0xff]  ;;  %v6742_v43 = vld [vmem:[%s7437_s22 + $0xb0] sm:$0xff]  ;;  %v6743_v55 = vld [vmem:[%s7437_s22 + $0xb8] sm:$0xff] }
  0x2b   : > { %2237 = vmatpush.bf16.msrb.mxu1 %v6760_v25  ;;  %v6734_v60 = vld [vmem:[%s7437_s22 + $0x70] sm:$0xff]  ;;  %v6744_v2 = vld [vmem:[%s7437_s22 + $0xc0] sm:$0xff] }
  0x2d   : > { %2410 = vmatpush.bf16.msrb.mxu2 %v6764_v26 }
  0x2f   : > { %2238 = vmatpush.bf16.msrb.mxu1 %v6759_v35 }
  0x31   : > { %2411 = vmatpush.bf16.msrb.mxu2 %v6763_v45 }
  0x33   : > { %2239 = vmatpush.bf16.msrb.mxu1 %v6758_v44 }
  0x36   : > { %6138 = vmatmul.msk.bf16.gmra.mxu0 %vm574_vm0, %v6721_v3  ;;  %6147 = vmatmul.msk.bf16.gmra.mxu1 %vm574_vm0, %v6730_v7  ;;  %v6756_v3 = vld [vmem:[%s10086_s3 + $0x10] sm:$0xff] }
  0x37   : > { %2240 = vmatpush.bf16.msrb.mxu1 %v6757_v56 }
  0x38   : > { %6155 = vmatmul.msk.bf16.gmra.mxu2 %vm574_vm0, %v6738_v15  ;;  %v6745_v15 = vld [vmem:[%s7437_s22 + $0xc8] sm:$0xff] }
  0x3b   : > { %2241 = vmatpush.bf16.msrb.mxu1 %v6756_v3 }
  0x46   : > { %6139 = vmatmul.msk.bf16.gmra.mxu0 %vm574_vm0, %v6722_v4  ;;  %6148 = vmatmul.msk.bf16.gmra.mxu1 %vm574_vm0, %v6731_v9 }
  0x48   : > { %6156 = vmatmul.msk.bf16.gmra.mxu2 %vm574_vm0, %v6739_v18 }
  0x56   : > { %6140 = vmatmul.msk.bf16.gmra.mxu0 %vm574_vm0, %v6723_v6  ;;  %6149 = vmatmul.msk.bf16.gmra.mxu1 %vm574_vm0, %v6732_v11  ;;  %v6762_v11 = vld [vmem:[%s10086_s3 + $0x40] sm:$0xff] }
  0x57   : > { %2412 = vmatpush.bf16.msrb.mxu2 %v6762_v11 }
  0x58   : > { %6157 = vmatmul.msk.bf16.gmra.mxu2 %vm574_vm0, %v6740_v23 }
  0x66   : > { %6141 = vmatmul.msk.bf16.gmra.mxu0 %vm574_vm0, %v6724_v8  ;;  %6150 = vmatmul.msk.bf16.gmra.mxu1 %vm574_vm0, %v6733_v17  ;;  %v6735_v8 = vld [vmem:[%s7437_s22 + $0x78] sm:$0xff] }
  0x68   : > { %6158 = vmatmul.msk.bf16.gmra.mxu2 %vm574_vm0, %v6741_v33 }
  0x76   : > { %6142 = vmatmul.msk.bf16.gmra.mxu0 %vm574_vm0, %v6725_v10  ;;  %6151 = vmatmul.msk.bf16.gmra.mxu1 %vm574_vm0, %v6734_v60 }
  0x78   : > { %6159 = vmatmul.msk.bf16.gmra.mxu2 %vm574_vm0, %v6742_v43 }
  0x86   : > { %6143 = vmatmul.msk.bf16.gmra.mxu0 %vm574_vm0, %v6726_v14  ;;  %6152 = vmatmul.msk.bf16.gmra.mxu1 %vm574_vm0, %v6735_v8 }
  0x88   : > { %6160 = vmatmul.msk.bf16.gmra.mxu2 %vm574_vm0, %v6743_v55  ;;  %v968_v55 = vlaneseq }
  0x96   : > { %6144 = vmatmul.msk.bf16.gmra.mxu0 %vm574_vm0, %v6727_v16  ;;  %v6755_v16 = vld [vmem:[%s10086_s3 + $0x8] sm:$0xff] }
  0x97   : > { %2242 = vmatpush.bf16.msrb.mxu1 %v6755_v16 }
  0x98   : > { %6161 = vmatmul.msk.bf16.gmra.mxu2 %vm574_vm0, %v6744_v2  ;;  %v7630_v2 = vshrl.u32 %v968_v55, 7 }
  0x9a   : > { %vm1293_vm1 = vcmp.lt.s32.totalorder %v7630_v2, 1  ;;  %vm1492_vm2 = vcmp.lt.s32.totalorder %v7630_v2, 7  ;;  %vm971_vm3 = vcmp.eq.s32.totalorder %v7630_v2, 0 }
  0xa3   : > { %v680_v21 = vpop.f32.mrf.mxu0  ;;  %v725_v49 = vpop.f32.mrf.mxu1 }
  0xa4   : > { %v681_v24 = vadd.f32 %v7478_v22, %v680_v21  ;;  %v726_v35 = vadd.f32 %v7478_v22, %v725_v49 }
  0xa6   : > { %6145 = vmatmul.msk.bf16.gmra.mxu0 %vm574_vm0, %v6728_v20  ;;  %v7491_v29 = vmax.f32 %v681_v24, 0.0  ;;  %v6736_v20 = vld [vmem:[%s7437_s22 + $0x80] sm:$0xff] }
  0xa7   : > { %6153 = vmatmul.msk.bf16.gmra.mxu1 %vm574_vm0, %v6736_v20 }
  0xa8   : > { %10162 = vst [vmem:[#allocation13_spill] sm:$0xff] %v7491_v29  ;;  %6162 = vmatmul.msk.bf16.gmra.mxu2 %vm574_vm0, %v6745_v15 }
  0xab   : > { %v682_v27 = vpop.f32.mrf.mxu0  ;;  %v727_v53 = vpop.f32.mrf.mxu1 }
  0xac   : > { %v683_v28 = vadd.f32 %v7478_v22, %v682_v27  ;;  %v7586_v26 = vpop.f32.mrf.mxu2 }
  0xae   : > { %v7493_v30 = vmax.f32 %v683_v28, 0.0 }
  0xb0   : > { %10163 = vst [vmem:[#allocation14_spill] sm:$0xff] %v7493_v30  ;;  %v6966_v31 = vpack.i.bf16 %v7493_v30, %v7491_v29 }
  0xb2   : > { %6967 = vrot.lane.b32.xlu0 %v6966_v31, %s7303_s20  ;;  %v6754_v31 = vld [vmem:[%s10086_s3] sm:$0xff] }
  0xb3   : > { %v685_v32 = vpop.f32.mrf.mxu0  ;;  %v7544_v63 = vpop.f32.mrf.mxu1  ;;  %2243 = vmatpush.bf16.msrb.mxu1 %v6754_v31 }
  0xb4   : > { %v686_v34 = vadd.f32 %v7478_v22, %v685_v32  ;;  %v731_v60 = vadd.f32 %v7478_v22, %v7544_v63  ;;  %v7641_v63 = vadd.s32 8, %v7630_v2 }
  0xb6   : > { %v7505_v38 = vmax.f32 %v686_v34, 0.0  ;;  %vm1427_vm4 = vcmp.eq.s32.totalorder %v7641_v63, 15 }
  0xb8   : > { %10164 = vst [vmem:[#allocation15_spill] sm:$0xff] %v7505_v38 }
  0xbb   : > { %v687_v36 = vpop.f32.mrf.mxu0  ;;  %v732_v5 = vpop.f32.mrf.mxu1 }
  0xbc   : > { %v688_v37 = vadd.f32 %v7478_v22, %v687_v36  ;;  %v728_v36 = vadd.f32 %v7478_v22, %v727_v53 }
  0xbe   : > { %v7507_v39 = vmax.f32 %v688_v37, 0.0  ;;  %v7605_v43 = vmax.f32 %v728_v36, 0.0 }
  0xc0   : > { %10165 = vst [vmem:[#allocation16_spill] sm:$0xff] %v7507_v39  ;;  %v6971_v40 = vpack.i.bf16 %v7507_v39, %v7505_v38 }
  0xc1   : > { %10177 = vst [vmem:[#allocation28_spill] sm:$0xff] %v7605_v43 }
  0xc2   : > { %6972 = vrot.lane.b32.xlu0 %v6971_v40, %s7303_s20  ;;  %v7599_v40 = vpop.f32.mrf.mxu2 }
  0xc3   : > { %v690_v41 = vpop.f32.mrf.mxu0  ;;  %v7566_v13 = vpop.f32.mrf.mxu1 }
  0xc4   : > { %v691_v42 = vadd.f32 %v7478_v22, %v690_v41 }
  0xc6   : > { %v7521_v47 = vmax.f32 %v691_v42, 0.0  ;;  %v7603_v42 = vmax.f32 %v726_v35, 0.0 }
  0xc8   : > { %10166 = vst [vmem:[#allocation17_spill] sm:$0xff] %v7521_v47 }
  0xc9   : > { %10176 = vst [vmem:[#allocation27_spill] sm:$0xff] %v7603_v42 }
  0xcb   : > { %v692_v46 = vpop.f32.mrf.mxu0  ;;  %v7581_v23 = vpop.f32.mrf.mxu1 }
  0xcc   : > { %v693_v48 = vadd.f32 %v7478_v22, %v692_v46 }
  0xce   : > { %v7524_v50 = vmax.f32 %v693_v48, 0.0  ;;  %v7011_v48 = vpack.i.bf16 %v7605_v43, %v7603_v42 }
  0xd0   : > { %10167 = vst [vmem:[#allocation18_spill] sm:$0xff] %v7524_v50  ;;  %v6976_v51 = vpack.i.bf16 %v7524_v50, %v7521_v47 }
  0xd2   : > { %6977 = vrot.lane.b32.xlu1 %v6976_v51, %s7303_s20 }
  0xd3   : > { %v695_v52 = vpop.f32.mrf.mxu0  ;;  %v740_v28 = vpop.f32.mrf.mxu1 }
  0xd4   : > { %v696_v54 = vadd.f32 %v7478_v22, %v695_v52  ;;  %v741_v46 = vadd.f32 %v7478_v22, %v740_v28  ;;  %v7613_v52 = vpop.f32.mrf.mxu2 }
  0xd6   : > { %v7535_v58 = vmax.f32 %v696_v54, 0.0  ;;  %v7615_v53 = vmax.f32 %v741_v46, 0.0 }
  0xd8   : > { %10168 = vst [vmem:[#allocation19_spill] sm:$0xff] %v7535_v58 }
  0xd9   : > { %10178 = vst [vmem:[#allocation29_spill] sm:$0xff] %v7615_v53 }
  0xdb   : > { %v697_v57 = vpop.f32.mrf.mxu0  ;;  %v742_v45 = vpop.f32.mrf.mxu1 }
  0xdc   : > { %v698_v59 = vadd.f32 %v7478_v22, %v697_v57  ;;  %v743_v49 = vadd.f32 %v7478_v22, %v742_v45 }
  0xde   : > { %v7539_v61 = vmax.f32 %v698_v59, 0.0  ;;  %v7618_v54 = vmax.f32 %v743_v49, 0.0 }
  0xe0   : > { %10169 = vst [vmem:[#allocation20_spill] sm:$0xff] %v7539_v61  ;;  %v6981_v62 = vpack.i.bf16 %v7539_v61, %v7535_v58 }
  0xe1   : > { %10179 = vst [vmem:[#allocation30_spill] sm:$0xff] %v7618_v54 }
  0xe2   : > { %6982 = vrot.lane.b32.xlu1 %v6981_v62, %s7303_s20  ;;  %v733_v62 = vadd.f32 %v7478_v22, %v732_v5  ;;  %v7643_v5 = vpop.f32.mrf.mxu2 }
  0xe3   : > { %v700_v0 = vpop.f32.mrf.mxu0  ;;  %v745_v28 = vpop.f32.mrf.mxu1 }
  0xe4   : > { %v701_v1 = vadd.f32 %v7478_v22, %v700_v0 }
  0xe6   : > { %v7553_v6 = vmax.f32 %v701_v1, 0.0  ;;  %v7026_v1 = vpack.i.bf16 %v7618_v54, %v7615_v53 }
  0xe8   : > { %10170 = vst [vmem:[#allocation21_spill] sm:$0xff] %v7553_v6 }
  0xea   : > { %v7672_v49 = vpop.f32.mrf.mxu2 }
  0xeb   : > { %v702_v4 = vpop.f32.mrf.mxu0 }
  0xec   : > { %v703_v7 = vadd.f32 %v7478_v22, %v702_v4  ;;  %v7634_v4 = vmax.f32 %v731_v60, 0.0 }
  0xee   : > { %v7557_v9 = vmax.f32 %v703_v7, 0.0  ;;  %10182 = vst [vmem:[#allocation33_spill] sm:$0xff] %v7634_v4  ;;  %v7636_v7 = vmax.f32 %v733_v62, 0.0 }
  0xf0   : > { %10171 = vst [vmem:[#allocation22_spill] sm:$0xff] %v7557_v9  ;;  %v6986_v10 = vpack.i.bf16 %v7557_v9, %v7553_v6 }
  0xf1   : > { %10183 = vst [vmem:[#allocation34_spill] sm:$0xff] %v7636_v7 }
  0xf2   : > { %6987 = vrot.lane.b32.xlu2 %v6986_v10, %s7303_s20 }
  0xf3   : > { %v705_v12 = vpop.f32.mrf.mxu0 }
  0xf4   : > { %v706_v14 = vadd.f32 %v7478_v22, %v705_v12 }
  0xf6   : > { %v7574_v18 = vmax.f32 %v706_v14, 0.0  ;;  %v7016_v14 = vpack.i.bf16 %v7636_v7, %v7634_v4 }
  0xf8   : > { %10172 = vst [vmem:[#allocation23_spill] sm:$0xff] %v7574_v18 }
  0xfb   : > { %v707_v17 = vpop.f32.mrf.mxu0 }
  0xfc   : > { %v708_v19 = vadd.f32 %v7478_v22, %v707_v17 }
  0xfe   : > { %v7578_v21 = vmax.f32 %v708_v19, 0.0 }
 0x100   : > { %10173 = vst [vmem:[#allocation24_spill] sm:$0xff] %v7578_v21  ;;  %v6991_v24 = vpack.i.bf16 %v7578_v21, %v7574_v18 }
 0x102   : > { %6992 = vrot.lane.b32.xlu2 %v6991_v24, %s7303_s20 }
 0x103   : > { %v710_v25 = vpop.f32.mrf.mxu0 }
 0x104   : > { %v711_v27 = vadd.f32 %v7478_v22, %v710_v25 }
 0x106   : > { %v7592_v33 = vmax.f32 %v711_v27, 0.0 }
 0x108   : > { %10174 = vst [vmem:[#allocation25_spill] sm:$0xff] %v7592_v33 }
 0x10b   : > { %v712_v32 = vpop.f32.mrf.mxu0 }
 0x10c   : > { %v713_v34 = vadd.f32 %v7478_v22, %v712_v32 }
 0x10e   : > { %v7597_v37 = vmax.f32 %v713_v34, 0.0 }
 0x110   : > { %10175 = vst [vmem:[#allocation26_spill] sm:$0xff] %v7597_v37  ;;  %v6996_v41 = vpack.i.bf16 %v7597_v37, %v7592_v33 }
 0x112   : > { %6997 = vrot.lane.b32.xlu0 %v6996_v41, %s7303_s20 }
 0x113   : > { %v715_v44 = vpop.f32.mrf.mxu0 }
 0x114   : > { %v716_v51 = vadd.f32 %v7478_v22, %v715_v44 }
 0x116   : > { %v7620_v57 = vmax.f32 %v716_v51, 0.0  ;;  %v736_v51 = vadd.f32 %v7478_v22, %v7566_v13  ;;  %v747_v13 = vpop.f32.mrf.mxu1 }
 0x118   : > { %10180 = vst [vmem:[#allocation31_spill] sm:$0xff] %v7620_v57 }
 0x11a   : > { %7012 = vrot.lane.b32.xlu0 %v7011_v48, %s7303_s20 }
 0x11b   : > { %v717_v56 = vpop.f32.mrf.mxu0 }
 0x11c   : > { %v718_v59 = vadd.f32 %v7478_v22, %v717_v56 }
 0x11e   : > { %v7626_v0 = vmax.f32 %v718_v59, 0.0  ;;  %v738_v59 = vadd.f32 %v7478_v22, %v7581_v23 }
 0x120   : > { %10181 = vst [vmem:[#allocation32_spill] sm:$0xff] %v7626_v0  ;;  %v7001_v3 = vpack.i.bf16 %v7626_v0, %v7620_v57 }
 0x122   : > { %7002 = vrot.lane.b32.xlu1 %v7001_v3, %s7303_s20  ;;  %7027 = vrot.lane.b32.xlu0 %v7026_v1, %s7303_s20 }
 0x123   : > { %v720_v8 = vpop.f32.mrf.mxu0 }
 0x124   : > { %v6968_v10 = vpop.permute.xlu0 %6967  ;;  %v721_v20 = vadd.f32 %v7478_v22, %v720_v8 }
 0x125   : > { %v6970_v11 = vunpack.i.h.bf16 %v6968_v10  ;;  %v6969_v12 = vunpack.i.l.bf16 %v6968_v10 }
 0x126   : > { %v7669_v45 = vmax.f32 %v721_v20, 0.0  ;;  %v7692_v20 = vpop.f32.mrf.mxu2 }
 0x127   : > { %v1261_v15 = vrot.slane %v6970_v11, 7  ;;  %v1460_v16 = vrot.slane %v6970_v11, 1  ;;  %v1229_v17 = vrot.slane %v6969_v12, 7  ;;  %v1428_v19 = vrot.slane %v6969_v12, 1 }
 0x128   : > { %10184 = vst [vmem:[#allocation35_spill] sm:$0xff] %v7669_v45  ;;  %v7682_v11 = vmax.f32 %v736_v51, 0.0  ;;  %v7684_v12 = vmax.f32 %v738_v59, 0.0 }
 0x129   : > { %v1294_v24 = vsel %vm1293_vm1, %v1229_v17, %v1261_v15  ;;  %v1326_v25 = vsel %vm1293_vm1, %v1261_v15, %v1229_v17  ;;  %v1525_v27 = vsel %vm1492_vm2, %v1460_v16, %v1428_v19  ;;  %v1493_v35 = vsel %vm1492_vm2, %v1428_v19, %v1460_v16 }
 0x12a   : > { %v1362_v31 = vsel %vm971_vm3, 0.0, %v1326_v25  ;;  %7017 = vrot.lane.b32.xlu1 %v7016_v14, %s7303_s20  ;;  %v1562_v32 = vsel %vm1427_vm4, 0.0, %v1525_v27  ;;  %v1627_v34 = vsel %vm1625_vm5, %v1294_v24, %v7493_v30  ;;  %10186 = vst [vmem:[#allocation37_spill] sm:$0xff] %v7682_v11  ;;  %v746_v14 = vadd.f32 %v7478_v22, %v745_v28 }
 0x12b   : > { %v722_v36 = vpop.f32.mrf.mxu0  ;;  %v1626_v41 = vsel %vm1625_vm5, %v1362_v31, %v7491_v29  ;;  %v1691_v44 = vpack.c.bf16 %v1562_v32, %v1627_v34  ;;  %10187 = vst [vmem:[#allocation38_spill] sm:$0xff] %v7684_v12  ;;  %v7021_v17 = vpack.i.bf16 %v7684_v12, %v7682_v11  ;;  %v748_v19 = vadd.f32 %v7478_v22, %v747_v13 }
 0x12c   : > { %v723_v46 = vadd.f32 %v7478_v22, %v722_v36  ;;  %v1690_v48 = vpack.c.bf16 %v1493_v35, %v1626_v41  ;;  %v7694_v32 = vmax.f32 %v746_v14, 0.0 }
 0x12d   : > { %v1846_v55 = vunpack.c.l.b16 %v1691_v44  ;;  %v1847_v56 = vunpack.c.h.b16 %v1691_v44  ;;  %v7703_v36 = vmax.f32 %v748_v19, 0.0 }
 0x12e   : > { %v7678_v60 = vmax.f32 %v723_v46, 0.0  ;;  %v1844_v62 = vunpack.c.l.b16 %v1690_v48  ;;  %v1845_v1 = vunpack.c.h.b16 %v1690_v48  ;;  %10188 = vst [vmem:[#allocation39_spill] sm:$0xff] %v7694_v32 }
 0x12f   : > { %10189 = vst [vmem:[#allocation40_spill] sm:$0xff] %v7703_v36 }
 0x130   : > { %10185 = vst [vmem:[#allocation36_spill] sm:$0xff] %v7678_v60  ;;  %v7006_v3 = vpack.i.bf16 %v7678_v60, %v7669_v45  ;;  %v1972_v8 = vpack.c.b16 %v1846_v55, %v1844_v62  ;;  %v1973_v10 = vpack.c.b16 %v1847_v56, %v1845_v1  ;;  %v7031_v1 = vpack.i.bf16 %v7703_v36, %v7694_v32 }
 0x132   : > { %7007 = vrot.lane.b32.xlu2 %v7006_v3, %s7303_s20  ;;  %2244 = vmatmul.bf16.vlgmr.msrb.gmra.mxu1 %v1972_v8 }
 0x133   : > { %6217 = vmatmul.msk.bf16.vlgmr.msrb.gmra.mxu2 %vm1625_vm5, %v1973_v10 }
 0x134   : > { %v6973_v23 = vpop.permute.xlu0 %6972 }
 0x135   : > { %v6975_v15 = vunpack.i.h.bf16 %v6973_v23  ;;  %v6974_v16 = vunpack.i.l.bf16 %v6973_v23  ;;  %v7717_v23 = vpop.f32.mrf.mxu2 }
 0x137   : > { %v1262_v24 = vrot.slane %v6975_v15, 7  ;;  %v1461_v25 = vrot.slane %v6975_v15, 1  ;;  %v1230_v27 = vrot.slane %v6974_v16, 7  ;;  %v1429_v31 = vrot.slane %v6974_v16, 1 }
 0x139   : > { %v1295_v34 = vsel %vm1293_vm1, %v1230_v27, %v1262_v24  ;;  %v1327_v28 = vsel %vm1293_vm1, %v1262_v24, %v1230_v27  ;;  %v1526_v35 = vsel %vm1492_vm2, %v1461_v25, %v1429_v31  ;;  %v1494_v48 = vsel %vm1492_vm2, %v1429_v31, %v1461_v25 }
 0x13a   : > { %7022 = vrot.lane.b32.xlu2 %v7021_v17, %s7303_s20  ;;  %v1364_v41 = vsel %vm971_vm3, 0.0, %v1327_v28  ;;  %v1564_v44 = vsel %vm1427_vm4, 0.0, %v1526_v35  ;;  %v1629_v46 = vsel %vm1625_vm5, %v1295_v34, %v7507_v39 }
 0x13b   : > { %v1628_v51 = vsel %vm1625_vm5, %v1364_v41, %v7505_v38  ;;  %v1693_v55 = vpack.c.bf16 %v1564_v44, %v1629_v46 }
 0x13c   : > { %v1692_v56 = vpack.c.bf16 %v1494_v48, %v1628_v51 }
 0x13d   : > { %v1850_v59 = vunpack.c.l.b16 %v1693_v55  ;;  %v1851_v62 = vunpack.c.h.b16 %v1693_v55  ;;  %v7735_v46 = vpop.f32.mrf.mxu2 }
 0x13e   : > { %v1848_v3 = vunpack.c.l.b16 %v1692_v56  ;;  %v1849_v8 = vunpack.c.h.b16 %v1692_v56 }
 0x140   : > { %v1974_v10 = vpack.c.b16 %v1850_v59, %v1848_v3  ;;  %v1975_v13 = vpack.c.b16 %v1851_v62, %v1849_v8 }
 0x142   : > { %7032 = vrot.lane.b32.xlu2 %v7031_v1, %s7303_s20  ;;  %2249 = vmatmul.bf16.gmra.mxu1 %v1974_v10 }
 0x143   : > { %6218 = vmatmul.msk.bf16.gmra.mxu2 %vm1625_vm5, %v1975_v13 }
 0x144   : > { %v6978_v14 = vpop.permute.xlu1 %6977 }
 0x145   : > { %v6980_v15 = vunpack.i.h.bf16 %v6978_v14  ;;  %v6979_v16 = vunpack.i.l.bf16 %v6978_v14  ;;  %v7740_v14 = vpop.f32.mrf.mxu2 }
 0x147   : > { %v1263_v17 = vrot.slane %v6980_v15, 7  ;;  %v1462_v19 = vrot.slane %v6980_v15, 1  ;;  %v1231_v24 = vrot.slane %v6979_v16, 7  ;;  %v1430_v25 = vrot.slane %v6979_v16, 1 }
 0x149   : > { %v1296_v27 = vsel %vm1293_vm1, %v1231_v24, %v1263_v17  ;;  %v1328_v31 = vsel %vm1293_vm1, %v1263_v17, %v1231_v24  ;;  %v1495_v34 = vsel %vm1492_vm2, %v1430_v25, %v1462_v19  ;;  %v1527_v28 = vsel %vm1492_vm2, %v1462_v19, %v1430_v25 }
 0x14a   : > { %v1366_v35 = vsel %vm971_vm3, 0.0, %v1328_v31  ;;  %v1566_v41 = vsel %vm1427_vm4, 0.0, %v1527_v28  ;;  %v1631_v44 = vsel %vm1625_vm5, %v1296_v27, %v7524_v50 }
 0x14b   : > { %v1630_v48 = vsel %vm1625_vm5, %v1366_v35, %v7521_v47  ;;  %v1695_v51 = vpack.c.bf16 %v1566_v41, %v1631_v44 }
 0x14c   : > { %v1694_v55 = vpack.c.bf16 %v1495_v34, %v1630_v48  ;;  %v6988_v10 = vpop.permute.xlu2 %6987 }
 0x14d   : > { %v1854_v56 = vunpack.c.l.b16 %v1695_v51  ;;  %v1855_v59 = vunpack.c.h.b16 %v1695_v51  ;;  %v6990_v17 = vunpack.i.h.bf16 %v6988_v10  ;;  %v6989_v19 = vunpack.i.l.bf16 %v6988_v10 }
 0x14e   : > { %v1852_v62 = vunpack.c.l.b16 %v1694_v55  ;;  %v1853_v1 = vunpack.c.h.b16 %v1694_v55 }
 0x14f   : > { %v1265_v55 = vrot.slane %v6990_v17, 7  ;;  %v1464_v10 = vrot.slane %v6990_v17, 1 }
 0x150   : > { %v1976_v3 = vpack.c.b16 %v1854_v56, %v1852_v62  ;;  %v1977_v8 = vpack.c.b16 %v1855_v59, %v1853_v1  ;;  %v1233_v56 = vrot.slane %v6989_v19, 7 }
 0x152   : > { %2254 = vmatmul.bf16.gmra.mxu1 %v1976_v3 }
 0x153   : > { %6219 = vmatmul.msk.bf16.gmra.mxu2 %vm1625_vm5, %v1977_v8 }
 0x154   : > { %v6983_v13 = vpop.permute.xlu1 %6982 }
 0x155   : > { %v6985_v15 = vunpack.i.h.bf16 %v6983_v13  ;;  %v6984_v16 = vunpack.i.l.bf16 %v6983_v13  ;;  %v1432_v13 = vrot.slane %v6989_v19, 1 }
 0x157   : > { %v1264_v24 = vrot.slane %v6985_v15, 7  ;;  %v1463_v25 = vrot.slane %v6985_v15, 1  ;;  %v1232_v27 = vrot.slane %v6984_v16, 7  ;;  %v1431_v31 = vrot.slane %v6984_v16, 1 }
 0x158   : > { %v1497_v19 = vsel %vm1492_vm2, %v1432_v13, %v1464_v10 }
 0x159   : > { %v1297_v34 = vsel %vm1293_vm1, %v1232_v27, %v1264_v24  ;;  %v1329_v28 = vsel %vm1293_vm1, %v1264_v24, %v1232_v27  ;;  %v1496_v35 = vsel %vm1492_vm2, %v1431_v31, %v1463_v25  ;;  %v1528_v41 = vsel %vm1492_vm2, %v1463_v25, %v1431_v31  ;;  %v7758_v24 = vpop.f32.mrf.mxu2 }
 0x15a   : > { %v1368_v44 = vsel %vm971_vm3, 0.0, %v1329_v28  ;;  %v1568_v48 = vsel %vm1427_vm4, 0.0, %v1528_v41  ;;  %v1633_v51 = vsel %vm1625_vm5, %v1297_v34, %v7539_v61  ;;  %v1330_v25 = vsel %vm1293_vm1, %v1265_v55, %v1233_v56 }
 0x15b   : > { %v1632_v59 = vsel %vm1625_vm5, %v1368_v44, %v7535_v58  ;;  %v1697_v62 = vpack.c.bf16 %v1568_v48, %v1633_v51  ;;  %v1298_v34 = vsel %vm1293_vm1, %v1233_v56, %v1265_v55  ;;  %v1370_v28 = vsel %vm971_vm3, 0.0, %v1330_v25 }
 0x15c   : > { %v1696_v1 = vpack.c.bf16 %v1496_v35, %v1632_v59  ;;  %v1529_v35 = vsel %vm1492_vm2, %v1464_v10, %v1432_v13  ;;  %v6993_v17 = vpop.permute.xlu2 %6992  ;;  %v1634_v44 = vsel %vm1625_vm5, %v1370_v28, %v7553_v6  ;;  %v1635_v48 = vsel %vm1625_vm5, %v1298_v34, %v7557_v9 }
 0x15d   : > { %v1858_v3 = vunpack.c.l.b16 %v1697_v62  ;;  %v1859_v8 = vunpack.c.h.b16 %v1697_v62  ;;  %v1570_v41 = vsel %vm1427_vm4, 0.0, %v1529_v35  ;;  %v6995_v51 = vunpack.i.h.bf16 %v6993_v17 }
 0x15e   : > { %v1856_v15 = vunpack.c.l.b16 %v1696_v1  ;;  %v1857_v16 = vunpack.c.h.b16 %v1696_v1  ;;  %v6994_v55 = vunpack.i.l.bf16 %v6993_v17  ;;  %v1698_v59 = vpack.c.bf16 %v1497_v19, %v1634_v44  ;;  %v7792_v44 = vpop.f32.mrf.mxu1 }
 0x15f   : > { %v1699_v62 = vpack.c.bf16 %v1570_v41, %v1635_v48  ;;  %v1266_v1 = vrot.slane %v6995_v51, 7 }
 0x160   : > { %v1978_v27 = vpack.c.b16 %v1858_v3, %v1856_v15  ;;  %v1979_v31 = vpack.c.b16 %v1859_v8, %v1857_v16  ;;  %v1234_v3 = vrot.slane %v6994_v55, 7  ;;  %v1860_v8 = vunpack.c.l.b16 %v1698_v59 }
 0x161   : > { %v7777_v56 = vpop.f32.mrf.mxu2  ;;  %v1862_v15 = vunpack.c.l.b16 %v1699_v62  ;;  %v1861_v10 = vunpack.c.h.b16 %v1698_v59  ;;  %v1863_v13 = vunpack.c.h.b16 %v1699_v62  ;;  %v1465_v16 = vrot.slane %v6995_v51, 1 }
 0x162   : > { %2259 = vmatmul.bf16.gmra.mxu1 %v1978_v27  ;;  %v1433_v25 = vrot.slane %v6994_v55, 1  ;;  %v1331_v27 = vsel %vm1293_vm1, %v1266_v1, %v1234_v3  ;;  %v1299_v34 = vsel %vm1293_vm1, %v1234_v3, %v1266_v1 }
 0x163   : > { %6220 = vmatmul.msk.bf16.gmra.mxu2 %vm1625_vm5, %v1979_v31  ;;  %v1980_v31 = vpack.c.b16 %v1862_v15, %v1860_v8  ;;  %v1981_v28 = vpack.c.b16 %v1863_v13, %v1861_v10  ;;  %v1372_v35 = vsel %vm971_vm3, 0.0, %v1331_v27  ;;  %v1637_v55 = vsel %vm1625_vm5, %v1299_v34, %v7578_v21 }
 0x164   : > { %v1530_v17 = vsel %vm1492_vm2, %v1465_v16, %v1433_v25  ;;  %v1498_v41 = vsel %vm1492_vm2, %v1433_v25, %v1465_v16  ;;  %v1636_v51 = vsel %vm1625_vm5, %v1372_v35, %v7574_v18 }
 0x165   : > { %v1572_v48 = vsel %vm1427_vm4, 0.0, %v1530_v17  ;;  %v1700_v59 = vpack.c.bf16 %v1498_v41, %v1636_v51 }
 0x166   : > { %v1701_v62 = vpack.c.bf16 %v1572_v48, %v1637_v55  ;;  %v7802_v13 = vpop.f32.mrf.mxu1 }
 0x167   : > { %v1864_v3 = vunpack.c.l.b16 %v1700_v59  ;;  %v1865_v15 = vunpack.c.h.b16 %v1700_v59 }
 0x168   : > { %v1866_v8 = vunpack.c.l.b16 %v1701_v62  ;;  %v1867_v10 = vunpack.c.h.b16 %v1701_v62 }
 0x169   : > { %v7787_v19 = vpop.f32.mrf.mxu2 }
 0x16a   : > { %v1982_v16 = vpack.c.b16 %v1866_v8, %v1864_v3  ;;  %v1983_v25 = vpack.c.b16 %v1867_v10, %v1865_v15 }
 0x16e   : > { %v7815_v3 = vpop.f32.mrf.mxu1 }
 0x171   : > { %v7800_v1 = vpop.f32.mrf.mxu2 }
 0x172   : > { %2264 = vmatmul.bf16.gmra.mxu1 %v1980_v31 }
 0x173   : > { %6221 = vmatmul.msk.bf16.gmra.mxu2 %vm1625_vm5, %v1981_v28 }
 0x179   : > { %v7805_v35 = vpop.f32.mrf.mxu2 }
 0x182   : > { %2269 = vmatmul.bf16.gmra.mxu1 %v1982_v16 }
 0x183   : > { %6222 = vmatmul.msk.bf16.gmra.mxu2 %vm1625_vm5, %v1983_v25 }
 0x184   : > { %v6998_v27 = vpop.permute.xlu0 %6997 }
 0x185   : > { %v7000_v31 = vunpack.i.h.bf16 %v6998_v27  ;;  %v6999_v28 = vunpack.i.l.bf16 %v6998_v27 }
 0x187   : > { %v1267_v34 = vrot.slane %v7000_v31, 7  ;;  %v1466_v17 = vrot.slane %v7000_v31, 1  ;;  %v1235_v41 = vrot.slane %v6999_v28, 7  ;;  %v1434_v48 = vrot.slane %v6999_v28, 1 }
 0x189   : > { %v1300_v51 = vsel %vm1293_vm1, %v1235_v41, %v1267_v34  ;;  %v1332_v55 = vsel %vm1293_vm1, %v1267_v34, %v1235_v41  ;;  %v1499_v59 = vsel %vm1492_vm2, %v1434_v48, %v1466_v17  ;;  %v1531_v62 = vsel %vm1492_vm2, %v1466_v17, %v1434_v48  ;;  %v7825_v41 = vpop.f32.mrf.mxu2 }
 0x18a   : > { %v1374_v8 = vsel %vm971_vm3, 0.0, %v1332_v55  ;;  %v1574_v15 = vsel %vm1427_vm4, 0.0, %v1531_v62  ;;  %v1639_v10 = vsel %vm1625_vm5, %v1300_v51, %v7597_v37  ;;  %v7827_v55 = vpop.f32.mrf.mxu1 }
 0x18b   : > { %v1638_v16 = vsel %vm1625_vm5, %v1374_v8, %v7592_v33  ;;  %v1703_v25 = vpack.c.bf16 %v1574_v15, %v1639_v10 }
 0x18c   : > { %v1702_v27 = vpack.c.bf16 %v1499_v59, %v1638_v16 }
 0x18d   : > { %v1870_v28 = vunpack.c.l.b16 %v1703_v25  ;;  %v1871_v17 = vunpack.c.h.b16 %v1703_v25  ;;  %v7008_v25 = vpop.permute.xlu2 %7007 }
 0x18e   : > { %v1868_v31 = vunpack.c.l.b16 %v1702_v27  ;;  %v1869_v34 = vunpack.c.h.b16 %v1702_v27 }
 0x190   : > { %v1984_v48 = vpack.c.b16 %v1870_v28, %v1868_v31  ;;  %v1985_v21 = vpack.c.b16 %v1871_v17, %v1869_v34  ;;  %v7010_v28 = vunpack.i.h.bf16 %v7008_v25  ;;  %v7009_v34 = vunpack.i.l.bf16 %v7008_v25 }
 0x191   : > { %v7832_v16 = vpop.f32.mrf.mxu2 }
 0x192   : > { %2274 = vmatmul.bf16.gmra.mxu1 %v1984_v48  ;;  %v7836_v31 = vpop.f32.mrf.mxu1  ;;  %v1237_v33 = vrot.slane %v7009_v34, 7  ;;  %v1468_v61 = vrot.slane %v7010_v28, 1  ;;  %v1436_v58 = vrot.slane %v7009_v34, 1 }
 0x193   : > { %6223 = vmatmul.msk.bf16.gmra.mxu2 %vm1625_vm5, %v1985_v21 }
 0x194   : > { %v7003_v18 = vpop.permute.xlu1 %7002 }
 0x195   : > { %v7005_v51 = vunpack.i.h.bf16 %v7003_v18  ;;  %v7004_v62 = vunpack.i.l.bf16 %v7003_v18 }
 0x197   : > { %v1268_v37 = vrot.slane %v7005_v51, 7  ;;  %v1236_v8 = vrot.slane %v7004_v62, 7  ;;  %v1467_v15 = vrot.slane %v7005_v51, 1  ;;  %v1435_v10 = vrot.slane %v7004_v62, 1 }
 0x199   : > { %v1333_v59 = vsel %vm1293_vm1, %v1268_v37, %v1236_v8  ;;  %v1301_v21 = vsel %vm1293_vm1, %v1236_v8, %v1268_v37  ;;  %v1532_v18 = vsel %vm1492_vm2, %v1467_v15, %v1435_v10  ;;  %v1500_v17 = vsel %vm1492_vm2, %v1435_v10, %v1467_v15  ;;  %v7850_v8 = vpop.f32.mrf.mxu2 }
 0x19a   : > { %v1376_v27 = vsel %vm971_vm3, 0.0, %v1333_v59  ;;  %v1576_v51 = vsel %vm1427_vm4, 0.0, %v1532_v18  ;;  %v1641_v62 = vsel %vm1625_vm5, %v1301_v21, %v7626_v0  ;;  %v1269_v59 = vrot.slane %v7010_v28, 7 }
 0x19b   : > { %v1640_v48 = vsel %vm1625_vm5, %v1376_v27, %v7620_v57  ;;  %v1705_v9 = vpack.c.bf16 %v1576_v51, %v1641_v62  ;;  %v7854_v57 = vpop.f32.mrf.mxu1  ;;  %v1501_v28 = vsel %vm1492_vm2, %v1436_v58, %v1468_v61 }
 0x19c   : > { %v1704_v37 = vpack.c.bf16 %v1500_v17, %v1640_v48  ;;  %v1334_v27 = vsel %vm1293_vm1, %v1269_v59, %v1237_v33  ;;  %v1302_v21 = vsel %vm1293_vm1, %v1237_v33, %v1269_v59  ;;  %v1533_v48 = vsel %vm1492_vm2, %v1468_v61, %v1436_v58 }
 0x19d   : > { %v1874_v15 = vunpack.c.l.b16 %v1705_v9  ;;  %v1875_v10 = vunpack.c.h.b16 %v1705_v9  ;;  %v1378_v17 = vsel %vm971_vm3, 0.0, %v1334_v27  ;;  %v7013_v9 = vpop.permute.xlu0 %7012  ;;  %v1643_v33 = vsel %vm1625_vm5, %v1302_v21, %v7678_v60  ;;  %v6841_v21 = vld [vmem:[%s10087_s4 + $0x58] sm:$0xff] }
 0x19e   : > { %v1872_v6 = vunpack.c.l.b16 %v1704_v37  ;;  %v1873_v25 = vunpack.c.h.b16 %v1704_v37  ;;  %v1642_v34 = vsel %vm1625_vm5, %v1378_v17, %v7669_v45  ;;  %v7015_v62 = vunpack.i.h.bf16 %v7013_v9  ;;  %3945 = vmatpush.bf16.msrb.mxu0 %v6841_v21 }
 0x19f   : > { %v7014_v59 = vunpack.i.l.bf16 %v7013_v9 }
 0x1a0   : > { %v1986_v18 = vpack.c.b16 %v1874_v15, %v1872_v6  ;;  %v1987_v50 = vpack.c.b16 %v1875_v10, %v1873_v25  ;;  %v1578_v6 = vsel %vm1427_vm4, 0.0, %v1533_v48  ;;  %v1706_v25 = vpack.c.bf16 %v1501_v28, %v1642_v34  ;;  %v7873_v15 = vld [vmem:[#allocation8] ss:$0 sm:$0xff] }
 0x1a1   : > { %v7871_v51 = vpop.f32.mrf.mxu2  ;;  %v1270_v10 = vrot.slane %v7015_v62, 7  ;;  %v1238_v58 = vrot.slane %v7014_v59, 7  ;;  %v1469_v60 = vrot.slane %v7015_v62, 1  ;;  %v1437_v45 = vrot.slane %v7014_v59, 1  ;;  %v6840_v59 = vld [vmem:[%s10087_s4 + $0x50] sm:$0xff] }
 0x1a2   : > { %2279 = vmatmul.bf16.gmra.mxu1 %v1986_v18  ;;  %v1876_v61 = vunpack.c.l.b16 %v1706_v25  ;;  %v1877_v18 = vunpack.c.h.b16 %v1706_v25  ;;  %3946 = vmatpush.bf16.msrb.mxu0 %v6840_v59 }
 0x1a3   : > { %6224 = vmatmul.msk.bf16.gmra.mxu2 %vm1625_vm5, %v1987_v50  ;;  %v1707_v50 = vpack.c.bf16 %v1578_v6, %v1643_v33  ;;  %v1335_v28 = vsel %vm1293_vm1, %v1270_v10, %v1238_v58  ;;  %v1303_v25 = vsel %vm1293_vm1, %v1238_v58, %v1270_v10  ;;  %v1534_v62 = vsel %vm1492_vm2, %v1469_v60, %v1437_v45  ;;  %v7018_v10 = vpop.permute.xlu1 %7017 }
 0x1a5   : > { %v1878_v27 = vunpack.c.l.b16 %v1707_v50  ;;  %v1879_v48 = vunpack.c.h.b16 %v1707_v50 }
 0x1a7   : > { %v1988_v33 = vpack.c.b16 %v1878_v27, %v1876_v61  ;;  %v1989_v0 = vpack.c.b16 %v1879_v48, %v1877_v18  ;;  %v1502_v61 = vsel %vm1492_vm2, %v1437_v45, %v1469_v60  ;;  %v1580_v27 = vsel %vm1427_vm4, 0.0, %v1534_v62  ;;  %v6746_v45 = vld [vmem:[%s7437_s22 + $0xd0] sm:$0xff] }
 0x1a8   : > { %v1645_v18 = vsel %vm1625_vm5, %v1303_v25, %v7605_v43  ;;  %v7020_v48 = vunpack.i.h.bf16 %v7018_v10  ;;  %6163 = vmatmul.msk.bf16.vlgmr.msra.gmra.mxu3 %vm574_vm0, %v6746_v45  ;;  %v753_v45 = vadd.f32 %v7478_v22, %v7802_v13 }
 0x1aa   : > { %v1271_v25 = vrot.slane %v7020_v48, 7 }
 0x1af   : > { %v2245_v37 = vpop.f32.mrf.mxu1 }
 0x1b0   : > { %v2246_v17 = vadd.f32 %v7873_v15, %v2245_v37  ;;  %v1380_v37 = vsel %vm971_vm3, 0.0, %v1335_v28 }
 0x1b2   : > { %2284 = vmatmul.bf16.gmra.mxu1 %v1988_v33 }
 0x1b3   : > { %6225 = vmatmul.msk.bf16.gmra.mxu2 %vm1625_vm5, %v1989_v0  ;;  %v1644_v0 = vsel %vm1625_vm5, %v1380_v37, %v7603_v42 }
 0x1b4   : > { %v1708_v28 = vpack.c.bf16 %v1502_v61, %v1644_v0  ;;  %v1470_v0 = vrot.slane %v7020_v48, 1 }
 0x1b6   : > { %v2414_v9 = vpop.f32.mrf.mxu2  ;;  %v1880_v59 = vunpack.c.l.b16 %v1708_v28  ;;  %v1881_v42 = vunpack.c.h.b16 %v1708_v28 }
 0x1b7   : > { %v2415_v6 = vadd.f32 %v2414_v9, %v2246_v17  ;;  %v2247_v34 = vpop.f32.mrf.mxu1  ;;  %v7019_v17 = vunpack.i.l.bf16 %v7018_v10 }
 0x1b8   : > { %v2248_v58 = vadd.f32 %v7873_v15, %v2247_v34  ;;  %v6838_v34 = vld [vmem:[%s10087_s4 + $0x40] sm:$0xff] }
 0x1b9   : > { %v2574_v47 = vmax.f32 %v2415_v6, 0.0  ;;  %v1709_v6 = vpack.c.bf16 %v1580_v27, %v1645_v18  ;;  %v1239_v37 = vrot.slane %v7019_v17, 7  ;;  %v751_v27 = vadd.f32 %v7478_v22, %v7792_v44 }
 0x1ba   : > { %v1438_v18 = vrot.slane %v7019_v17, 1 }
 0x1bb   : > { %v2638_v50 = vpack.c.bf16 %v2574_v47, %v2574_v47  ;;  %v6839_v47 = vld [vmem:[%s10087_s4 + $0x48] sm:$0xff]  ;;  %v1882_v43 = vunpack.c.l.b16 %v1709_v6  ;;  %v1883_v38 = vunpack.c.h.b16 %v1709_v6  ;;  %v1304_v44 = vsel %vm1293_vm1, %v1239_v37, %v1271_v25 }
 0x1bc   : > { %3947 = vmatpush.bf16.msrb.mxu0 %v6839_v47  ;;  %v1535_v22 = vsel %vm1492_vm2, %v1470_v0, %v1438_v18  ;;  %v7925_v13 = vmax.f32 %v751_v27, 0.0  ;;  %v1503_v17 = vsel %vm1492_vm2, %v1438_v18, %v1470_v0 }
 0x1bd   : > { %2713 = vst.msk [vmem:[#allocation2 + $0x8] sm:$0xf] %vm2702_vm6, %v2638_v50  ;;  %v3130_v10 = vunpack.c.l.b16 %v2638_v50  ;;  %v1990_v6 = vpack.c.b16 %v1882_v43, %v1880_v59  ;;  %v7927_v43 = vmax.f32 %v753_v45, 0.0  ;;  %v6747_v59 = vld [vmem:[%s7437_s22 + $0xd8] sm:$0xff] }
 0x1be   : > { %v2416_v60 = vpop.f32.mrf.mxu2  ;;  %10190 = vst [vmem:[#allocation41_spill] sm:$0xff] %v7925_v13  ;;  %6164 = vmatmul.msk.bf16.gmra.mxu3 %vm574_vm0, %v6747_v59 }
 0x1bf   : > { %v2417_v21 = vadd.f32 %v2416_v60, %v2248_v58  ;;  %v2250_v9 = vpop.f32.mrf.mxu1  ;;  %v1336_v60 = vsel %vm1293_vm1, %v1271_v25, %v1239_v37  ;;  %10191 = vst [vmem:[#allocation42_spill] sm:$0xff] %v7927_v43  ;;  %v1582_v25 = vsel %vm1427_vm4, 0.0, %v1535_v22  ;;  %v7036_v0 = vpack.i.bf16 %v7927_v43, %v7925_v13 }
 0x1c0   : > { %3948 = vmatpush.bf16.msrb.mxu0 %v6838_v34  ;;  %v2251_v61 = vadd.f32 %v7873_v15, %v2250_v9  ;;  %v1991_v34 = vpack.c.b16 %v1883_v38, %v1881_v42  ;;  %v1382_v48 = vsel %vm971_vm3, 0.0, %v1336_v60  ;;  %v7023_v42 = vpop.permute.xlu2 %7022 }
 0x1c1   : > { %v2575_v33 = vmax.f32 %v2417_v21, 0.0  ;;  %v1646_v37 = vsel %vm1625_vm5, %v1382_v48, %v7634_v4 }
 0x1c2   : > { %2289 = vmatmul.bf16.gmra.mxu1 %v1990_v6  ;;  %v1710_v18 = vpack.c.bf16 %v1503_v17, %v1646_v37 }
 0x1c3   : > { %v2639_v62 = vpack.c.bf16 %v2575_v33, %v2575_v33  ;;  %6226 = vmatmul.msk.bf16.gmra.mxu2 %vm1625_vm5, %v1991_v34 }
 0x1c4   : > { %v1884_v6 = vunpack.c.l.b16 %v1710_v18 }
 0x1c5   : > { %2714 = vst.msk [vmem:[#allocation2 + $0xc] sm:$0xf] %vm2702_vm6, %v2639_v62  ;;  %v3131_v58 = vunpack.c.l.b16 %v2639_v62  ;;  %v1647_v62 = vsel %vm1625_vm5, %v1304_v44, %v7636_v7 }
 0x1c6   : > { %v2419_v47 = vpop.f32.mrf.mxu2  ;;  %v1711_v45 = vpack.c.bf16 %v1582_v25, %v1647_v62 }
 0x1c7   : > { %v2420_v21 = vadd.f32 %v2419_v47, %v2251_v61  ;;  %v2252_v28 = vpop.f32.mrf.mxu1  ;;  %v3194_v50 = vpack.c.b16 %v3131_v58, %v3130_v10  ;;  %v7025_v58 = vunpack.i.h.bf16 %v7023_v42  ;;  %v7024_v61 = vunpack.i.l.bf16 %v7023_v42 }
 0x1c8   : > { %v2253_v9 = vadd.f32 %v7873_v15, %v2252_v28  ;;  %v1886_v34 = vunpack.c.l.b16 %v1711_v45  ;;  %v1887_v44 = vunpack.c.h.b16 %v1711_v45 }
 0x1c9   : > { %v2576_v33 = vmax.f32 %v2420_v21, 0.0  ;;  %3226 = vrot.lane.b32.xlu1 %v3194_v50, %s7303_s20  ;;  %v1272_v21 = vrot.slane %v7025_v58, 7  ;;  %v1240_v28 = vrot.slane %v7024_v61, 7  ;;  %v1471_v25 = vrot.slane %v7025_v58, 1 }
 0x1ca   : > { %v1439_v37 = vrot.slane %v7024_v61, 1 }
 0x1cb   : > { %v2640_v38 = vpack.c.bf16 %v2576_v33, %v2576_v33  ;;  %v1885_v33 = vunpack.c.h.b16 %v1710_v18  ;;  %v1992_v18 = vpack.c.b16 %v1886_v34, %v1884_v6  ;;  %v7028_v34 = vpop.permute.xlu0 %7027 }
 0x1cc   : > { %v1504_v6 = vsel %vm1492_vm2, %v1439_v37, %v1471_v25 }
 0x1cd   : > { %2715 = vst.msk [vmem:[#allocation2 + $0x10] sm:$0xf] %vm2702_vm6, %v2640_v38  ;;  %v3132_v48 = vunpack.c.l.b16 %v2640_v38  ;;  %v1993_v45 = vpack.c.b16 %v1887_v44, %v1885_v33 }
 0x1ce   : > { %v2421_v10 = vpop.f32.mrf.mxu2 }
 0x1cf   : > { %v2422_v27 = vadd.f32 %v2421_v10, %v2253_v9  ;;  %v2255_v47 = vpop.f32.mrf.mxu1  ;;  %v7946_v9 = vld [vmem:[#allocation6] ss:$0 sm:$0xff]  ;;  %v1337_v10 = vsel %vm1293_vm1, %v1272_v21, %v1240_v28 }
 0x1d0   : > { %v2256_v42 = vadd.f32 %v7873_v15, %v2255_v47  ;;  %v756_v17 = vadd.f32 %v7946_v9, %v7815_v3  ;;  %v758_v59 = vadd.f32 %v7946_v9, %v7827_v55  ;;  %v1305_v3 = vsel %vm1293_vm1, %v1240_v28, %v1272_v21 }
 0x1d1   : > { %v2577_v60 = vmax.f32 %v2422_v27, 0.0  ;;  %7037 = vrot.lane.b32.xlu1 %v7036_v0, %s7303_s20  ;;  %v1384_v58 = vsel %vm971_vm3, 0.0, %v1337_v10  ;;  %v1536_v55 = vsel %vm1492_vm2, %v1471_v25, %v1439_v37  ;;  %v7029_v25 = vunpack.i.l.bf16 %v7028_v34 }
 0x1d2   : > { %2294 = vmatmul.bf16.gmra.mxu1 %v1992_v18  ;;  %v7962_v61 = vmax.f32 %v756_v17, 0.0  ;;  %v1584_v33 = vsel %vm1427_vm4, 0.0, %v1536_v55  ;;  %v1648_v44 = vsel %vm1625_vm5, %v1384_v58, %v7682_v11  ;;  %v7030_v17 = vunpack.i.h.bf16 %v7028_v34 }
 0x1d3   : > { %v2641_v50 = vpack.c.bf16 %v2577_v60, %v2577_v60  ;;  %6227 = vmatmul.msk.bf16.gmra.mxu2 %vm1625_vm5, %v1993_v45  ;;  %v7964_v60 = vmax.f32 %v758_v59, 0.0  ;;  %v1712_v10 = vpack.c.bf16 %v1504_v6, %v1648_v44  ;;  %v1241_v18 = vrot.slane %v7029_v25, 7 }
 0x1d4   : > { %10192 = vst [vmem:[#allocation43_spill] sm:$0xff] %v7962_v61  ;;  %v761_v6 = vadd.f32 %v7946_v9, %v7836_v31 }
 0x1d5   : > { %2716 = vst.msk [vmem:[#allocation2 + $0x14] sm:$0xf] %vm2702_vm6, %v2641_v50  ;;  %v3133_v22 = vunpack.c.l.b16 %v2641_v50  ;;  %v7041_v59 = vpack.i.bf16 %v7964_v60, %v7962_v61  ;;  %v1889_v58 = vunpack.c.h.b16 %v1712_v10 }
 0x1d6   : > { %v2424_v62 = vpop.f32.mrf.mxu2  ;;  %10193 = vst [vmem:[#allocation44_spill] sm:$0xff] %v7964_v60 }
 0x1d7   : > { %v2425_v38 = vadd.f32 %v2424_v62, %v2256_v42  ;;  %v2257_v27 = vpop.f32.mrf.mxu1  ;;  %v3195_v0 = vpack.c.b16 %v3133_v22, %v3132_v48  ;;  %v1649_v48 = vsel %vm1625_vm5, %v1305_v3, %v7684_v12  ;;  %v6748_v22 = vld [vmem:[%s7437_s22 + $0xe0] sm:$0xff] }
 0x1d8   : > { %v2258_v28 = vadd.f32 %v7873_v15, %v2257_v27  ;;  %6165 = vmatmul.msk.bf16.gmra.mxu3 %vm574_vm0, %v6748_v22  ;;  %v1440_v22 = vrot.slane %v7029_v25, 1 }
 0x1d9   : > { %v2578_v47 = vmax.f32 %v2425_v38, 0.0  ;;  %3228 = vrot.lane.b32.xlu0 %v3195_v0, %s7303_s20  ;;  %v1713_v38 = vpack.c.bf16 %v1584_v33, %v1649_v48  ;;  %v1273_v0 = vrot.slane %v7030_v17, 7  ;;  %v763_v48 = vadd.f32 %v7946_v9, %v7854_v57 }
 0x1da   : > { %v7998_v57 = vmax.f32 %v761_v6, 0.0 }
 0x1db   : > { %v2642_v50 = vpack.c.bf16 %v2578_v47, %v2578_v47  ;;  %v1888_v47 = vunpack.c.l.b16 %v1712_v10  ;;  %v1890_v3 = vunpack.c.l.b16 %v1713_v38  ;;  %v1891_v55 = vunpack.c.h.b16 %v1713_v38 }
 0x1dc   : > { %v6798_v21 = vld [vmem:[#allocation2 + $0x10] sm:$0xff]  ;;  %v1338_v44 = vsel %vm1293_vm1, %v1273_v0, %v1241_v18  ;;  %10194 = vst [vmem:[#allocation45_spill] sm:$0xff] %v7998_v57 }
 0x1dd   : > { %2717 = vst.msk [vmem:[#allocation2 + $0x18] sm:$0xf] %vm2702_vm6, %v2642_v50  ;;  %6553 = vmatmul.msk.bf16.vlgmr.msrb.gmra.mxu0 %vm1625_vm5, %v6798_v21  ;;  %v3134_v34 = vunpack.c.l.b16 %v2642_v50  ;;  %v1994_v10 = vpack.c.b16 %v1890_v3, %v1888_v47  ;;  %v1995_v38 = vpack.c.b16 %v1891_v55, %v1889_v58  ;;  %v1386_v31 = vsel %vm971_vm3, 0.0, %v1338_v44  ;;  %v7033_v3 = vpop.permute.xlu2 %7032 }
 0x1de   : > { %v2426_v42 = vpop.f32.mrf.mxu2  ;;  %v1650_v55 = vsel %vm1625_vm5, %v1386_v31, %v7615_v53 }
 0x1df   : > { %v2427_v37 = vadd.f32 %v2426_v42, %v2258_v28  ;;  %v2260_v62 = vpop.f32.mrf.mxu1  ;;  %v1472_v42 = vrot.slane %v7030_v17, 1  ;;  %v1306_v17 = vsel %vm1293_vm1, %v1241_v18, %v1273_v0 }
 0x1e0   : > { %v2261_v28 = vadd.f32 %v7873_v15, %v2260_v62  ;;  %v8000_v62 = vmax.f32 %v763_v48, 0.0 }
 0x1e1   : > { %v2579_v27 = vmax.f32 %v2427_v37, 0.0  ;;  %7042 = vrot.lane.b32.xlu0 %v7041_v59, %s7303_s20  ;;  %v1537_v25 = vsel %vm1492_vm2, %v1472_v42, %v1440_v22  ;;  %v1505_v47 = vsel %vm1492_vm2, %v1440_v22, %v1472_v42  ;;  %v7035_v42 = vunpack.i.h.bf16 %v7033_v3 }
 0x1e2   : > { %2299 = vmatmul.bf16.gmra.mxu1 %v1994_v10  ;;  %10195 = vst [vmem:[#allocation46_spill] sm:$0xff] %v8000_v62  ;;  %v1586_v58 = vsel %vm1427_vm4, 0.0, %v1537_v25  ;;  %v7034_v22 = vunpack.i.l.bf16 %v7033_v3  ;;  %v7046_v44 = vpack.i.bf16 %v8000_v62, %v7998_v57  ;;  %v1714_v48 = vpack.c.bf16 %v1505_v47, %v1650_v55 }
 0x1e3   : > { %v2643_v45 = vpack.c.bf16 %v2579_v27, %v2579_v27  ;;  %6228 = vmatmul.msk.bf16.gmra.mxu2 %vm1625_vm5, %v1995_v38  ;;  %v766_v47 = vadd.f32 %v7946_v9, %v7586_v26 }
 0x1e4   : > { %v1242_v10 = vrot.slane %v7034_v22, 7  ;;  %v1893_v31 = vunpack.c.h.b16 %v1714_v48  ;;  %v1441_v55 = vrot.slane %v7034_v22, 1 }
 0x1e5   : > { %2718 = vst.msk [vmem:[#allocation2 + $0x1c] sm:$0xf] %vm2702_vm6, %v2643_v45  ;;  %v3135_v21 = vunpack.c.l.b16 %v2643_v45  ;;  %v8034_v22 = vmax.f32 %v766_v47, 0.0 }
 0x1e6   : > { %v2429_v33 = vpop.f32.mrf.mxu2 }
 0x1e7   : > { %v2430_v37 = vadd.f32 %v2429_v33, %v2261_v28  ;;  %v2262_v59 = vpop.f32.mrf.mxu1  ;;  %v3196_v50 = vpack.c.b16 %v3135_v21, %v3134_v34  ;;  %v1651_v34 = vsel %vm1625_vm5, %v1306_v17, %v7618_v54  ;;  %v6749_v21 = vld [vmem:[%s7437_s22 + $0xe8] sm:$0xff]  ;;  %10196 = vst [vmem:[#allocation47_spill] sm:$0xff] %v8034_v22 }
 0x1e8   : > { %v2263_v18 = vadd.f32 %v7873_v15, %v2262_v59  ;;  %6166 = vmatmul.msk.bf16.gmra.mxu3 %vm574_vm0, %v6749_v21  ;;  %v768_v21 = vadd.f32 %v7946_v9, %v7599_v40 }
 0x1e9   : > { %v2580_v27 = vmax.f32 %v2430_v37, 0.0  ;;  %3230 = vrot.lane.b32.xlu2 %v3196_v50, %s7303_s20  ;;  %v1715_v37 = vpack.c.bf16 %v1586_v58, %v1651_v34  ;;  %v1274_v50 = vrot.slane %v7035_v42, 7  ;;  %v1473_v58 = vrot.slane %v7035_v42, 1 }
 0x1eb   : > { %v2644_v45 = vpack.c.bf16 %v2580_v27, %v2580_v27  ;;  %v1892_v27 = vunpack.c.l.b16 %v1714_v48  ;;  %v1894_v17 = vunpack.c.l.b16 %v1715_v37  ;;  %v1895_v25 = vunpack.c.h.b16 %v1715_v37 }
 0x1ec   : > { %v6799_v0 = vld [vmem:[#allocation2 + $0x18] sm:$0xff]  ;;  %v1307_v26 = vsel %vm1293_vm1, %v1242_v10, %v1274_v50  ;;  %v1538_v40 = vsel %vm1492_vm2, %v1473_v58, %v1441_v55 }
 0x1ed   : > { %2719 = vst.msk [vmem:[#allocation2 + $0x20] sm:$0xf] %vm2702_vm6, %v2644_v45  ;;  %6554 = vmatmul.msk.bf16.gmra.mxu0 %vm1625_vm5, %v6799_v0  ;;  %v3136_v3 = vunpack.c.l.b16 %v2644_v45  ;;  %v1996_v48 = vpack.c.b16 %v1894_v17, %v1892_v27  ;;  %v1997_v37 = vpack.c.b16 %v1895_v25, %v1893_v31  ;;  %v1506_v27 = vsel %vm1492_vm2, %v1441_v55, %v1473_v58  ;;  %v6750_v58 = vld [vmem:[%s7437_s22 + $0xf0] sm:$0xff] }
 0x1ee   : > { %v2431_v28 = vpop.f32.mrf.mxu2  ;;  %v1653_v25 = vsel %vm1625_vm5, %v1307_v26, %v7703_v36 }
 0x1ef   : > { %v2432_v6 = vadd.f32 %v2431_v28, %v2263_v18  ;;  %v2265_v33 = vpop.f32.mrf.mxu1  ;;  %v1339_v28 = vsel %vm1293_vm1, %v1274_v50, %v1242_v10  ;;  %v1588_v10 = vsel %vm1427_vm4, 0.0, %v1538_v40  ;;  %v771_v40 = vadd.f32 %v7946_v9, %v7613_v52  ;;  %v6836_v52 = vld [vmem:[%s10087_s4 + $0x30] sm:$0xff] }
 0x1f0   : > { %v2266_v18 = vadd.f32 %v7873_v15, %v2265_v33  ;;  %v1388_v42 = vsel %vm971_vm3, 0.0, %v1339_v28  ;;  %v8036_v33 = vmax.f32 %v768_v21, 0.0 }
 0x1f1   : > { %v2581_v59 = vmax.f32 %v2432_v6, 0.0  ;;  %7047 = vrot.lane.b32.xlu2 %v7046_v44, %s7303_s20  ;;  %v1652_v31 = vsel %vm1625_vm5, %v1388_v42, %v7694_v32 }
 0x1f2   : > { %2304 = vmatmul.bf16.gmra.mxu1 %v1996_v48  ;;  %10197 = vst [vmem:[#allocation48_spill] sm:$0xff] %v8036_v33  ;;  %v7051_v47 = vpack.i.bf16 %v8036_v33, %v8034_v22  ;;  %v1716_v55 = vpack.c.bf16 %v1506_v27, %v1652_v31  ;;  %v773_v27 = vadd.f32 %v7946_v9, %v7643_v5  ;;  %v8068_v5 = vmax.f32 %v771_v40, 0.0 }
 0x1f3   : > { %v2645_v38 = vpack.c.bf16 %v2581_v59, %v2581_v59  ;;  %6229 = vmatmul.msk.bf16.gmra.mxu2 %vm1625_vm5, %v1997_v37  ;;  %v778_v40 = vadd.f32 %v7946_v9, %v7692_v20  ;;  %v6833_v20 = vld [vmem:[%s10087_s4 + $0x18] sm:$0xff] }
 0x1f4   : > { %10198 = vst [vmem:[#allocation49_spill] sm:$0xff] %v8068_v5 }
 0x1f5   : > { %2720 = vst.msk [vmem:[#allocation2 + $0x24] sm:$0xf] %vm2702_vm6, %v2645_v38  ;;  %v3137_v0 = vunpack.c.l.b16 %v2645_v38 }
 0x1f6   : > { %v2434_v34 = vpop.f32.mrf.mxu2 }
 0x1f7   : > { %v2435_v6 = vadd.f32 %v2434_v34, %v2266_v18  ;;  %v2267_v44 = vpop.f32.mrf.mxu1  ;;  %v3197_v45 = vpack.c.b16 %v3137_v0, %v3136_v3  ;;  %v1717_v34 = vpack.c.bf16 %v1588_v10, %v1653_v25  ;;  %v6837_v10 = vld [vmem:[%s10087_s4 + $0x38] sm:$0xff] }
 0x1f8   : > { %v2268_v50 = vadd.f32 %v7873_v15, %v2267_v44  ;;  %6167 = vmatmul.msk.bf16.gmra.mxu3 %vm574_vm0, %v6750_v58 }
 0x1f9   : > { %v2582_v59 = vmax.f32 %v2435_v6, 0.0  ;;  %3232 = vrot.lane.b32.xlu1 %v3197_v45, %s7303_s20  ;;  %v1896_v6 = vunpack.c.l.b16 %v1716_v55  ;;  %v1898_v44 = vunpack.c.l.b16 %v1717_v34  ;;  %v1897_v45 = vunpack.c.h.b16 %v1716_v55  ;;  %3772 = vmatpush.bf16.msrb.mxu3 %v6837_v10 }
 0x1fa   : > { %v1899_v48 = vunpack.c.h.b16 %v1717_v34 }
 0x1fb   : > { %v2646_v38 = vpack.c.bf16 %v2582_v59, %v2582_v59  ;;  %v1998_v31 = vpack.c.b16 %v1898_v44, %v1896_v6 }
 0x1fc   : > { %v6800_v17 = vld [vmem:[#allocation2 + $0x20] sm:$0xff] }
 0x1fd   : > { %2721 = vst.msk [vmem:[#allocation2 + $0x28] sm:$0xf] %vm2702_vm6, %v2646_v38  ;;  %6555 = vmatmul.msk.bf16.gmra.mxu0 %vm1625_vm5, %v6800_v17  ;;  %v3138_v37 = vunpack.c.l.b16 %v2646_v38  ;;  %v1999_v38 = vpack.c.b16 %v1899_v48, %v1897_v45  ;;  %3773 = vmatpush.bf16.msrb.mxu3 %v6836_v52  ;;  %v6835_v45 = vld [vmem:[%s10087_s4 + $0x28] sm:$0xff]  ;;  %v6751_v48 = vld [vmem:[%s7437_s22 + $0xf8] sm:$0xff] }
 0x1fe   : > { %v2436_v3 = vpop.f32.mrf.mxu2 }
 0x1ff   : > { %v2437_v0 = vadd.f32 %v2436_v3, %v2268_v50  ;;  %v2270_v18 = vpop.f32.mrf.mxu1 }
 0x200   : > { %v2271_v26 = vadd.f32 %v7873_v15, %v2270_v18 }
 0x201   : > { %v2583_v21 = vmax.f32 %v2437_v0, 0.0  ;;  %7052 = vrot.lane.b32.xlu1 %v7051_v47, %s7303_s20  ;;  %v8070_v0 = vmax.f32 %v773_v27, 0.0  ;;  %3774 = vmatpush.bf16.msrb.mxu3 %v6835_v45  ;;  %v6830_v45 = vld [vmem:[%s10087_s4] sm:$0xff] }
 0x202   : > { %2309 = vmatmul.bf16.gmra.mxu1 %v1998_v31 }
 0x203   : > { %v2647_v28 = vpack.c.bf16 %v2583_v21, %v2583_v21  ;;  %6230 = vmatmul.msk.bf16.gmra.mxu2 %vm1625_vm5, %v1999_v38  ;;  %10199 = vst [vmem:[#allocation50_spill] sm:$0xff] %v8070_v0  ;;  %v7056_v21 = vpack.i.bf16 %v8070_v0, %v8068_v5  ;;  %v8095_v38 = vmax.f32 %v778_v40, 0.0 }
 0x205   : > { %2722 = vst.msk [vmem:[#allocation2 + $0x2c] sm:$0xf] %vm2702_vm6, %v2647_v28  ;;  %v3139_v59 = vunpack.c.l.b16 %v2647_v28 }
 0x206   : > { %v2439_v42 = vpop.f32.mrf.mxu2  ;;  %10201 = vst [vmem:[#allocation52_spill] sm:$0xff] %v8095_v38 }
 0x207   : > { %v2440_v17 = vadd.f32 %v2439_v42, %v2271_v26  ;;  %v3198_v50 = vpack.c.b16 %v3139_v59, %v3138_v37  ;;  %v2272_v25 = vpop.f32.mrf.mxu1  ;;  %v6834_v26 = vld [vmem:[%s10087_s4 + $0x20] sm:$0xff]  ;;  %v776_v42 = vadd.f32 %v7946_v9, %v7672_v49 }
 0x208   : > { %v2273_v58 = vadd.f32 %v7873_v15, %v2272_v25  ;;  %6168 = vmatmul.msk.bf16.gmra.mxu3 %vm574_vm0, %v6751_v48 }
 0x209   : > { %v2584_v3 = vmax.f32 %v2440_v17, 0.0  ;;  %3234 = vrot.lane.b32.xlu0 %v3198_v50, %s7303_s20  ;;  %3775 = vmatpush.bf16.msrb.mxu3 %v6834_v26  ;;  %v8093_v31 = vmax.f32 %v776_v42, 0.0  ;;  %v781_v26 = vadd.f32 %v7946_v9, %v7717_v23  ;;  %v783_v42 = vadd.f32 %v7946_v9, %v7735_v46 }
 0x20b   : > { %v2648_v18 = vpack.c.bf16 %v2584_v3, %v2584_v3  ;;  %10200 = vst [vmem:[#allocation51_spill] sm:$0xff] %v8093_v31  ;;  %v8131_v23 = vmax.f32 %v783_v42, 0.0 }
 0x20c   : > { %v6801_v47 = vld [vmem:[#allocation2 + $0x28] sm:$0xff] }
 0x20d   : > { %2723 = vst.msk [vmem:[#allocation2 + $0x30] sm:$0xf] %vm2702_vm6, %v2648_v18  ;;  %6556 = vmatmul.msk.bf16.gmra.mxu0 %vm1625_vm5, %v6801_v47  ;;  %v3140_v37 = vunpack.c.l.b16 %v2648_v18  ;;  %3776 = vmatpush.bf16.msrb.mxu3 %v6833_v20  ;;  %v6832_v18 = vld [vmem:[%s10087_s4 + $0x10] sm:$0xff] }
 0x20e   : > { %v2441_v55 = vpop.f32.mrf.mxu2  ;;  %10203 = vst [vmem:[#allocation54_spill] sm:$0xff] %v8131_v23 }
 0x20f   : > { %v2442_v34 = vadd.f32 %v2441_v55, %v2273_v58  ;;  %v2275_v6 = vpop.f32.mrf.mxu1  ;;  %v7061_v58 = vpack.i.bf16 %v8095_v38, %v8093_v31 }
 0x210   : > { %v2276_v27 = vadd.f32 %v7873_v15, %v2275_v6 }
 0x211   : > { %v2585_v28 = vmax.f32 %v2442_v34, 0.0  ;;  %7057 = vrot.lane.b32.xlu0 %v7056_v21, %s7303_s20  ;;  %3777 = vmatpush.bf16.msrb.mxu3 %v6832_v18 }
 0x213   : > { %v2649_v44 = vpack.c.bf16 %v2585_v28, %v2585_v28  ;;  %v6831_v28 = vld [vmem:[%s10087_s4 + $0x8] sm:$0xff] }
 0x215   : > { %2724 = vst.msk [vmem:[#allocation2 + $0x34] sm:$0xf] %vm2702_vm6, %v2649_v44  ;;  %v3141_v59 = vunpack.c.l.b16 %v2649_v44  ;;  %v7304_v44 = vmov 0   ;;  %3778 = vmatpush.bf16.msrb.mxu3 %v6831_v28 }
 0x216   : > { %v2444_v50 = vpop.f32.mrf.mxu2  ;;  %2703 = vst.msk [vmem:[#allocation2] sm:$0xf] %vm2702_vm6, %v7304_v44 }
 0x217   : > { %v3199_v17 = vpack.c.b16 %v3141_v59, %v3140_v37  ;;  %v2445_v10 = vadd.f32 %v2444_v50, %v2276_v27  ;;  %v2277_v3 = vpop.f32.mrf.mxu1  ;;  %2704 = vst.msk [vmem:[#allocation2 + $0x4] sm:$0xf] %vm2702_vm6, %v7304_v44 }
 0x218   : > { %v2278_v47 = vadd.f32 %v7873_v15, %v2277_v3  ;;  %2705 = vst.msk [vmem:[#allocation2 + $0x90] sm:$0xf] %vm2702_vm6, %v7304_v44 }
 0x219   : > { %3236 = vrot.lane.b32.xlu2 %v3199_v17, %s7303_s20  ;;  %v2586_v25 = vmax.f32 %v2445_v10, 0.0  ;;  %2706 = vst.msk [vmem:[#allocation2 + $0x94] sm:$0xf] %vm2702_vm6, %v7304_v44  ;;  %3779 = vmatpush.bf16.msrb.mxu3 %v6830_v45  ;;  %v8129_v17 = vmax.f32 %v781_v26, 0.0 }
 0x21a   : > { %2708 = vst.msk [vmem:[#allocation2 + $0x88] sm:$0xf] %vm2702_vm6, %v7304_v44 }
 0x21b   : > { %v2650_v52 = vpack.c.bf16 %v2586_v25, %v2586_v25  ;;  %2709 = vst.msk [vmem:[#allocation2 + $0x8c] sm:$0xf] %vm2702_vm6, %v7304_v44 }
 0x21c   : > { %v6802_v49 = vld [vmem:[#allocation2 + $0x30] sm:$0xff]  ;;  %2710 = vst.msk [vmem:[#allocation2 + $0x118] sm:$0xf] %vm2702_vm6, %v7304_v44 }
 0x21d   : > { %6557 = vmatmul.msk.bf16.gmra.mxu0 %vm1625_vm5, %v6802_v49  ;;  %2725 = vst.msk [vmem:[#allocation2 + $0x38] sm:$0xf] %vm2702_vm6, %v2650_v52  ;;  %v3142_v48 = vunpack.c.l.b16 %v2650_v52  ;;  %v7066_v49 = vpack.i.bf16 %v8131_v23, %v8129_v17 }
 0x21e   : > { %v2446_v55 = vpop.f32.mrf.mxu2  ;;  %10202 = vst [vmem:[#allocation53_spill] sm:$0xff] %v8129_v17 }
 0x21f   : > { %v2447_v34 = vadd.f32 %v2446_v55, %v2278_v47  ;;  %v2280_v59 = vpop.f32.mrf.mxu1  ;;  %2711 = vst.msk [vmem:[#allocation2 + $0x11c] sm:$0xf] %vm2702_vm6, %v7304_v44 }
 0x220   : > { %v2281_v27 = vadd.f32 %v7873_v15, %v2280_v59  ;;  %v788_v59 = vadd.f32 %v7946_v9, %v7758_v24 }
 0x221   : > { %7062 = vrot.lane.b32.xlu2 %v7061_v58, %s7303_s20  ;;  %v2587_v21 = vmax.f32 %v2447_v34, 0.0  ;;  %v6766_v34 = vld [vmem:[#allocation2] sm:$0xff] }
 0x223   : > { %v2651_v6 = vpack.c.bf16 %v2587_v21, %v2587_v21 }
 0x225   : > { %2726 = vst.msk [vmem:[#allocation2 + $0x3c] sm:$0xf] %vm2702_vm6, %v2651_v6  ;;  %v3143_v37 = vunpack.c.l.b16 %v2651_v6 }
 0x226   : > { %v2449_v50 = vpop.f32.mrf.mxu2 }
 0x227   : > { %v3200_v40 = vpack.c.b16 %v3143_v37, %v3142_v48  ;;  %v2450_v46 = vadd.f32 %v2449_v50, %v2281_v27  ;;  %v2282_v25 = vpop.f32.mrf.mxu1  ;;  %v786_v37 = vadd.f32 %v7946_v9, %v7740_v14 }
 0x228   : > { %v2283_v52 = vadd.f32 %v7873_v15, %v2282_v25 }
 0x229   : > { %3238 = vrot.lane.b32.xlu1 %v3200_v40, %s7303_s20  ;;  %v2588_v3 = vmax.f32 %v2450_v46, 0.0  ;;  %v8148_v46 = vmax.f32 %v786_v37, 0.0 }
 0x22b   : > { %v2652_v20 = vpack.c.bf16 %v2588_v3, %v2588_v3  ;;  %10204 = vst [vmem:[#allocation55_spill] sm:$0xff] %v8148_v46 }
 0x22c   : > { %v6803_v10 = vld [vmem:[#allocation2 + $0x38] sm:$0xff] }
 0x22d   : > { %6558 = vmatmul.msk.bf16.gmra.mxu0 %vm1625_vm5, %v6803_v10  ;;  %2727 = vst.msk [vmem:[#allocation2 + $0x40] sm:$0xf] %vm2702_vm6, %v2652_v20  ;;  %v3144_v6 = vunpack.c.l.b16 %v2652_v20  ;;  %v8150_v10 = vmax.f32 %v788_v59, 0.0 }
 0x22e   : > { %v2451_v18 = vpop.f32.mrf.mxu2 }
 0x22f   : > { %v2452_v47 = vadd.f32 %v2451_v18, %v2283_v52  ;;  %v2285_v58 = vpop.f32.mrf.mxu1  ;;  %10205 = vst [vmem:[#allocation56_spill] sm:$0xff] %v8150_v10  ;;  %v7071_v18 = vpack.i.bf16 %v8150_v10, %v8148_v46 }
 0x230   : > { %v2286_v45 = vadd.f32 %v7873_v15, %v2285_v58 }
 0x231   : > { %7067 = vrot.lane.b32.xlu1 %v7066_v49, %s7303_s20  ;;  %v2589_v55 = vmax.f32 %v2452_v47, 0.0 }
 0x233   : > { %v2653_v21 = vpack.c.bf16 %v2589_v55, %v2589_v55 }
 0x235   : > { %2728 = vst.msk [vmem:[#allocation2 + $0x44] sm:$0xf] %vm2702_vm6, %v2653_v21  ;;  %v3145_v44 = vunpack.c.l.b16 %v2653_v21 }
 0x236   : > { %v2454_v26 = vpop.f32.mrf.mxu2 }
 0x237   : > { %v2455_v42 = vadd.f32 %v2454_v26, %v2286_v45  ;;  %v3201_v40 = vpack.c.b16 %v3145_v44, %v3144_v6  ;;  %v2287_v27 = vpop.f32.mrf.mxu1 }
 0x238   : > { %v2288_v14 = vadd.f32 %v7873_v15, %v2287_v27  ;;  %v6767_v27 = vld [vmem:[#allocation2 + $0x8] sm:$0xff] }
 0x239   : > { %v2590_v50 = vmax.f32 %v2455_v42, 0.0  ;;  %3240 = vrot.lane.b32.xlu0 %v3201_v40, %s7303_s20 }
 0x23b   : > { %v3227_v28 = vpop.permute.xlu1 %3226  ;;  %v2654_v25 = vpack.c.bf16 %v2590_v50, %v2590_v50 }
 0x23c   : > { %v3452_v48 = vsel %vm1625_vm5, %v6766_v34, %v3227_v28  ;;  %v6804_v3 = vld [vmem:[#allocation2 + $0x40] sm:$0xff] }
 0x23d   : > { %3780 = vmatmul.bf16.vlgmr.msrb.gmra.mxu3 %v3452_v48  ;;  %2729 = vst.msk [vmem:[#allocation2 + $0x48] sm:$0xf] %vm2702_vm6, %v2654_v25  ;;  %6559 = vmatmul.msk.bf16.gmra.mxu0 %vm1625_vm5, %v6804_v3 }
 0x23e   : > { %v2456_v52 = vpop.f32.mrf.mxu2 }
 0x23f   : > { %v2457_v47 = vadd.f32 %v2456_v52, %v2288_v14  ;;  %v2290_v21 = vpop.f32.mrf.mxu1  ;;  %v793_v14 = vadd.f32 %v7946_v9, %v7787_v19 }
 0x241   : > { %v2591_v44 = vmax.f32 %v2457_v47, 0.0  ;;  %7072 = vrot.lane.b32.xlu0 %v7071_v18, %s7303_s20  ;;  %v3146_v18 = vunpack.c.l.b16 %v2654_v25 }
 0x243   : > { %v7038_v49 = vpop.permute.xlu1 %7037  ;;  %v8157_v28 = vpop.permute.xlu2 %3230  ;;  %v2655_v42 = vpack.c.bf16 %v2591_v44, %v2591_v44 }
 0x244   : > { %v7040_v24 = vunpack.i.h.bf16 %v7038_v49  ;;  %v7039_v20 = vunpack.i.l.bf16 %v7038_v49  ;;  %v791_v49 = vadd.f32 %v7946_v9, %v7777_v56 }
 0x245   : > { %2730 = vst.msk [vmem:[#allocation2 + $0x4c] sm:$0xf] %vm2702_vm6, %v2655_v42  ;;  %v3147_v47 = vunpack.c.l.b16 %v2655_v42 }
 0x246   : > { %v1275_v58 = vrot.slane %v7040_v24, 7  ;;  %v1474_v55 = vrot.slane %v7040_v24, 1  ;;  %v1243_v34 = vrot.slane %v7039_v20, 7  ;;  %v1442_v6 = vrot.slane %v7039_v20, 1 }
 0x247   : > { %v8186_v42 = vmax.f32 %v791_v49, 0.0 }
 0x248   : > { %v1308_v45 = vsel %vm1293_vm1, %v1243_v34, %v1275_v58  ;;  %v1340_v48 = vsel %vm1293_vm1, %v1275_v58, %v1243_v34  ;;  %v1539_v59 = vsel %vm1492_vm2, %v1474_v55, %v1442_v6  ;;  %v1507_v40 = vsel %vm1492_vm2, %v1442_v6, %v1474_v55  ;;  %v8183_v34 = vpop.f32.mrf.mxu3  ;;  %v2459_v6 = vpop.f32.mrf.mxu2 }
 0x249   : > { %v1390_v37 = vsel %vm971_vm3, 0.0, %v1340_v48  ;;  %v1655_v26 = vsel %vm1625_vm5, %v1308_v45, %v7927_v43  ;;  %v1590_v50 = vsel %vm1427_vm4, 0.0, %v1539_v59  ;;  %v2291_v58 = vadd.f32 %v7873_v15, %v2290_v21  ;;  %v2292_v59 = vpop.f32.mrf.mxu1  ;;  %10206 = vst [vmem:[#allocation57_spill] sm:$0xff] %v8186_v42 }
 0x24a   : > { %v1654_v3 = vsel %vm1625_vm5, %v1390_v37, %v7925_v13  ;;  %v1719_v52 = vpack.c.bf16 %v1590_v50, %v1655_v26  ;;  %v3202_v37 = vpack.c.b16 %v3147_v47, %v3146_v18  ;;  %v8188_v21 = vmax.f32 %v793_v14, 0.0 }
 0x24b   : > { %v3229_v24 = vpop.permute.xlu0 %3228  ;;  %v1718_v20 = vpack.c.bf16 %v1507_v40, %v1654_v3  ;;  %v2460_v19 = vadd.f32 %v2459_v6, %v2291_v58 }
 0x24c   : > { %v3456_v55 = vsel %vm1625_vm5, %v6767_v27, %v3229_v24  ;;  %v1902_v56 = vunpack.c.l.b16 %v1719_v52  ;;  %v1903_v48 = vunpack.c.h.b16 %v1719_v52  ;;  %3242 = vrot.lane.b32.xlu2 %v3202_v37, %s7303_s20  ;;  %10207 = vst [vmem:[#allocation58_spill] sm:$0xff] %v8188_v21  ;;  %v7048_v27 = vpop.permute.xlu2 %7047  ;;  %v6805_v3 = vld [vmem:[#allocation2 + $0x48] sm:$0xff]  ;;  %v7076_v14 = vpack.i.bf16 %v8188_v21, %v8186_v42 }
 0x24d   : > { %3785 = vmatmul.bf16.gmra.mxu3 %v3456_v55  ;;  %v1900_v44 = vunpack.c.l.b16 %v1718_v20  ;;  %v1901_v45 = vunpack.c.h.b16 %v1718_v20  ;;  %v2592_v40 = vmax.f32 %v2460_v19, 0.0  ;;  %v2293_v20 = vadd.f32 %v7873_v15, %v2292_v59  ;;  %6560 = vmatmul.msk.bf16.gmra.mxu0 %vm1625_vm5, %v6805_v3 }
 0x24e   : > { %v7050_v52 = vunpack.i.h.bf16 %v7048_v27  ;;  %v7049_v49 = vunpack.i.l.bf16 %v7048_v27 }
 0x24f   : > { %v2000_v26 = vpack.c.b16 %v1902_v56, %v1900_v44  ;;  %v2001_v25 = vpack.c.b16 %v1903_v48, %v1901_v45  ;;  %v2656_v50 = vpack.c.bf16 %v2592_v40, %v2592_v40  ;;  %v796_v48 = vadd.f32 %v7946_v9, %v7800_v1  ;;  %v6768_v1 = vld [vmem:[#allocation2 + $0x10] sm:$0xff] }
 0x250   : > { %v8193_v58 = vpop.f32.mrf.mxu3  ;;  %v2461_v55 = vpop.f32.mrf.mxu2  ;;  %v1277_v59 = vrot.slane %v7050_v52, 7  ;;  %v1245_v27 = vrot.slane %v7049_v49, 7  ;;  %v1444_v13 = vrot.slane %v7049_v49, 1 }
 0x251   : > { %2314 = vmatmul.bf16.gmra.mxu1 %v2000_v26  ;;  %6231 = vmatmul.msk.bf16.gmra.mxu2 %vm1625_vm5, %v2001_v25  ;;  %2731 = vst.msk [vmem:[#allocation2 + $0x50] sm:$0xf] %vm2702_vm6, %v2656_v50  ;;  %v2462_v6 = vadd.f32 %v2461_v55, %v2293_v20  ;;  %v2295_v19 = vpop.f32.mrf.mxu1  ;;  %v3148_v43 = vunpack.c.l.b16 %v2656_v50 }
 0x252   : > { %v1342_v50 = vsel %vm1293_vm1, %v1277_v59, %v1245_v27 }
 0x253   : > { %v7043_v24 = vpop.permute.xlu0 %7042  ;;  %v2593_v26 = vmax.f32 %v2462_v6, 0.0  ;;  %v1476_v6 = vrot.slane %v7050_v52, 1 }
 0x254   : > { %v7045_v18 = vunpack.i.h.bf16 %v7043_v24  ;;  %v7044_v47 = vunpack.i.l.bf16 %v7043_v24  ;;  %7077 = vrot.lane.b32.xlu2 %v7076_v14, %s7303_s20 }
 0x256   : > { %v1276_v44 = vrot.slane %v7045_v18, 7  ;;  %v1475_v56 = vrot.slane %v7045_v18, 1  ;;  %v1244_v45 = vrot.slane %v7044_v47, 7  ;;  %v1443_v37 = vrot.slane %v7044_v47, 1 }
 0x257   : > { %v2657_v18 = vpack.c.bf16 %v2593_v26, %v2593_v26 }
 0x258   : > { %v1309_v25 = vsel %vm1293_vm1, %v1244_v45, %v1276_v44  ;;  %v1341_v40 = vsel %vm1293_vm1, %v1276_v44, %v1244_v45  ;;  %v1540_v24 = vsel %vm1492_vm2, %v1475_v56, %v1443_v37  ;;  %v1508_v47 = vsel %vm1492_vm2, %v1443_v37, %v1475_v56  ;;  %v8221_v56 = vpop.f32.mrf.mxu3  ;;  %v2464_v37 = vpop.f32.mrf.mxu2 }
 0x259   : > { %v1392_v3 = vsel %vm971_vm3, 0.0, %v1341_v40  ;;  %v1657_v20 = vsel %vm1625_vm5, %v1309_v25, %v7964_v60  ;;  %v1592_v55 = vsel %vm1427_vm4, 0.0, %v1540_v24  ;;  %v3460_v44 = vsel %vm1625_vm5, %v6768_v1, %v8157_v28  ;;  %2732 = vst.msk [vmem:[#allocation2 + $0x54] sm:$0xf] %vm2702_vm6, %v2657_v18 }
 0x25a   : > { %v1656_v14 = vsel %vm1625_vm5, %v1392_v3, %v7962_v61  ;;  %v1721_v40 = vpack.c.bf16 %v1592_v55, %v1657_v20  ;;  %v3149_v26 = vunpack.c.l.b16 %v2657_v18  ;;  %v2296_v25 = vadd.f32 %v7873_v15, %v2295_v19  ;;  %v2297_v20 = vpop.f32.mrf.mxu1 }
 0x25b   : > { %v1720_v45 = vpack.c.bf16 %v1508_v47, %v1656_v14  ;;  %v798_v28 = vadd.f32 %v7946_v9, %v7805_v35  ;;  %v1310_v19 = vsel %vm1293_vm1, %v1245_v27, %v1277_v59  ;;  %v1394_v55 = vsel %vm971_vm3, 0.0, %v1342_v50 }
 0x25c   : > { %v1906_v60 = vunpack.c.l.b16 %v1721_v40  ;;  %v1907_v52 = vunpack.c.h.b16 %v1721_v40  ;;  %v2465_v49 = vadd.f32 %v2464_v37, %v2296_v25  ;;  %v3203_v1 = vpack.c.b16 %v3149_v26, %v3148_v43 }
 0x25d   : > { %3790 = vmatmul.bf16.gmra.mxu3 %v3460_v44  ;;  %v1904_v24 = vunpack.c.l.b16 %v1720_v45  ;;  %v1905_v3 = vunpack.c.h.b16 %v1720_v45  ;;  %v1541_v35 = vsel %vm1492_vm2, %v1476_v6, %v1444_v13  ;;  %v8234_v14 = vmax.f32 %v796_v48, 0.0  ;;  %v8240_v45 = vld [vmem:[#allocation8] ss:$0 sm:$0xff] }
 0x25e   : > { %v2594_v15 = vmax.f32 %v2465_v49, 0.0  ;;  %3244 = vrot.lane.b32.xlu1 %v3203_v1, %s7303_s20  ;;  %v8236_v44 = vmax.f32 %v798_v28, 0.0  ;;  %v2298_v59 = vadd.f32 %v8240_v45, %v2297_v20  ;;  %v1594_v27 = vsel %vm1427_vm4, 0.0, %v1541_v35  ;;  %v6769_v20 = vld [vmem:[#allocation2 + $0x18] sm:$0xff] }
 0x25f   : > { %v2002_v18 = vpack.c.b16 %v1906_v60, %v1904_v24  ;;  %v2003_v47 = vpack.c.b16 %v1907_v52, %v1905_v3  ;;  %10208 = vst [vmem:[#allocation59_spill] sm:$0xff] %v8234_v14  ;;  %v1658_v40 = vsel %vm1625_vm5, %v1394_v55, %v7998_v57  ;;  %v1659_v48 = vsel %vm1625_vm5, %v1310_v19, %v8000_v62 }
 0x260   : > { %10209 = vst [vmem:[#allocation60_spill] sm:$0xff] %v8236_v44  ;;  %v2658_v43 = vpack.c.bf16 %v2594_v15, %v2594_v15  ;;  %v6806_v60 = vld [vmem:[#allocation2 + $0x50] sm:$0xff]  ;;  %v2466_v26 = vpop.f32.mrf.mxu2  ;;  %v1509_v25 = vsel %vm1492_vm2, %v1444_v13, %v1476_v6  ;;  %v7081_v24 = vpack.i.bf16 %v8236_v44, %v8234_v14  ;;  %v8254_v3 = vpop.f32.mrf.mxu3  ;;  %v1723_v50 = vpack.c.bf16 %v1594_v27, %v1659_v48 }
 0x261   : > { %2319 = vmatmul.bf16.gmra.mxu1 %v2002_v18  ;;  %6232 = vmatmul.msk.bf16.gmra.mxu2 %vm1625_vm5, %v2003_v47  ;;  %v2467_v37 = vadd.f32 %v2466_v26, %v2298_v59  ;;  %v1722_v28 = vpack.c.bf16 %v1509_v25, %v1658_v40  ;;  %v801_v59 = vadd.f32 %v7946_v9, %v7825_v41 }
 0x262   : > { %2733 = vst.msk [vmem:[#allocation2 + $0x58] sm:$0xf] %vm2702_vm6, %v2658_v43  ;;  %6561 = vmatmul.msk.bf16.gmra.mxu0 %vm1625_vm5, %v6806_v60  ;;  %v2300_v52 = vpop.f32.mrf.mxu1  ;;  %v1910_v15 = vunpack.c.l.b16 %v1723_v50  ;;  %v1911_v55 = vunpack.c.h.b16 %v1723_v50  ;;  %v3150_v13 = vunpack.c.l.b16 %v2658_v43  ;;  %v803_v27 = vadd.f32 %v7946_v9, %v7832_v16 }
 0x263   : > { %v2595_v49 = vmax.f32 %v2467_v37, 0.0  ;;  %v1908_v47 = vunpack.c.l.b16 %v1722_v28  ;;  %v1909_v19 = vunpack.c.h.b16 %v1722_v28  ;;  %v2301_v35 = vadd.f32 %v8240_v45, %v2300_v52 }
 0x264   : > { %v8267_v52 = vmax.f32 %v801_v59, 0.0  ;;  %v8269_v50 = vmax.f32 %v803_v27, 0.0 }
 0x265   : > { %v2659_v1 = vpack.c.bf16 %v2595_v49, %v2595_v49  ;;  %v2004_v37 = vpack.c.b16 %v1910_v15, %v1908_v47 }
 0x266   : > { %7082 = vrot.lane.b32.xlu1 %v7081_v24, %s7303_s20  ;;  %v2005_v24 = vpack.c.b16 %v1911_v55, %v1909_v19  ;;  %10210 = vst [vmem:[#allocation61_spill] sm:$0xff] %v8267_v52  ;;  %v7086_v15 = vpack.i.bf16 %v8269_v50, %v8267_v52 }
 0x267   : > { %2734 = vst.msk [vmem:[#allocation2 + $0x5c] sm:$0xf] %vm2702_vm6, %v2659_v1  ;;  %v3151_v6 = vunpack.c.l.b16 %v2659_v1 }
 0x268   : > { %v2469_v40 = vpop.f32.mrf.mxu2  ;;  %v8265_v28 = vpop.f32.mrf.mxu3  ;;  %10211 = vst [vmem:[#allocation62_spill] sm:$0xff] %v8269_v50 }
 0x269   : > { %v2470_v48 = vadd.f32 %v2469_v40, %v2301_v35  ;;  %v3204_v26 = vpack.c.b16 %v3151_v6, %v3150_v13 }
 0x26a   : > { %v2302_v25 = vpop.f32.mrf.mxu1 }
 0x26b   : > { %v3233_v18 = vpop.permute.xlu1 %3232  ;;  %v2596_v43 = vmax.f32 %v2470_v48, 0.0  ;;  %3246 = vrot.lane.b32.xlu0 %v3204_v26, %s7303_s20  ;;  %v2303_v1 = vadd.f32 %v8240_v45, %v2302_v25 }
 0x26c   : > { %v3464_v60 = vsel %vm1625_vm5, %v6769_v20, %v3233_v18 }
 0x26d   : > { %3795 = vmatmul.bf16.gmra.mxu3 %v3464_v60  ;;  %v2660_v41 = vpack.c.bf16 %v2596_v43, %v2596_v43 }
 0x26e   : > { %v6807_v16 = vld [vmem:[#allocation2 + $0x58] sm:$0xff] }
 0x26f   : > { %2735 = vst.msk [vmem:[#allocation2 + $0x60] sm:$0xf] %vm2702_vm6, %v2660_v41 }
 0x270   : > { %v2471_v47 = vpop.f32.mrf.mxu2 }
 0x271   : > { %2324 = vmatmul.bf16.gmra.mxu1 %v2004_v37  ;;  %6233 = vmatmul.msk.bf16.gmra.mxu2 %vm1625_vm5, %v2005_v24  ;;  %v2472_v19 = vadd.f32 %v2471_v47, %v2303_v1  ;;  %v808_v47 = vadd.f32 %v7946_v9, %v7871_v51 }
 0x272   : > { %6562 = vmatmul.msk.bf16.gmra.mxu0 %vm1625_vm5, %v6807_v16  ;;  %v2305_v35 = vpop.f32.mrf.mxu1  ;;  %v6770_v16 = vld [vmem:[#allocation2 + $0x20] sm:$0xff] }
 0x273   : > { %v7053_v49 = vpop.permute.xlu1 %7052  ;;  %v8277_v60 = vpop.permute.xlu2 %3236  ;;  %v2597_v27 = vmax.f32 %v2472_v19, 0.0  ;;  %7087 = vrot.lane.b32.xlu0 %v7086_v15, %s7303_s20 }
 0x274   : > { %v7055_v20 = vunpack.i.h.bf16 %v7053_v49  ;;  %v7054_v18 = vunpack.i.l.bf16 %v7053_v49 }
 0x275   : > { %v2661_v43 = vpack.c.bf16 %v2597_v27, %v2597_v27 }
 0x276   : > { %v1278_v55 = vrot.slane %v7055_v20, 7  ;;  %v1477_v13 = vrot.slane %v7055_v20, 1  ;;  %v1246_v6 = vrot.slane %v7054_v18, 7  ;;  %v1445_v59 = vrot.slane %v7054_v18, 1  ;;  %v8296_v20 = vpop.f32.mrf.mxu3 }
 0x277   : > { %v806_v18 = vadd.f32 %v7946_v9, %v7850_v8  ;;  %2736 = vst.msk [vmem:[#allocation2 + $0x64] sm:$0xf] %vm2702_vm6, %v2661_v43 }
 0x278   : > { %v1311_v40 = vsel %vm1293_vm1, %v1246_v6, %v1278_v55  ;;  %v1343_v48 = vsel %vm1293_vm1, %v1278_v55, %v1246_v6  ;;  %v1542_v25 = vsel %vm1492_vm2, %v1477_v13, %v1445_v59  ;;  %v1510_v24 = vsel %vm1492_vm2, %v1445_v59, %v1477_v13 }
 0x279   : > { %v1396_v26 = vsel %vm971_vm3, 0.0, %v1343_v48  ;;  %v1661_v37 = vsel %vm1625_vm5, %v1311_v40, %v8036_v33  ;;  %v1596_v49 = vsel %vm1427_vm4, 0.0, %v1542_v25  ;;  %v3152_v6 = vunpack.c.l.b16 %v2660_v41  ;;  %v2474_v40 = vpop.f32.mrf.mxu2 }
 0x27a   : > { %v1660_v1 = vsel %vm1625_vm5, %v1396_v26, %v8034_v22  ;;  %v1725_v55 = vpack.c.bf16 %v1596_v49, %v1661_v37  ;;  %v3153_v13 = vunpack.c.l.b16 %v2661_v43  ;;  %v2306_v59 = vadd.f32 %v8240_v45, %v2305_v35  ;;  %v2307_v51 = vpop.f32.mrf.mxu1 }
 0x27b   : > { %v3235_v15 = vpop.permute.xlu0 %3234  ;;  %v1724_v19 = vpack.c.bf16 %v1510_v24, %v1660_v1  ;;  %v8306_v41 = vmax.f32 %v806_v18, 0.0  ;;  %v8308_v43 = vmax.f32 %v808_v47, 0.0  ;;  %v7063_v35 = vpop.permute.xlu2 %7062 }
 0x27c   : > { %v3468_v27 = vsel %vm1625_vm5, %v6770_v16, %v3235_v15  ;;  %v1914_v26 = vunpack.c.l.b16 %v1725_v55  ;;  %v1915_v8 = vunpack.c.h.b16 %v1725_v55  ;;  %v2475_v33 = vadd.f32 %v2474_v40, %v2306_v59 }
 0x27d   : > { %3800 = vmatmul.bf16.gmra.mxu3 %v3468_v27  ;;  %v1912_v48 = vunpack.c.l.b16 %v1724_v19  ;;  %v1913_v25 = vunpack.c.h.b16 %v1724_v19  ;;  %v3205_v22 = vpack.c.b16 %v3153_v13, %v3152_v6  ;;  %10212 = vst [vmem:[#allocation63_spill] sm:$0xff] %v8306_v41  ;;  %v2308_v15 = vadd.f32 %v8240_v45, %v2307_v51 }
 0x27e   : > { %v2598_v37 = vmax.f32 %v2475_v33, 0.0  ;;  %10213 = vst [vmem:[#allocation64_spill] sm:$0xff] %v8308_v43  ;;  %v6808_v49 = vld [vmem:[#allocation2 + $0x60] sm:$0xff]  ;;  %v7065_v19 = vunpack.i.h.bf16 %v7063_v35  ;;  %v8313_v6 = vpop.f32.mrf.mxu3  ;;  %v7091_v47 = vpack.i.bf16 %v8308_v43, %v8306_v41 }
 0x27f   : > { %v2006_v9 = vpack.c.b16 %v1914_v26, %v1912_v48  ;;  %v2007_v24 = vpack.c.b16 %v1915_v8, %v1913_v25  ;;  %3248 = vrot.lane.b32.xlu2 %v3205_v22, %s7303_s20  ;;  %v7064_v22 = vunpack.i.l.bf16 %v7063_v35  ;;  %v8318_v48 = vld [vmem:[#allocation6] ss:$0 sm:$0xff] }
 0x280   : > { %v2662_v16 = vpack.c.bf16 %v2598_v37, %v2598_v37  ;;  %v811_v26 = vadd.f32 %v8318_v48, %v8183_v34  ;;  %v813_v25 = vadd.f32 %v8318_v48, %v8193_v58  ;;  %v6771_v58 = vld [vmem:[#allocation2 + $0x28] sm:$0xff] }
 0x281   : > { %2329 = vmatmul.bf16.gmra.mxu1 %v2006_v9  ;;  %6234 = vmatmul.msk.bf16.gmra.mxu2 %vm1625_vm5, %v2007_v24  ;;  %v2476_v18 = vpop.f32.mrf.mxu2  ;;  %v1280_v9 = vrot.slane %v7065_v19, 7  ;;  %v1447_v57 = vrot.slane %v7064_v22, 1 }
 0x282   : > { %2737 = vst.msk [vmem:[#allocation2 + $0x68] sm:$0xf] %vm2702_vm6, %v2662_v16  ;;  %6563 = vmatmul.msk.bf16.gmra.mxu0 %vm1625_vm5, %v6808_v49  ;;  %v2477_v13 = vadd.f32 %v2476_v18, %v2308_v15  ;;  %v2310_v8 = vpop.f32.mrf.mxu1  ;;  %v1248_v49 = vrot.slane %v7064_v22, 7  ;;  %v3154_v62 = vunpack.c.l.b16 %v2662_v16  ;;  %v8349_v16 = vmax.f32 %v811_v26, 0.0 }
 0x283   : > { %v7058_v1 = vpop.permute.xlu0 %7057  ;;  %v8351_v22 = vmax.f32 %v813_v25, 0.0 }
 0x284   : > { %v7060_v55 = vunpack.i.h.bf16 %v7058_v1  ;;  %v7059_v33 = vunpack.i.l.bf16 %v7058_v1  ;;  %v2599_v24 = vmax.f32 %v2477_v13, 0.0  ;;  %v1479_v13 = vrot.slane %v7065_v19, 1  ;;  %10214 = vst [vmem:[#allocation65_spill] sm:$0xff] %v8349_v16 }
 0x285   : > { %v1345_v19 = vsel %vm1293_vm1, %v1280_v9, %v1248_v49  ;;  %10215 = vst [vmem:[#allocation66_spill] sm:$0xff] %v8351_v22 }
 0x286   : > { %v1279_v59 = vrot.slane %v7060_v55, 7  ;;  %v1478_v27 = vrot.slane %v7060_v55, 1  ;;  %v1247_v40 = vrot.slane %v7059_v33, 7  ;;  %v1446_v51 = vrot.slane %v7059_v33, 1 }
 0x287   : > { %7092 = vrot.lane.b32.xlu2 %v7091_v47, %s7303_s20  ;;  %v2663_v55 = vpack.c.bf16 %v2599_v24, %v2599_v24 }
 0x288   : > { %v1312_v37 = vsel %vm1293_vm1, %v1247_v40, %v1279_v59  ;;  %v1344_v35 = vsel %vm1293_vm1, %v1279_v59, %v1247_v40  ;;  %v1543_v34 = vsel %vm1492_vm2, %v1478_v27, %v1446_v51  ;;  %v1511_v33 = vsel %vm1492_vm2, %v1446_v51, %v1478_v27 }
 0x289   : > { %v1398_v1 = vsel %vm971_vm3, 0.0, %v1344_v35  ;;  %v1663_v15 = vsel %vm1625_vm5, %v1312_v37, %v8070_v0  ;;  %v1598_v18 = vsel %vm1427_vm4, 0.0, %v1543_v34  ;;  %v3472_v59 = vsel %vm1625_vm5, %v6771_v58, %v8277_v60  ;;  %2738 = vst.msk [vmem:[#allocation2 + $0x6c] sm:$0xf] %vm2702_vm6, %v2663_v55  ;;  %v2479_v27 = vpop.f32.mrf.mxu2  ;;  %v8347_v58 = vpop.f32.mrf.mxu3 }
 0x28a   : > { %v1662_v47 = vsel %vm1625_vm5, %v1398_v1, %v8068_v5  ;;  %v1727_v35 = vpack.c.bf16 %v1598_v18, %v1663_v15  ;;  %v3155_v24 = vunpack.c.l.b16 %v2663_v55  ;;  %v2311_v37 = vadd.f32 %v8240_v45, %v2310_v8 }
 0x28b   : > { %v1726_v40 = vpack.c.bf16 %v1511_v33, %v1662_v47  ;;  %v1313_v33 = vsel %vm1293_vm1, %v1248_v49, %v1280_v9  ;;  %v1400_v18 = vsel %vm971_vm3, 0.0, %v1345_v19  ;;  %v2312_v47 = vpop.f32.mrf.mxu1 }
 0x28c   : > { %v1918_v34 = vunpack.c.l.b16 %v1727_v35  ;;  %v1919_v61 = vunpack.c.h.b16 %v1727_v35  ;;  %v2480_v1 = vadd.f32 %v2479_v27, %v2311_v37  ;;  %v3206_v60 = vpack.c.b16 %v3155_v24, %v3154_v62 }
 0x28d   : > { %3805 = vmatmul.bf16.gmra.mxu3 %v3472_v59  ;;  %v1916_v51 = vunpack.c.l.b16 %v1726_v40  ;;  %v1917_v0 = vunpack.c.h.b16 %v1726_v40  ;;  %v1544_v62 = vsel %vm1492_vm2, %v1479_v13, %v1447_v57  ;;  %v2313_v9 = vadd.f32 %v8240_v45, %v2312_v47 }
 0x28e   : > { %v2600_v8 = vmax.f32 %v2480_v1, 0.0  ;;  %3250 = vrot.lane.b32.xlu1 %v3206_v60, %s7303_s20  ;;  %v1600_v49 = vsel %vm1427_vm4, 0.0, %v1544_v62  ;;  %v1664_v59 = vsel %vm1625_vm5, %v1400_v18, %v8093_v31  ;;  %v1665_v40 = vsel %vm1625_vm5, %v1313_v33, %v8095_v38 }
 0x28f   : > { %v2008_v15 = vpack.c.b16 %v1918_v34, %v1916_v51  ;;  %v2009_v55 = vpack.c.b16 %v1919_v61, %v1917_v0  ;;  %v7096_v61 = vpack.i.bf16 %v8351_v22, %v8349_v16  ;;  %v8363_v0 = vpop.f32.mrf.mxu0  ;;  %v1512_v24 = vsel %vm1492_vm2, %v1447_v57, %v1479_v13  ;;  %v6772_v13 = vld [vmem:[#allocation2 + $0x30] sm:$0xff] }
 0x290   : > { %v2664_v26 = vpack.c.bf16 %v2600_v8, %v2600_v8  ;;  %v6809_v25 = vld [vmem:[#allocation2 + $0x68] sm:$0xff]  ;;  %v1728_v27 = vpack.c.bf16 %v1512_v24, %v1664_v59  ;;  %v1729_v51 = vpack.c.bf16 %v1600_v49, %v1665_v40  ;;  %v816_v60 = vadd.f32 %v8318_v48, %v8221_v56  ;;  %v6873_v40 = vld [vmem:[%s10089_s6 + $0xf4] sm:$0xf0] }
 0x291   : > { %2334 = vmatmul.bf16.gmra.mxu1 %v2008_v15  ;;  %6235 = vmatmul.msk.bf16.gmra.mxu2 %vm1625_vm5, %v2009_v55  ;;  %v2481_v35 = vpop.f32.mrf.mxu2  ;;  %v8377_v19 = vpop.f32.mrf.mxu3  ;;  %v818_v15 = vadd.f32 %v8318_v48, %v8254_v3  ;;  %v6707_v59 = vld [vmem:[%s10089_s6 + $0xe8] sm:$0xf] }
 0x292   : > { %2739 = vst.msk [vmem:[#allocation2 + $0x70] sm:$0xf] %vm2702_vm6, %v2664_v26  ;;  %6564 = vmatmul.msk.bf16.gmra.mxu0 %vm1625_vm5, %v6809_v25  ;;  %v2482_v37 = vadd.f32 %v2481_v35, %v2313_v9  ;;  %v1920_v55 = vunpack.c.l.b16 %v1728_v27  ;;  %v1922_v8 = vunpack.c.l.b16 %v1729_v51  ;;  %v3156_v33 = vunpack.c.l.b16 %v2664_v26 }
 0x293   : > { %v1921_v18 = vunpack.c.h.b16 %v1728_v27  ;;  %v1923_v62 = vunpack.c.h.b16 %v1729_v51  ;;  %v8387_v49 = vmax.f32 %v816_v60, 0.0  ;;  %v8389_v3 = vmax.f32 %v818_v15, 0.0 }
 0x294   : > { %v2601_v34 = vmax.f32 %v2482_v37, 0.0  ;;  %v2010_v56 = vpack.c.b16 %v1922_v8, %v1920_v55  ;;  %v6708_v35 = vor.u32 %v6873_v40, %v6707_v59 }
 0x295   : > { %10216 = vst [vmem:[#allocation67_spill] sm:$0xff] %v8387_v49  ;;  %v2011_v26 = vpack.c.b16 %v1923_v62, %v1921_v18  ;;  %v7101_v27 = vpack.i.bf16 %v8389_v3, %v8387_v49 }
 0x296   : > { %7097 = vrot.lane.b32.xlu1 %v7096_v61, %s7303_s20  ;;  %v2665_v1 = vpack.c.bf16 %v2601_v34, %v2601_v34  ;;  %10217 = vst [vmem:[#allocation68_spill] sm:$0xff] %v8389_v3  ;;  %5280 = vmatpush.bf16.msra.mxu3 %v6708_v35 }
 0x297   : > { %v8384_v25 = vpop.f32.mrf.mxu0 }
 0x298   : > { %2740 = vst.msk [vmem:[#allocation2 + $0x74] sm:$0xf] %vm2702_vm6, %v2665_v1  ;;  %v3157_v57 = vunpack.c.l.b16 %v2665_v1 }
 0x299   : > { %v8399_v24 = vpop.f32.mrf.mxu3 }
 0x29a   : > { %v3207_v61 = vpack.c.b16 %v3157_v57, %v3156_v33 }
 0x29b   : > { %v3239_v47 = vpop.permute.xlu1 %3238 }
 0x29c   : > { %v3476_v9 = vsel %vm1625_vm5, %v6772_v13, %v3239_v47  ;;  %3252 = vrot.lane.b32.xlu0 %v3207_v61, %s7303_s20 }
 0x29d   : > { %3810 = vmatmul.bf16.gmra.mxu3 %v3476_v9 }
 0x29f   : > { %v6810_v37 = vld [vmem:[#allocation2 + $0x70] sm:$0xff]  ;;  %v8404_v60 = vpop.f32.mrf.mxu0 }
 0x2a1   : > { %2339 = vmatmul.bf16.gmra.mxu1 %v2010_v56  ;;  %6236 = vmatmul.msk.bf16.gmra.mxu2 %vm1625_vm5, %v2011_v26  ;;  %v8421_v56 = vpop.f32.mrf.mxu3 }
 0x2a2   : > { %6565 = vmatmul.msk.bf16.gmra.mxu0 %vm1625_vm5, %v6810_v37 }
 0x2a3   : > { %v7068_v51 = vpop.permute.xlu1 %7067 }
 0x2a4   : > { %v7070_v34 = vunpack.i.h.bf16 %v7068_v51  ;;  %v7069_v1 = vunpack.i.l.bf16 %v7068_v51  ;;  %7102 = vrot.lane.b32.xlu0 %v7101_v27, %s7303_s20 }
 0x2a6   : > { %v1281_v15 = vrot.slane %v7070_v34, 7  ;;  %v1480_v55 = vrot.slane %v7070_v34, 1  ;;  %v1249_v8 = vrot.slane %v7069_v1, 7  ;;  %v1448_v33 = vrot.slane %v7069_v1, 1  ;;  %v3243_v35 = vpop.permute.xlu2 %3242  ;;  %v6773_v1 = vld [vmem:[#allocation2 + $0x38] sm:$0xff] }
 0x2a8   : > { %v1314_v57 = vsel %vm1293_vm1, %v1249_v8, %v1281_v15  ;;  %v1346_v13 = vsel %vm1293_vm1, %v1281_v15, %v1249_v8  ;;  %v1545_v18 = vsel %vm1492_vm2, %v1480_v55, %v1448_v33  ;;  %v1513_v9 = vsel %vm1492_vm2, %v1448_v33, %v1480_v55  ;;  %v6872_v55 = vld [vmem:[%s10089_s6 + $0xec] sm:$0xf0]  ;;  %v8431_v33 = vpop.f32.mrf.mxu0 }
 0x2a9   : > { %v1402_v62 = vsel %vm971_vm3, 0.0, %v1346_v13  ;;  %v1602_v47 = vsel %vm1427_vm4, 0.0, %v1545_v18  ;;  %v1667_v61 = vsel %vm1625_vm5, %v1314_v57, %v8131_v23  ;;  %v6699_v57 = vld [vmem:[%s10089_s6 + $0xe0] sm:$0xf] }
 0x2aa   : > { %v1666_v26 = vsel %vm1625_vm5, %v1402_v62, %v8129_v17  ;;  %v1731_v59 = vpack.c.bf16 %v1602_v47, %v1667_v61  ;;  %v6700_v18 = vor.u32 %v6872_v55, %v6699_v57  ;;  %v6870_v47 = vld [vmem:[%s10089_s6 + $0xe4] sm:$0xf]  ;;  %v6701_v61 = vld [vmem:[%s10089_s6 + $0xf0] sm:$0xf0] }
 0x2ab   : > { %v1730_v40 = vpack.c.bf16 %v1513_v9, %v1666_v26  ;;  %v3241_v13 = vpop.permute.xlu0 %3240  ;;  %v8441_v9 = vpop.f32.mrf.mxu3  ;;  %v6704_v26 = vor.u32 %v6870_v47, %v6701_v61  ;;  %v6774_v17 = vld [vmem:[#allocation2 + $0x40] sm:$0xff] }
 0x2ac   : > { %v1926_v37 = vunpack.c.l.b16 %v1731_v59  ;;  %v1927_v27 = vunpack.c.h.b16 %v1731_v59  ;;  %v3480_v62 = vsel %vm1625_vm5, %v6773_v1, %v3241_v13  ;;  %4942 = vmatpush.bf16.msra.mxu2 %v6700_v18  ;;  %v8445_v13 = vld [vmem:[#allocation8 + $0x1] ss:$0 sm:$0xff] }
 0x2ad   : > { %v1924_v51 = vunpack.c.l.b16 %v1730_v40  ;;  %v1925_v34 = vunpack.c.h.b16 %v1730_v40  ;;  %3815 = vmatmul.bf16.gmra.mxu3 %v3480_v62  ;;  %5111 = vmatpush.bf16.msra.mxu1 %v6704_v26 }
 0x2ae   : > { %v7078_v59 = vpop.permute.xlu2 %7077 }
 0x2af   : > { %v2012_v15 = vpack.c.b16 %v1926_v37, %v1924_v51  ;;  %v2013_v8 = vpack.c.b16 %v1927_v27, %v1925_v34  ;;  %v7080_v37 = vunpack.i.h.bf16 %v7078_v59  ;;  %v7079_v1 = vunpack.i.l.bf16 %v7078_v59 }
 0x2b0   : > { %v8443_v34 = vpop.f32.mrf.mxu0 }
 0x2b1   : > { %2344 = vmatmul.bf16.gmra.mxu1 %v2012_v15  ;;  %6237 = vmatmul.msk.bf16.gmra.mxu2 %vm1625_vm5, %v2013_v8  ;;  %v1283_v18 = vrot.slane %v7080_v37, 7  ;;  %v1251_v26 = vrot.slane %v7079_v1, 7  ;;  %v1482_v32 = vrot.slane %v7080_v37, 1 }
 0x2b3   : > { %v7073_v40 = vpop.permute.xlu0 %7072 }
 0x2b4   : > { %v7075_v27 = vunpack.i.h.bf16 %v7073_v40  ;;  %v7074_v51 = vunpack.i.l.bf16 %v7073_v40 }
 0x2b6   : > { %v1282_v15 = vrot.slane %v7075_v27, 7  ;;  %v1481_v8 = vrot.slane %v7075_v27, 1  ;;  %v1250_v57 = vrot.slane %v7074_v51, 7  ;;  %v1449_v55 = vrot.slane %v7074_v51, 1 }
 0x2b8   : > { %v1315_v62 = vsel %vm1293_vm1, %v1250_v57, %v1282_v15  ;;  %v1347_v47 = vsel %vm1293_vm1, %v1282_v15, %v1250_v57  ;;  %v1546_v61 = vsel %vm1492_vm2, %v1481_v8, %v1449_v55  ;;  %v1514_v23 = vsel %vm1492_vm2, %v1449_v55, %v1481_v8 }
 0x2b9   : > { %v1404_v59 = vsel %vm971_vm3, 0.0, %v1347_v47  ;;  %v1604_v27 = vsel %vm1427_vm4, 0.0, %v1546_v61  ;;  %v1669_v51 = vsel %vm1625_vm5, %v1315_v62, %v8150_v10  ;;  %v3484_v47 = vsel %vm1625_vm5, %v6774_v17, %v3243_v35 }
 0x2ba   : > { %v1668_v57 = vsel %vm1625_vm5, %v1404_v59, %v8148_v46  ;;  %v1733_v38 = vpack.c.bf16 %v1604_v27, %v1669_v51  ;;  %v1450_v61 = vrot.slane %v7079_v1, 1  ;;  %v1348_v8 = vsel %vm1293_vm1, %v1283_v18, %v1251_v26 }
 0x2bb   : > { %v1732_v31 = vpack.c.bf16 %v1514_v23, %v1668_v57  ;;  %v1316_v23 = vsel %vm1293_vm1, %v1251_v26, %v1283_v18 }
 0x2bc   : > { %v1930_v5 = vunpack.c.l.b16 %v1733_v38  ;;  %v1931_v36 = vunpack.c.h.b16 %v1733_v38  ;;  %v1406_v38 = vsel %vm971_vm3, 0.0, %v1348_v8  ;;  %v1547_v17 = vsel %vm1492_vm2, %v1482_v32, %v1450_v61 }
 0x2bd   : > { %3820 = vmatmul.bf16.gmra.mxu3 %v3484_v47  ;;  %v1928_v54 = vunpack.c.l.b16 %v1732_v31  ;;  %v1929_v62 = vunpack.c.h.b16 %v1732_v31  ;;  %v1670_v1 = vsel %vm1625_vm5, %v1406_v38, %v8186_v42  ;;  %v1671_v18 = vsel %vm1625_vm5, %v1316_v23, %v8188_v21  ;;  %v6775_v38 = vld [vmem:[#allocation2 + $0x48] sm:$0xff] }
 0x2be   : > { %v1515_v26 = vsel %vm1492_vm2, %v1450_v61, %v1482_v32 }
 0x2bf   : > { %v2014_v10 = vpack.c.b16 %v1930_v5, %v1928_v54  ;;  %v2015_v59 = vpack.c.b16 %v1931_v36, %v1929_v62  ;;  %v6709_v54 = vld [vmem:[%s10089_s6 + $0xf8] sm:$0xf0]  ;;  %v1734_v57 = vpack.c.bf16 %v1515_v26, %v1670_v1 }
 0x2c0   : > { %v3781_v40 = vpop.f32.mrf.mxu3 }
 0x2c1   : > { %v3782_v15 = vadd.f32 %v8445_v13, %v3781_v40  ;;  %v8468_v40 = vpop.f32.mrf.mxu0  ;;  %2349 = vmatmul.bf16.gmra.mxu1 %v2014_v10  ;;  %6238 = vmatmul.msk.bf16.gmra.mxu2 %vm1625_vm5, %v2015_v59  ;;  %v1606_v10 = vsel %vm1427_vm4, 0.0, %v1547_v17 }
 0x2c2   : > { %v1735_v47 = vpack.c.bf16 %v1606_v10, %v1671_v18 }
 0x2c3   : > { %v3951_v55 = vadd.f32 %v8363_v0, %v3782_v15  ;;  %v6871_v0 = vld [vmem:[%s10089_s6 + $0xec] sm:$0xf] }
 0x2c4   : > { %v8484_v35 = vor.u32 %v6871_v0, %v6709_v54  ;;  %v1934_v23 = vunpack.c.l.b16 %v1735_v47  ;;  %v1933_v0 = vunpack.c.h.b16 %v1734_v57  ;;  %v1935_v54 = vunpack.c.h.b16 %v1735_v47 }
 0x2c5   : > { %v4110_v36 = vmax.f32 %v3951_v55, 0.0 }
 0x2c6   : > { %10218 = vst [vmem:[#allocation69_spill] sm:$0xff] %v8484_v35  ;;  %5449 = vmatpush.bf16.msra.mxu0 %v8484_v35  ;;  %v2017_v10 = vpack.c.b16 %v1935_v54, %v1933_v0 }
 0x2c7   : > { %v4174_v27 = vpack.c.bf16 %v4110_v36, %v4110_v36 }
 0x2c8   : > { %v3783_v31 = vpop.f32.mrf.mxu3 }
 0x2c9   : > { %v3784_v5 = vadd.f32 %v8445_v13, %v3783_v31  ;;  %v8496_v62 = vpop.f32.mrf.mxu0  ;;  %v4462_v55 = vunpack.c.l.b16 %v4174_v27  ;;  %v1932_v31 = vunpack.c.l.b16 %v1734_v57 }
 0x2cb   : > { %v3953_v37 = vadd.f32 %v8384_v25, %v3784_v5 }
 0x2cd   : > { %v4111_v51 = vmax.f32 %v3953_v37, 0.0  ;;  %v2016_v37 = vpack.c.b16 %v1934_v23, %v1932_v31 }
 0x2ce   : > { %v2315_v15 = vpop.f32.mrf.mxu1 }
 0x2cf   : > { %v4175_v25 = vpack.c.bf16 %v4111_v51, %v4111_v51  ;;  %v2316_v61 = vadd.f32 %v8240_v45, %v2315_v15 }
 0x2d0   : > { %v3786_v8 = vpop.f32.mrf.mxu3  ;;  %v3245_v17 = vpop.permute.xlu1 %3244 }
 0x2d1   : > { %v4463_v59 = vunpack.c.l.b16 %v4175_v25  ;;  %v3488_v5 = vsel %vm1625_vm5, %v6775_v38, %v3245_v17  ;;  %2354 = vmatmul.bf16.gmra.mxu1 %v2016_v37  ;;  %6239 = vmatmul.msk.bf16.gmra.mxu2 %vm1625_vm5, %v2017_v10  ;;  %v8504_v57 = vpop.f32.mrf.mxu0  ;;  %v3787_v47 = vadd.f32 %v8445_v13, %v3786_v8 }
 0x2d2   : > { %3825 = vmatmul.bf16.gmra.mxu3 %v3488_v5 }
 0x2d3   : > { %v8499_v32 = vpack.c.b16 %v4463_v59, %v4462_v55 }
 0x2d4   : > { %v2484_v36 = vpop.f32.mrf.mxu2 }
 0x2d5   : > { %v2485_v1 = vadd.f32 %v2484_v36, %v2316_v61  ;;  %v3956_v61 = vadd.f32 %v8404_v60, %v3787_v47 }
 0x2d6   : > { %v2317_v18 = vpop.f32.mrf.mxu1 }
 0x2d7   : > { %v2602_v26 = vmax.f32 %v2485_v1, 0.0  ;;  %v2318_v17 = vadd.f32 %v8240_v45, %v2317_v18 }
 0x2d8   : > { %v3788_v27 = vpop.f32.mrf.mxu3  ;;  %v7083_v25 = vpop.permute.xlu1 %7082 }
 0x2d9   : > { %v3789_v51 = vadd.f32 %v8445_v13, %v3788_v27  ;;  %v2666_v55 = vpack.c.bf16 %v2602_v26, %v2602_v26  ;;  %v7085_v59 = vunpack.i.h.bf16 %v7083_v25  ;;  %v7084_v15 = vunpack.i.l.bf16 %v7083_v25  ;;  %v8511_v13 = vpop.permute.xlu2 %3248 }
 0x2db   : > { %v3958_v38 = vadd.f32 %v8431_v33, %v3789_v51  ;;  %2741 = vst.msk [vmem:[#allocation2 + $0x78] sm:$0xf] %vm2702_vm6, %v2666_v55  ;;  %v1284_v31 = vrot.slane %v7085_v59, 7  ;;  %v1483_v23 = vrot.slane %v7085_v59, 1  ;;  %v1252_v0 = vrot.slane %v7084_v15, 7  ;;  %v6776_v51 = vld [vmem:[#allocation2 + $0x50] sm:$0xff] }
 0x2dc   : > { %v1451_v54 = vrot.slane %v7084_v15, 1  ;;  %v2486_v5 = vpop.f32.mrf.mxu2  ;;  %v4112_v15 = vmax.f32 %v3956_v61, 0.0 }
 0x2dd   : > { %v2487_v36 = vadd.f32 %v2486_v5, %v2318_v17  ;;  %v1317_v8 = vsel %vm1293_vm1, %v1252_v0, %v1284_v31  ;;  %v1349_v33 = vsel %vm1293_vm1, %v1284_v31, %v1252_v0  ;;  %v4113_v1 = vmax.f32 %v3958_v38, 0.0  ;;  %v3247_v38 = vpop.permute.xlu0 %3246 }
 0x2de   : > { %v2320_v37 = vpop.f32.mrf.mxu1  ;;  %v1548_v10 = vsel %vm1492_vm2, %v1483_v23, %v1451_v54  ;;  %v1408_v18 = vsel %vm971_vm3, 0.0, %v1349_v33  ;;  %v1516_v60 = vsel %vm1492_vm2, %v1451_v54, %v1483_v23  ;;  %v1673_v59 = vsel %vm1625_vm5, %v1317_v8, %v8236_v44  ;;  %v8532_v33 = vpop.f32.mrf.mxu0 }
 0x2df   : > { %v2603_v26 = vmax.f32 %v2487_v36, 0.0  ;;  %v1608_v47 = vsel %vm1427_vm4, 0.0, %v1548_v10  ;;  %v1672_v25 = vsel %vm1625_vm5, %v1408_v18, %v8234_v14  ;;  %v4177_v5 = vpack.c.bf16 %v4113_v1, %v4113_v1  ;;  %v6691_v1 = vld [vmem:[%s10089_s6 + $0xc8] sm:$0xf] }
 0x2e0   : > { %v8521_v27 = vpop.f32.mrf.mxu3  ;;  %v1736_v31 = vpack.c.bf16 %v1516_v60, %v1672_v25  ;;  %v1737_v0 = vpack.c.bf16 %v1608_v47, %v1673_v59  ;;  %v3492_v36 = vsel %vm1625_vm5, %v6776_v51, %v3247_v38  ;;  %v2321_v23 = vadd.f32 %v8240_v45, %v2320_v37  ;;  %v6869_v51 = vld [vmem:[%s10089_s6 + $0xd4] sm:$0xf0] }
 0x2e1   : > { %v2667_v17 = vpack.c.bf16 %v2603_v26, %v2603_v26  ;;  %v4176_v61 = vpack.c.bf16 %v4112_v15, %v4112_v15  ;;  %v821_v37 = vadd.f32 %v8318_v48, %v8265_v28  ;;  %v823_v25 = vadd.f32 %v8318_v48, %v8296_v20 }
 0x2e2   : > { %3830 = vmatmul.bf16.gmra.mxu3 %v3492_v36  ;;  %v1936_v54 = vunpack.c.l.b16 %v1736_v31  ;;  %v1938_v10 = vunpack.c.l.b16 %v1737_v0  ;;  %v1937_v18 = vunpack.c.h.b16 %v1736_v31  ;;  %v1939_v26 = vunpack.c.h.b16 %v1737_v0  ;;  %v7093_v0 = vpop.permute.xlu2 %7092 }
 0x2e3   : > { %2742 = vst.msk [vmem:[#allocation2 + $0x7c] sm:$0xf] %vm2702_vm6, %v2667_v17  ;;  %v3159_v14 = vunpack.c.l.b16 %v2667_v17  ;;  %v3158_v59 = vunpack.c.l.b16 %v2666_v55  ;;  %v4465_v15 = vunpack.c.l.b16 %v4177_v5  ;;  %v8551_v28 = vmax.f32 %v821_v37, 0.0 }
 0x2e4   : > { %v2489_v8 = vpop.f32.mrf.mxu2  ;;  %v2018_v44 = vpack.c.b16 %v1938_v10, %v1936_v54  ;;  %v2019_v38 = vpack.c.b16 %v1939_v26, %v1937_v18  ;;  %v4464_v54 = vunpack.c.l.b16 %v4176_v61  ;;  %v8553_v21 = vmax.f32 %v823_v25, 0.0 }
 0x2e5   : > { %v2490_v60 = vadd.f32 %v2489_v8, %v2321_v23  ;;  %v3208_v36 = vpack.c.b16 %v3159_v14, %v3158_v59  ;;  %v6692_v23 = vor.u32 %v6869_v51, %v6691_v1  ;;  %v7088_v10 = vpop.permute.xlu0 %7087  ;;  %10219 = vst [vmem:[#allocation70_spill] sm:$0xff] %v8551_v28  ;;  %v7095_v5 = vunpack.i.h.bf16 %v7093_v0 }
 0x2e6   : > { %v2322_v47 = vpop.f32.mrf.mxu1  ;;  %2359 = vmatmul.bf16.gmra.mxu1 %v2018_v44  ;;  %6240 = vmatmul.msk.bf16.gmra.mxu2 %vm1625_vm5, %v2019_v38  ;;  %10220 = vst [vmem:[#allocation71_spill] sm:$0xff] %v8553_v21  ;;  %v7090_v20 = vunpack.i.h.bf16 %v7088_v10  ;;  %v7089_v55 = vunpack.i.l.bf16 %v7088_v10  ;;  %v7094_v18 = vunpack.i.l.bf16 %v7093_v0  ;;  %v8559_v61 = vpack.c.b16 %v4465_v15, %v4464_v54  ;;  %v8562_v25 = vpop.f32.mrf.mxu0 }
 0x2e7   : > { %v2604_v17 = vmax.f32 %v2490_v60, 0.0  ;;  %3254 = vrot.lane.b32.xlu2 %v3208_v36, %s7303_s20  ;;  %5281 = vmatpush.bf16.msra.mxu3 %v6692_v23  ;;  %v2323_v14 = vadd.f32 %v8240_v45, %v2322_v47  ;;  %v7106_v15 = vpack.i.bf16 %v8553_v21, %v8551_v28  ;;  %v1286_v36 = vrot.slane %v7095_v5, 7 }
 0x2e8   : > { %v8546_v31 = vpop.f32.mrf.mxu3  ;;  %v1285_v26 = vrot.slane %v7090_v20, 7  ;;  %v1484_v60 = vrot.slane %v7090_v20, 1  ;;  %v1253_v1 = vrot.slane %v7089_v55, 7  ;;  %v1452_v51 = vrot.slane %v7089_v55, 1  ;;  %v6777_v20 = vld [vmem:[#allocation2 + $0x58] sm:$0xff] }
 0x2e9   : > { %v8549_v8 = vpack.c.bf16 %v2604_v17, %v2604_v17  ;;  %v1254_v23 = vrot.slane %v7094_v18, 7  ;;  %v1485_v46 = vrot.slane %v7095_v5, 1  ;;  %v1453_v53 = vrot.slane %v7094_v18, 1 }
 0x2ea   : > { %v6811_v44 = vld [vmem:[#allocation2 + $0x78] sm:$0xff]  ;;  %v1318_v17 = vsel %vm1293_vm1, %v1253_v1, %v1285_v26  ;;  %v1350_v0 = vsel %vm1293_vm1, %v1285_v26, %v1253_v1  ;;  %v1549_v47 = vsel %vm1492_vm2, %v1484_v60, %v1452_v51 }
 0x2eb   : > { %2743 = vst.msk [vmem:[#allocation2 + $0x80] sm:$0xf] %vm2702_vm6, %v8549_v8  ;;  %6566 = vmatmul.msk.bf16.gmra.mxu0 %vm1625_vm5, %v6811_v44  ;;  %v1410_v54 = vsel %vm971_vm3, 0.0, %v1350_v0  ;;  %v1517_v44 = vsel %vm1492_vm2, %v1452_v51, %v1484_v60  ;;  %v1675_v1 = vsel %vm1625_vm5, %v1318_v17, %v8269_v50  ;;  %v3496_v0 = vsel %vm1625_vm5, %v6777_v20, %v8511_v13  ;;  %v6683_v51 = vld [vmem:[%s10089_s6 + $0xc0] sm:$0xf] }
 0x2ec   : > { %v2491_v37 = vpop.f32.mrf.mxu2  ;;  %v1674_v26 = vsel %vm1625_vm5, %v1410_v54, %v8267_v52  ;;  %v3160_v12 = vunpack.c.l.b16 %v8549_v8  ;;  %v6868_v17 = vld [vmem:[%s10089_s6 + $0xcc] sm:$0xf0]  ;;  %v6866_v8 = vld [vmem:[%s10089_s6 + $0xc4] sm:$0xf]  ;;  %v1351_v54 = vsel %vm1293_vm1, %v1286_v36, %v1254_v23  ;;  %v1550_v52 = vsel %vm1492_vm2, %v1485_v46, %v1453_v53 }
 0x2ed   : > { %v2492_v59 = vadd.f32 %v2491_v37, %v2323_v14  ;;  %v1610_v14 = vsel %vm1427_vm4, 0.0, %v1549_v47 }
 0x2ee   : > { %v2325_v38 = vpop.f32.mrf.mxu1  ;;  %v1739_v42 = vpack.c.bf16 %v1610_v14, %v1675_v1 }
 0x2ef   : > { %v2605_v10 = vmax.f32 %v2492_v59, 0.0  ;;  %v1738_v59 = vpack.c.bf16 %v1517_v44, %v1674_v26  ;;  %v2326_v60 = vadd.f32 %v8240_v45, %v2325_v38  ;;  %7107 = vrot.lane.b32.xlu2 %v7106_v15, %s7303_s20  ;;  %v826_v38 = vadd.f32 %v8318_v48, %v8313_v6  ;;  %v6685_v44 = vld [vmem:[%s10089_s6 + $0xd0] sm:$0xf0]  ;;  %v8608_v6 = vpop.f32.mrf.mxu0 }
 0x2f0   : > { %v8574_v55 = vpop.f32.mrf.mxu3  ;;  %v1942_v18 = vunpack.c.l.b16 %v1739_v42  ;;  %v828_v15 = vadd.f32 %v8318_v48, %v8347_v58  ;;  %v6688_v50 = vor.u32 %v6866_v8, %v6685_v44  ;;  %10221 = vst [vmem:[#allocation72_spill] sm:$0xff] %v8608_v6  ;;  %v1319_v58 = vsel %vm1293_vm1, %v1254_v23, %v1286_v36 }
 0x2f1   : > { %v2669_v37 = vpack.c.bf16 %v2605_v10, %v2605_v10  ;;  %v1940_v5 = vunpack.c.l.b16 %v1738_v59  ;;  %v1941_v47 = vunpack.c.h.b16 %v1738_v59  ;;  %v1943_v10 = vunpack.c.h.b16 %v1739_v42 }
 0x2f2   : > { %3835 = vmatmul.bf16.gmra.mxu3 %v3496_v0  ;;  %v6684_v0 = vor.u32 %v6868_v17, %v6683_v51  ;;  %v1412_v42 = vsel %vm971_vm3, 0.0, %v1351_v54  ;;  %5112 = vmatpush.bf16.msra.mxu1 %v6688_v50  ;;  %v8621_v51 = vmax.f32 %v828_v15, 0.0  ;;  %v1612_v17 = vsel %vm1427_vm4, 0.0, %v1550_v52 }
 0x2f3   : > { %2744 = vst.msk [vmem:[#allocation2 + $0x84] sm:$0xf] %vm2702_vm6, %v2669_v37  ;;  %v3161_v13 = vunpack.c.l.b16 %v2669_v37  ;;  %v2020_v14 = vpack.c.b16 %v1942_v18, %v1940_v5  ;;  %v2021_v59 = vpack.c.b16 %v1943_v10, %v1941_v47  ;;  %v1677_v5 = vsel %vm1625_vm5, %v1319_v58, %v8308_v43 }
 0x2f4   : > { %v2494_v20 = vpop.f32.mrf.mxu2  ;;  %4943 = vmatpush.bf16.msra.mxu2 %v6684_v0  ;;  %10223 = vst [vmem:[#allocation74_spill] sm:$0xff] %v8621_v51  ;;  %v1518_v18 = vsel %vm1492_vm2, %v1453_v53, %v1485_v46  ;;  %v1741_v15 = vpack.c.bf16 %v1612_v17, %v1677_v5  ;;  %v6693_v17 = vld [vmem:[%s10089_s6 + $0xd8] sm:$0xf0] }
 0x2f5   : > { %v2495_v26 = vadd.f32 %v2494_v20, %v2326_v60  ;;  %v3209_v37 = vpack.c.b16 %v3161_v13, %v3160_v12  ;;  %v8619_v12 = vmax.f32 %v826_v38, 0.0  ;;  %v1676_v13 = vsel %vm1625_vm5, %v1412_v42, %v8306_v41  ;;  %v6778_v20 = vld [vmem:[#allocation2 + $0x60] sm:$0xff] }
 0x2f6   : > { %v2327_v1 = vpop.f32.mrf.mxu1  ;;  %2364 = vmatmul.bf16.gmra.mxu1 %v2020_v14  ;;  %6241 = vmatmul.msk.bf16.gmra.mxu2 %vm1625_vm5, %v2021_v59  ;;  %v1740_v38 = vpack.c.bf16 %v1518_v18, %v1676_v13  ;;  %v1946_v14 = vunpack.c.l.b16 %v1741_v15  ;;  %v8644_v59 = vld [vmem:[#allocation8] ss:$0 sm:$0xff]  ;;  %v1947_v42 = vunpack.c.h.b16 %v1741_v15 }
 0x2f7   : > { %v2606_v11 = vmax.f32 %v2495_v26, 0.0  ;;  %3256 = vrot.lane.b32.xlu1 %v3209_v37, %s7303_s20  ;;  %10222 = vst [vmem:[#allocation73_spill] sm:$0xff] %v8619_v12  ;;  %v2328_v50 = vadd.f32 %v8240_v45, %v2327_v1  ;;  %v7111_v52 = vpack.i.bf16 %v8621_v51, %v8619_v12  ;;  %v8640_v45 = vpop.f32.mrf.mxu0 }
 0x2f8   : > { %v8617_v60 = vpop.f32.mrf.mxu3  ;;  %10224 = vst [vmem:[#allocation75_spill] sm:$0xff] %v8640_v45  ;;  %v1944_v46 = vunpack.c.l.b16 %v1740_v38  ;;  %v1945_v1 = vunpack.c.h.b16 %v1740_v38 }
 0x2f9   : > { %v2670_v36 = vpack.c.bf16 %v2606_v11, %v2606_v11 }
 0x2fa   : > { %v6812_v23 = vld [vmem:[#allocation2 + $0x80] sm:$0xff]  ;;  %v2022_v18 = vpack.c.b16 %v1946_v14, %v1944_v46 }
 0x2fb   : > { %2745 = vst.msk [vmem:[#allocation2 + $0x98] sm:$0xf] %vm2702_vm6, %v2670_v36  ;;  %6567 = vmatmul.msk.bf16.gmra.mxu0 %vm1625_vm5, %v6812_v23  ;;  %v3162_v37 = vunpack.c.l.b16 %v2670_v36  ;;  %v6867_v23 = vld [vmem:[%s10089_s6 + $0xcc] sm:$0xf]  ;;  %v831_v36 = vadd.f32 %v8318_v48, %v8377_v19 }
 0x2fc   : > { %v2496_v47 = vpop.f32.mrf.mxu2  ;;  %v8655_v5 = vor.u32 %v6867_v23, %v6693_v17  ;;  %v6813_v19 = vld [vmem:[#allocation2 + $0x88] sm:$0xff] }
 0x2fd   : > { %v2497_v11 = vadd.f32 %v2496_v47, %v2328_v50  ;;  %v833_v50 = vadd.f32 %v8318_v48, %v8399_v24 }
 0x2fe   : > { %v2330_v8 = vpop.f32.mrf.mxu1  ;;  %10225 = vst [vmem:[#allocation76_spill] sm:$0xff] %v8655_v5  ;;  %5450 = vmatpush.bf16.msra.mxu0 %v8655_v5 }
 0x2ff   : > { %v2607_v54 = vmax.f32 %v2497_v11, 0.0  ;;  %7112 = vrot.lane.b32.xlu1 %v7111_v52, %s7303_s20  ;;  %v2331_v58 = vadd.f32 %v8644_v59, %v2330_v8  ;;  %v2023_v52 = vpack.c.b16 %v1947_v42, %v1945_v1  ;;  %v8668_v14 = vpop.f32.mrf.mxu0 }
 0x300   : > { %v8638_v10 = vpop.f32.mrf.mxu3  ;;  %v3251_v44 = vpop.permute.xlu1 %3250 }
 0x301   : > { %v2671_v53 = vpack.c.bf16 %v2607_v54, %v2607_v54  ;;  %v3500_v26 = vsel %vm1625_vm5, %v6778_v20, %v3251_v44  ;;  %v8663_v54 = vmax.f32 %v831_v36, 0.0  ;;  %v8665_v20 = vmax.f32 %v833_v50, 0.0 }
 0x302   : > { %3840 = vmatmul.bf16.gmra.mxu3 %v3500_v26 }
 0x303   : > { %2746 = vst.msk [vmem:[#allocation2 + $0x9c] sm:$0xf] %vm2702_vm6, %v2671_v53  ;;  %v3163_v0 = vunpack.c.l.b16 %v2671_v53  ;;  %v7116_v36 = vpack.i.bf16 %v8665_v20, %v8663_v54 }
 0x304   : > { %v2499_v13 = vpop.f32.mrf.mxu2  ;;  %10226 = vst [vmem:[#allocation77_spill] sm:$0xff] %v8663_v54 }
 0x305   : > { %v2500_v47 = vadd.f32 %v2499_v13, %v2331_v58  ;;  %v3210_v8 = vpack.c.b16 %v3163_v0, %v3162_v37  ;;  %10227 = vst [vmem:[#allocation78_spill] sm:$0xff] %v8665_v20 }
 0x306   : > { %v2332_v11 = vpop.f32.mrf.mxu1  ;;  %2369 = vmatmul.bf16.gmra.mxu1 %v2022_v18  ;;  %6242 = vmatmul.msk.bf16.gmra.mxu2 %vm1625_vm5, %v2023_v52 }
 0x307   : > { %v2608_v38 = vmax.f32 %v2500_v47, 0.0  ;;  %3258 = vrot.lane.b32.xlu0 %v3210_v8, %s7303_s20  ;;  %v2333_v26 = vadd.f32 %v8644_v59, %v2332_v11 }
 0x308   : > { %v8661_v15 = vpop.f32.mrf.mxu3  ;;  %v7098_v24 = vpop.permute.xlu1 %7097 }
 0x309   : > { %v2672_v44 = vpack.c.bf16 %v2608_v38, %v2608_v38  ;;  %v7100_v53 = vunpack.i.h.bf16 %v7098_v24  ;;  %v7099_v46 = vunpack.i.l.bf16 %v7098_v24  ;;  %v6779_v38 = vld [vmem:[#allocation2 + $0x68] sm:$0xff] }
 0x30b   : > { %2747 = vst.msk [vmem:[#allocation2 + $0xa0] sm:$0xf] %vm2702_vm6, %v2672_v44  ;;  %v1287_v1 = vrot.slane %v7100_v53, 7  ;;  %v1486_v37 = vrot.slane %v7100_v53, 1  ;;  %v1255_v0 = vrot.slane %v7099_v46, 7  ;;  %v1454_v58 = vrot.slane %v7099_v46, 1  ;;  %6568 = vmatmul.msk.bf16.gmra.mxu0 %vm1625_vm5, %v6813_v19 }
 0x30c   : > { %v2501_v42 = vpop.f32.mrf.mxu2  ;;  %v836_v46 = vadd.f32 %v8318_v48, %v8421_v56 }
 0x30d   : > { %v2502_v23 = vadd.f32 %v2501_v42, %v2333_v26  ;;  %v1320_v13 = vsel %vm1293_vm1, %v1255_v0, %v1287_v1  ;;  %v1352_v50 = vsel %vm1293_vm1, %v1287_v1, %v1255_v0  ;;  %v1519_v18 = vsel %vm1492_vm2, %v1454_v58, %v1486_v37 }
 0x30e   : > { %v2335_v17 = vpop.f32.mrf.mxu1  ;;  %v1551_v47 = vsel %vm1492_vm2, %v1486_v37, %v1454_v58  ;;  %v1414_v11 = vsel %vm971_vm3, 0.0, %v1352_v50  ;;  %v1679_v53 = vsel %vm1625_vm5, %v1320_v13, %v8351_v22  ;;  %v3253_v26 = vpop.permute.xlu0 %3252  ;;  %v838_v58 = vadd.f32 %v8318_v48, %v8441_v9 }
 0x30f   : > { %v2609_v8 = vmax.f32 %v2502_v23, 0.0  ;;  %7117 = vrot.lane.b32.xlu0 %v7116_v36, %s7303_s20  ;;  %v1614_v19 = vsel %vm1427_vm4, 0.0, %v1551_v47  ;;  %v1678_v24 = vsel %vm1625_vm5, %v1414_v11, %v8349_v16  ;;  %v3164_v42 = vunpack.c.l.b16 %v2672_v44 }
 0x310   : > { %v8686_v52 = vpop.f32.mrf.mxu3  ;;  %v1742_v37 = vpack.c.bf16 %v1519_v18, %v1678_v24  ;;  %v1743_v0 = vpack.c.bf16 %v1614_v19, %v1679_v53  ;;  %v3504_v23 = vsel %vm1625_vm5, %v6779_v38, %v3253_v26  ;;  %v2336_v36 = vadd.f32 %v8644_v59, %v2335_v17 }
 0x311   : > { %v2673_v1 = vpack.c.bf16 %v2609_v8, %v2609_v8  ;;  %v8701_v8 = vpop.f32.mrf.mxu0  ;;  %v8703_v44 = vmax.f32 %v836_v46, 0.0  ;;  %v8705_v38 = vmax.f32 %v838_v58, 0.0 }
 0x312   : > { %3845 = vmatmul.bf16.gmra.mxu3 %v3504_v23  ;;  %v1948_v13 = vunpack.c.l.b16 %v1742_v37  ;;  %v1950_v47 = vunpack.c.l.b16 %v1743_v0  ;;  %v1949_v11 = vunpack.c.h.b16 %v1742_v37  ;;  %v1951_v56 = vunpack.c.h.b16 %v1743_v0 }
 0x313   : > { %2748 = vst.msk [vmem:[#allocation2 + $0xa4] sm:$0xf] %vm2702_vm6, %v2673_v1  ;;  %v3165_v50 = vunpack.c.l.b16 %v2673_v1  ;;  %v7121_v58 = vpack.i.bf16 %v8705_v38, %v8703_v44 }
 0x314   : > { %v2504_v22 = vpop.f32.mrf.mxu2  ;;  %v2024_v18 = vpack.c.b16 %v1950_v47, %v1948_v13  ;;  %v2025_v9 = vpack.c.b16 %v1951_v56, %v1949_v11  ;;  %10228 = vst [vmem:[#allocation79_spill] sm:$0xff] %v8703_v44 }
 0x315   : > { %v2505_v19 = vadd.f32 %v2504_v22, %v2336_v36  ;;  %v3211_v48 = vpack.c.b16 %v3165_v50, %v3164_v42  ;;  %10229 = vst [vmem:[#allocation80_spill] sm:$0xff] %v8705_v38 }
 0x316   : > { %v2337_v24 = vpop.f32.mrf.mxu1  ;;  %2374 = vmatmul.bf16.gmra.mxu1 %v2024_v18  ;;  %6243 = vmatmul.msk.bf16.gmra.mxu2 %vm1625_vm5, %v2025_v9  ;;  %v7103_v26 = vpop.permute.xlu0 %7102 }
 0x317   : > { %v2610_v17 = vmax.f32 %v2505_v19, 0.0  ;;  %3260 = vrot.lane.b32.xlu2 %v3211_v48, %s7303_s20  ;;  %v7105_v37 = vunpack.i.h.bf16 %v7103_v26  ;;  %v7104_v0 = vunpack.i.l.bf16 %v7103_v26  ;;  %v2338_v46 = vadd.f32 %v8644_v59, %v2337_v24 }
 0x318   : > { %v8708_v53 = vpop.f32.mrf.mxu3 }
 0x319   : > { %v2674_v1 = vpack.c.bf16 %v2610_v17, %v2610_v17  ;;  %v1288_v42 = vrot.slane %v7105_v37, 7  ;;  %v1487_v23 = vrot.slane %v7105_v37, 1  ;;  %v1256_v36 = vrot.slane %v7104_v0, 7  ;;  %v8724_v48 = vpop.f32.mrf.mxu0 }
 0x31a   : > { %v6814_v22 = vld [vmem:[#allocation2 + $0xa0] sm:$0xff]  ;;  %v1455_v50 = vrot.slane %v7104_v0, 1 }
 0x31b   : > { %2749 = vst.msk [vmem:[#allocation2 + $0xa8] sm:$0xf] %vm2702_vm6, %v2674_v1  ;;  %6569 = vmatmul.msk.bf16.gmra.mxu0 %vm1625_vm5, %v6814_v22  ;;  %v1321_v56 = vsel %vm1293_vm1, %v1256_v36, %v1288_v42  ;;  %v1353_v18 = vsel %vm1293_vm1, %v1288_v42, %v1256_v36 }
 0x31c   : > { %v2506_v13 = vpop.f32.mrf.mxu2  ;;  %v1520_v19 = vsel %vm1492_vm2, %v1455_v50, %v1487_v23  ;;  %v1552_v24 = vsel %vm1492_vm2, %v1487_v23, %v1455_v50  ;;  %v1416_v9 = vsel %vm971_vm3, 0.0, %v1353_v18  ;;  %v1681_v0 = vsel %vm1625_vm5, %v1321_v56, %v8389_v3 }
 0x31d   : > { %v2507_v47 = vadd.f32 %v2506_v13, %v2338_v46  ;;  %v1616_v26 = vsel %vm1427_vm4, 0.0, %v1552_v24  ;;  %v1680_v37 = vsel %vm1625_vm5, %v1416_v9, %v8387_v49  ;;  %v3166_v23 = vunpack.c.l.b16 %v2674_v1  ;;  %v6675_v1 = vld [vmem:[%s10089_s6 + $0xa8] sm:$0xf] }
 0x31e   : > { %v2340_v11 = vpop.f32.mrf.mxu1  ;;  %v1744_v46 = vpack.c.bf16 %v1520_v19, %v1680_v37  ;;  %v1745_v42 = vpack.c.bf16 %v1616_v26, %v1681_v0 }
 0x31f   : > { %v2611_v17 = vmax.f32 %v2507_v47, 0.0  ;;  %7122 = vrot.lane.b32.xlu2 %v7121_v58, %s7303_s20  ;;  %v2341_v36 = vadd.f32 %v8644_v59, %v2340_v11  ;;  %v6865_v11 = vld [vmem:[%s10089_s6 + $0xb4] sm:$0xf0] }
 0x320   : > { %v8736_v50 = vpop.f32.mrf.mxu3  ;;  %v1952_v13 = vunpack.c.l.b16 %v1744_v46  ;;  %v1954_v47 = vunpack.c.l.b16 %v1745_v42  ;;  %v1953_v18 = vunpack.c.h.b16 %v1744_v46  ;;  %v1955_v24 = vunpack.c.h.b16 %v1745_v42 }
 0x321   : > { %v2675_v22 = vpack.c.bf16 %v2611_v17, %v2611_v17  ;;  %v6676_v26 = vor.u32 %v6865_v11, %v6675_v1  ;;  %v8746_v37 = vpop.f32.mrf.mxu0  ;;  %v6864_v1 = vld [vmem:[%s10089_s6 + $0xac] sm:$0xf0] }
 0x322   : > { %v2026_v9 = vpack.c.b16 %v1954_v47, %v1952_v13  ;;  %v2027_v17 = vpack.c.b16 %v1955_v24, %v1953_v18 }
 0x323   : > { %2750 = vst.msk [vmem:[#allocation2 + $0xac] sm:$0xf] %vm2702_vm6, %v2675_v22  ;;  %v3167_v58 = vunpack.c.l.b16 %v2675_v22  ;;  %5282 = vmatpush.bf16.msra.mxu3 %v6676_v26 }
 0x324   : > { %v2509_v16 = vpop.f32.mrf.mxu2 }
 0x325   : > { %v2510_v49 = vadd.f32 %v2509_v16, %v2341_v36  ;;  %v3212_v56 = vpack.c.b16 %v3167_v58, %v3166_v23 }
 0x326   : > { %v2342_v43 = vpop.f32.mrf.mxu1  ;;  %2379 = vmatmul.bf16.gmra.mxu1 %v2026_v9  ;;  %6244 = vmatmul.msk.bf16.gmra.mxu2 %vm1625_vm5, %v2027_v17 }
 0x327   : > { %v2612_v19 = vmax.f32 %v2510_v49, 0.0  ;;  %3262 = vrot.lane.b32.xlu1 %v3212_v56, %s7303_s20  ;;  %v2343_v49 = vadd.f32 %v8644_v59, %v2342_v43 }
 0x328   : > { %v8751_v22 = vpop.f32.mrf.mxu3 }
 0x329   : > { %v2676_v16 = vpack.c.bf16 %v2612_v19, %v2612_v19  ;;  %v8754_v13 = vpop.f32.mrf.mxu0  ;;  %v6667_v19 = vld [vmem:[%s10089_s6 + $0xa0] sm:$0xf] }
 0x32a   : > { %v6815_v0 = vld [vmem:[#allocation2 + $0xa8] sm:$0xff]  ;;  %10230 = vst [vmem:[#allocation81_spill] sm:$0xff] %v8754_v13  ;;  %v6668_v26 = vor.u32 %v6864_v1, %v6667_v19 }
 0x32b   : > { %2751 = vst.msk [vmem:[#allocation2 + $0xb0] sm:$0xf] %vm2702_vm6, %v2676_v16  ;;  %6570 = vmatmul.msk.bf16.gmra.mxu0 %vm1625_vm5, %v6815_v0  ;;  %v3168_v47 = vunpack.c.l.b16 %v2676_v16  ;;  %v6862_v0 = vld [vmem:[%s10089_s6 + $0xa4] sm:$0xf] }
 0x32c   : > { %v2511_v46 = vpop.f32.mrf.mxu2  ;;  %4944 = vmatpush.bf16.msra.mxu2 %v6668_v26 }
 0x32d   : > { %v2512_v42 = vadd.f32 %v2511_v46, %v2343_v49  ;;  %v6669_v49 = vld [vmem:[%s10089_s6 + $0xb0] sm:$0xf0] }
 0x32e   : > { %v2345_v36 = vpop.f32.mrf.mxu1 }
 0x32f   : > { %v2613_v23 = vmax.f32 %v2512_v42, 0.0  ;;  %v2346_v24 = vadd.f32 %v8644_v59, %v2345_v36 }
 0x330   : > { %v8758_v43 = vpop.f32.mrf.mxu3 }
 0x331   : > { %v2677_v58 = vpack.c.bf16 %v2613_v23, %v2613_v23  ;;  %v6672_v23 = vor.u32 %v6862_v0, %v6669_v49 }
 0x333   : > { %2752 = vst.msk [vmem:[#allocation2 + $0xb4] sm:$0xf] %vm2702_vm6, %v2677_v58  ;;  %v3169_v18 = vunpack.c.l.b16 %v2677_v58  ;;  %5113 = vmatpush.bf16.msra.mxu1 %v6672_v23  ;;  %v8776_v58 = vpop.f32.mrf.mxu0 }
 0x334   : > { %v2514_v9 = vpop.f32.mrf.mxu2  ;;  %10231 = vst [vmem:[#allocation82_spill] sm:$0xff] %v8776_v58 }
 0x335   : > { %v3213_v56 = vpack.c.b16 %v3169_v18, %v3168_v47  ;;  %v2515_v17 = vadd.f32 %v2514_v9, %v2346_v24 }
 0x336   : > { %v2347_v16 = vpop.f32.mrf.mxu1 }
 0x337   : > { %3264 = vrot.lane.b32.xlu0 %v3213_v56, %s7303_s20  ;;  %v2614_v11 = vmax.f32 %v2515_v17, 0.0  ;;  %v2348_v36 = vadd.f32 %v8644_v59, %v2347_v16  ;;  %v6780_v17 = vld [vmem:[#allocation2 + $0x70] sm:$0xff] }
 0x338   : > { %v8778_v18 = vpop.f32.mrf.mxu3 }
 0x339   : > { %v2678_v46 = vpack.c.bf16 %v2614_v11, %v2614_v11 }
 0x33a   : > { %v6816_v42 = vld [vmem:[#allocation2 + $0xb0] sm:$0xff] }
 0x33b   : > { %2753 = vst.msk [vmem:[#allocation2 + $0xb8] sm:$0xf] %vm2702_vm6, %v2678_v46  ;;  %6571 = vmatmul.msk.bf16.gmra.mxu0 %vm1625_vm5, %v6816_v42  ;;  %v3170_v19 = vunpack.c.l.b16 %v2678_v46  ;;  %v8784_v42 = vpop.f32.mrf.mxu0  ;;  %v6863_v46 = vld [vmem:[%s10089_s6 + $0xac] sm:$0xf] }
 0x33c   : > { %v2516_v47 = vpop.f32.mrf.mxu2 }
 0x33d   : > { %v2517_v24 = vadd.f32 %v2516_v47, %v2348_v36  ;;  %v6677_v36 = vld [vmem:[%s10089_s6 + $0xb8] sm:$0xf0] }
 0x33e   : > { %v2350_v11 = vpop.f32.mrf.mxu1 }
 0x33f   : > { %v2615_v9 = vmax.f32 %v2517_v24, 0.0  ;;  %v2351_v23 = vadd.f32 %v8644_v59, %v2350_v11  ;;  %v8794_v24 = vor.u32 %v6863_v46, %v6677_v36 }
 0x340   : > { %v8782_v0 = vpop.f32.mrf.mxu3 }
 0x341   : > { %v2679_v56 = vpack.c.bf16 %v2615_v9, %v2615_v9  ;;  %v3255_v26 = vpop.permute.xlu2 %3254  ;;  %10232 = vst [vmem:[#allocation83_spill] sm:$0xff] %v8782_v0  ;;  %5451 = vmatpush.bf16.msra.mxu0 %v8794_v24 }
 0x342   : > { %v3508_v16 = vsel %vm1625_vm5, %v6780_v17, %v3255_v26  ;;  %10233 = vst [vmem:[#allocation84_spill] sm:$0xff] %v8794_v24 }
 0x343   : > { %2754 = vst.msk [vmem:[#allocation2 + $0xbc] sm:$0xf] %vm2702_vm6, %v2679_v56  ;;  %v3171_v1 = vunpack.c.l.b16 %v2679_v56  ;;  %3850 = vmatmul.bf16.gmra.mxu3 %v3508_v16  ;;  %v8800_v46 = vpop.f32.mrf.mxu0 }
 0x344   : > { %v2519_v47 = vpop.f32.mrf.mxu2 }
 0x345   : > { %v3214_v49 = vpack.c.b16 %v3171_v1, %v3170_v19  ;;  %v2520_v9 = vadd.f32 %v2519_v47, %v2351_v23 }
 0x346   : > { %v2352_v17 = vpop.f32.mrf.mxu1 }
 0x347   : > { %3266 = vrot.lane.b32.xlu1 %v3214_v49, %s7303_s20  ;;  %v2616_v1 = vmax.f32 %v2520_v9, 0.0  ;;  %v2353_v23 = vadd.f32 %v8644_v59, %v2352_v17 }
 0x348   : > { %v8798_v11 = vpop.f32.mrf.mxu3 }
 0x349   : > { %v7108_v19 = vpop.permute.xlu2 %7107  ;;  %10234 = vst [vmem:[#allocation85_spill] sm:$0xff] %v8798_v11  ;;  %v2680_v49 = vpack.c.bf16 %v2616_v1, %v2616_v1 }
 0x34a   : > { %v6817_v56 = vld [vmem:[#allocation2 + $0xb8] sm:$0xff]  ;;  %v7110_v26 = vunpack.i.h.bf16 %v7108_v19  ;;  %v7109_v16 = vunpack.i.l.bf16 %v7108_v19 }
 0x34b   : > { %6572 = vmatmul.msk.bf16.gmra.mxu0 %vm1625_vm5, %v6817_v56  ;;  %2755 = vst.msk [vmem:[#allocation2 + $0xc0] sm:$0xf] %vm2702_vm6, %v2680_v49  ;;  %v3172_v35 = vunpack.c.l.b16 %v2680_v49 }
 0x34c   : > { %v1289_v3 = vrot.slane %v7110_v26, 7  ;;  %v1488_v41 = vrot.slane %v7110_v26, 1  ;;  %v1257_v7 = vrot.slane %v7109_v16, 7  ;;  %v1456_v4 = vrot.slane %v7109_v16, 1  ;;  %v2521_v56 = vpop.f32.mrf.mxu2 }
 0x34d   : > { %v2522_v1 = vadd.f32 %v2521_v56, %v2353_v23 }
 0x34e   : > { %v1322_v36 = vsel %vm1293_vm1, %v1257_v7, %v1289_v3  ;;  %v1354_v47 = vsel %vm1293_vm1, %v1289_v3, %v1257_v7  ;;  %v1553_v9 = vsel %vm1492_vm2, %v1488_v41, %v1456_v4  ;;  %v1521_v17 = vsel %vm1492_vm2, %v1456_v4, %v1488_v41  ;;  %v2355_v16 = vpop.f32.mrf.mxu1 }
 0x34f   : > { %v1418_v19 = vsel %vm971_vm3, 0.0, %v1354_v47  ;;  %v1618_v26 = vsel %vm1427_vm4, 0.0, %v1553_v9  ;;  %v1683_v7 = vsel %vm1625_vm5, %v1322_v36, %v8553_v21  ;;  %v2617_v3 = vmax.f32 %v2522_v1, 0.0  ;;  %v8824_v36 = vpop.f32.mrf.mxu0 }
 0x350   : > { %v1682_v39 = vsel %vm1625_vm5, %v1418_v19, %v8551_v28  ;;  %v1747_v24 = vpack.c.bf16 %v1618_v26, %v1683_v7  ;;  %v2356_v41 = vadd.f32 %v8644_v59, %v2355_v16  ;;  %10235 = vst [vmem:[#allocation86_spill] sm:$0xff] %v8824_v36 }
 0x351   : > { %v1746_v29 = vpack.c.bf16 %v1521_v17, %v1682_v39  ;;  %v2681_v47 = vpack.c.bf16 %v2617_v3, %v2617_v3 }
 0x352   : > { %v1958_v56 = vunpack.c.l.b16 %v1747_v24  ;;  %v1959_v9 = vunpack.c.h.b16 %v1747_v24 }
 0x353   : > { %v1956_v23 = vunpack.c.l.b16 %v1746_v29  ;;  %v1957_v5 = vunpack.c.h.b16 %v1746_v29  ;;  %2756 = vst.msk [vmem:[#allocation2 + $0xc4] sm:$0xf] %vm2702_vm6, %v2681_v47  ;;  %v3173_v4 = vunpack.c.l.b16 %v2681_v47 }
 0x354   : > { %v2524_v19 = vpop.f32.mrf.mxu2 }
 0x355   : > { %v8820_v30 = vpop.f32.mrf.mxu3  ;;  %v2028_v28 = vpack.c.b16 %v1958_v56, %v1956_v23  ;;  %v2029_v13 = vpack.c.b16 %v1959_v9, %v1957_v5  ;;  %v2525_v39 = vadd.f32 %v2524_v19, %v2356_v41  ;;  %v3215_v1 = vpack.c.b16 %v3173_v4, %v3172_v35  ;;  %v6659_v23 = vld [vmem:[%s10089_s6 + $0x88] sm:$0xf]  ;;  %v6861_v56 = vld [vmem:[%s10089_s6 + $0x94] sm:$0xf0] }
 0x356   : > { %v2357_v17 = vpop.f32.mrf.mxu1  ;;  %v6781_v9 = vld [vmem:[#allocation2 + $0x78] sm:$0xff]  ;;  %v6660_v4 = vor.u32 %v6861_v56, %v6659_v23 }
 0x357   : > { %2384 = vmatmul.bf16.gmra.mxu1 %v2028_v28  ;;  %6245 = vmatmul.msk.bf16.gmra.mxu2 %vm1625_vm5, %v2029_v13  ;;  %v2618_v26 = vmax.f32 %v2525_v39, 0.0  ;;  %v2358_v16 = vadd.f32 %v8644_v59, %v2357_v17  ;;  %v8833_v3 = vpop.f32.mrf.mxu0 }
 0x358   : > { %3268 = vrot.lane.b32.xlu2 %v3215_v1, %s7303_s20  ;;  %10236 = vst [vmem:[#allocation87_spill] sm:$0xff] %v8833_v3  ;;  %5283 = vmatpush.bf16.msra.mxu3 %v6660_v4 }
 0x359   : > { %v2682_v24 = vpack.c.bf16 %v2618_v26, %v2618_v26 }
 0x35a   : > { %v6818_v49 = vld [vmem:[#allocation2 + $0xc0] sm:$0xff] }
 0x35b   : > { %2757 = vst.msk [vmem:[#allocation2 + $0xc8] sm:$0xf] %vm2702_vm6, %v2682_v24  ;;  %6573 = vmatmul.msk.bf16.gmra.mxu0 %vm1625_vm5, %v6818_v49  ;;  %v3174_v41 = vunpack.c.l.b16 %v2682_v24 }
 0x35c   : > { %v2526_v5 = vpop.f32.mrf.mxu2 }
 0x35d   : > { %v8828_v29 = vpop.f32.mrf.mxu3  ;;  %v2527_v7 = vadd.f32 %v2526_v5, %v2358_v16 }
 0x35f   : > { %v2619_v28 = vmax.f32 %v2527_v7, 0.0 }
 0x361   : > { %v2683_v47 = vpack.c.bf16 %v2619_v28, %v2619_v28  ;;  %v8849_v28 = vpop.f32.mrf.mxu0 }
 0x362   : > { %10238 = vst [vmem:[#allocation89_spill] sm:$0xff] %v8849_v28 }
 0x363   : > { %v2360_v35 = vpop.f32.mrf.mxu1  ;;  %2758 = vst.msk [vmem:[#allocation2 + $0xcc] sm:$0xf] %vm2702_vm6, %v2683_v47  ;;  %v3175_v19 = vunpack.c.l.b16 %v2683_v47 }
 0x364   : > { %v2361_v17 = vadd.f32 %v8644_v59, %v2360_v35 }
 0x365   : > { %v8835_v13 = vpop.f32.mrf.mxu3  ;;  %v3216_v26 = vpack.c.b16 %v3175_v19, %v3174_v41 }
 0x366   : > { %10237 = vst [vmem:[#allocation88_spill] sm:$0xff] %v8835_v13 }
 0x367   : > { %3270 = vrot.lane.b32.xlu0 %v3216_v26, %s7303_s20 }
 0x369   : > { %v3257_v39 = vpop.permute.xlu1 %3256  ;;  %v2529_v49 = vpop.f32.mrf.mxu2 }
 0x36a   : > { %v3512_v1 = vsel %vm1625_vm5, %v6781_v9, %v3257_v39  ;;  %v2530_v5 = vadd.f32 %v2529_v49, %v2361_v17  ;;  %v6819_v23 = vld [vmem:[#allocation2 + $0xc8] sm:$0xff] }
 0x36b   : > { %3855 = vmatmul.bf16.gmra.mxu3 %v3512_v1  ;;  %v2362_v16 = vpop.f32.mrf.mxu1  ;;  %6574 = vmatmul.msk.bf16.gmra.mxu0 %vm1625_vm5, %v6819_v23 }
 0x36c   : > { %v2620_v24 = vmax.f32 %v2530_v5, 0.0  ;;  %v2363_v35 = vadd.f32 %v8644_v59, %v2362_v16 }
 0x36d   : > { %v8847_v7 = vpop.f32.mrf.mxu3 }
 0x36e   : > { %v2684_v47 = vpack.c.bf16 %v2620_v24, %v2620_v24 }
 0x370   : > { %2759 = vst.msk [vmem:[#allocation2 + $0xd0] sm:$0xf] %vm2702_vm6, %v2684_v47  ;;  %v3176_v11 = vunpack.c.l.b16 %v2684_v47 }
 0x371   : > { %v7113_v56 = vpop.permute.xlu1 %7112  ;;  %v2531_v41 = vpop.f32.mrf.mxu2 }
 0x372   : > { %v7115_v9 = vunpack.i.h.bf16 %v7113_v56  ;;  %v7114_v4 = vunpack.i.l.bf16 %v7113_v56  ;;  %v2532_v49 = vadd.f32 %v2531_v41, %v2363_v35  ;;  %v6782_v56 = vld [vmem:[#allocation2 + $0x90] sm:$0xff]  ;;  %v8872_v41 = vpop.permute.xlu2 %3260 }
 0x373   : > { %v2365_v19 = vpop.f32.mrf.mxu1  ;;  %v6860_v35 = vld [vmem:[%s10089_s6 + $0x8c] sm:$0xf0] }
 0x374   : > { %v1290_v39 = vrot.slane %v7115_v9, 7  ;;  %v1489_v1 = vrot.slane %v7115_v9, 1  ;;  %v1258_v17 = vrot.slane %v7114_v4, 7  ;;  %v1457_v26 = vrot.slane %v7114_v4, 1  ;;  %v6651_v4 = vld [vmem:[%s10089_s6 + $0x80] sm:$0xf] }
 0x375   : > { %v8854_v21 = vpop.f32.mrf.mxu3  ;;  %v2621_v16 = vmax.f32 %v2532_v49, 0.0  ;;  %v2366_v6 = vadd.f32 %v8644_v59, %v2365_v19 }
 0x376   : > { %10239 = vst [vmem:[#allocation90_spill] sm:$0xff] %v8854_v21  ;;  %v1323_v5 = vsel %vm1293_vm1, %v1258_v17, %v1290_v39  ;;  %v1355_v24 = vsel %vm1293_vm1, %v1290_v39, %v1258_v17  ;;  %v1554_v23 = vsel %vm1492_vm2, %v1489_v1, %v1457_v26  ;;  %v1522_v9 = vsel %vm1492_vm2, %v1457_v26, %v1489_v1  ;;  %v8880_v26 = vpop.f32.mrf.mxu0 }
 0x377   : > { %v1420_v28 = vsel %vm971_vm3, 0.0, %v1355_v24  ;;  %v1620_v39 = vsel %vm1427_vm4, 0.0, %v1554_v23  ;;  %v1685_v49 = vsel %vm1625_vm5, %v1323_v5, %v8621_v51  ;;  %v6652_v1 = vor.u32 %v6860_v35, %v6651_v4  ;;  %10240 = vst [vmem:[#allocation91_spill] sm:$0xff] %v8880_v26 }
 0x378   : > { %v1684_v17 = vsel %vm1625_vm5, %v1420_v28, %v8619_v12  ;;  %v2685_v24 = vpack.c.bf16 %v2621_v16, %v2621_v16  ;;  %v1749_v0 = vpack.c.bf16 %v1620_v39, %v1685_v49  ;;  %v6858_v16 = vld [vmem:[%s10089_s6 + $0x84] sm:$0xf] }
 0x379   : > { %v3259_v21 = vpop.permute.xlu0 %3258  ;;  %v1748_v58 = vpack.c.bf16 %v1522_v9, %v1684_v17  ;;  %4945 = vmatpush.bf16.msra.mxu2 %v6652_v1  ;;  %v2534_v28 = vpop.f32.mrf.mxu2 }
 0x37a   : > { %v3516_v36 = vsel %vm1625_vm5, %v6782_v56, %v3259_v21  ;;  %2760 = vst.msk [vmem:[#allocation2 + $0xd4] sm:$0xf] %vm2702_vm6, %v2685_v24  ;;  %v3177_v23 = vunpack.c.l.b16 %v2685_v24  ;;  %v1962_v4 = vunpack.c.l.b16 %v1749_v0  ;;  %v2535_v35 = vadd.f32 %v2534_v28, %v2366_v6  ;;  %v6653_v21 = vld [vmem:[%s10089_s6 + $0x90] sm:$0xf0] }
 0x37b   : > { %3860 = vmatmul.bf16.gmra.mxu3 %v3516_v36  ;;  %v2367_v12 = vpop.f32.mrf.mxu1  ;;  %v1960_v5 = vunpack.c.l.b16 %v1748_v58  ;;  %v1961_v19 = vunpack.c.h.b16 %v1748_v58  ;;  %v1963_v9 = vunpack.c.h.b16 %v1749_v0  ;;  %v6656_v39 = vor.u32 %v6858_v16, %v6653_v21 }
 0x37c   : > { %v3217_v51 = vpack.c.b16 %v3177_v23, %v3176_v11  ;;  %v2622_v56 = vmax.f32 %v2535_v35, 0.0  ;;  %v7123_v11 = vpop.permute.xlu2 %7122  ;;  %v2368_v26 = vadd.f32 %v8644_v59, %v2367_v12 }
 0x37d   : > { %v8891_v47 = vpop.f32.mrf.mxu3  ;;  %v2030_v36 = vpack.c.b16 %v1962_v4, %v1960_v5  ;;  %v2031_v1 = vpack.c.b16 %v1963_v9, %v1961_v19  ;;  %5114 = vmatpush.bf16.msra.mxu1 %v6656_v39  ;;  %v7125_v16 = vunpack.i.h.bf16 %v7123_v11 }
 0x37e   : > { %10241 = vst [vmem:[#allocation92_spill] sm:$0xff] %v8891_v47  ;;  %3272 = vrot.lane.b32.xlu1 %v3217_v51, %s7303_s20  ;;  %v2686_v17 = vpack.c.bf16 %v2622_v56, %v2622_v56  ;;  %v4010_v28 = vpop.f32.mrf.mxu0  ;;  %v7124_v56 = vunpack.i.l.bf16 %v7123_v11 }
 0x37f   : > { %2389 = vmatmul.bf16.gmra.mxu1 %v2030_v36  ;;  %6246 = vmatmul.msk.bf16.gmra.mxu2 %vm1625_vm5, %v2031_v1  ;;  %v1292_v47 = vrot.slane %v7125_v16, 7 }
 0x380   : > { %2761 = vst.msk [vmem:[#allocation2 + $0xd8] sm:$0xf] %vm2702_vm6, %v2686_v17  ;;  %v1260_v3 = vrot.slane %v7124_v56, 7 }
 0x381   : > { %v7118_v6 = vpop.permute.xlu0 %7117  ;;  %v6820_v49 = vld [vmem:[#allocation2 + $0xd0] sm:$0xff]  ;;  %v2536_v35 = vpop.f32.mrf.mxu2 }
 0x382   : > { %v7120_v24 = vunpack.i.h.bf16 %v7118_v6  ;;  %v7119_v23 = vunpack.i.l.bf16 %v7118_v6  ;;  %6575 = vmatmul.msk.bf16.gmra.mxu0 %vm1625_vm5, %v6820_v49  ;;  %v2537_v21 = vadd.f32 %v2536_v35, %v2368_v26  ;;  %v8904_v6 = vld [vmem:[#allocation8 + $0x1] ss:$0 sm:$0xff]  ;;  %v6783_v26 = vld [vmem:[#allocation2 + $0x98] sm:$0xff] }
 0x383   : > { %v2370_v51 = vpop.f32.mrf.mxu1 }
 0x384   : > { %v1291_v58 = vrot.slane %v7120_v24, 7  ;;  %v1490_v0 = vrot.slane %v7120_v24, 1  ;;  %v1259_v5 = vrot.slane %v7119_v23, 7  ;;  %v1458_v4 = vrot.slane %v7119_v23, 1 }
 0x385   : > { %v3841_v36 = vpop.f32.mrf.mxu3  ;;  %v2623_v39 = vmax.f32 %v2537_v21, 0.0 }
 0x386   : > { %v1324_v19 = vsel %vm1293_vm1, %v1259_v5, %v1291_v58  ;;  %v1356_v12 = vsel %vm1293_vm1, %v1291_v58, %v1259_v5  ;;  %v1555_v9 = vsel %vm1492_vm2, %v1490_v0, %v1458_v4  ;;  %v3842_v49 = vadd.f32 %v8904_v6, %v3841_v36 }
 0x387   : > { %v1422_v1 = vsel %vm971_vm3, 0.0, %v1356_v12  ;;  %v1523_v11 = vsel %vm1492_vm2, %v1458_v4, %v1490_v0  ;;  %v1622_v24 = vsel %vm1427_vm4, 0.0, %v1555_v9  ;;  %v1687_v35 = vsel %vm1625_vm5, %v1324_v19, %v8665_v20  ;;  %v6859_v19 = vld [vmem:[%s10089_s6 + $0x8c] sm:$0xf] }
 0x388   : > { %v1686_v23 = vsel %vm1625_vm5, %v1422_v1, %v8663_v54  ;;  %v2687_v58 = vpack.c.bf16 %v2623_v39, %v2623_v39  ;;  %v3520_v5 = vsel %vm1625_vm5, %v6783_v26, %v8872_v41  ;;  %v1751_v36 = vpack.c.bf16 %v1622_v24, %v1687_v35 }
 0x389   : > { %v1750_v21 = vpack.c.bf16 %v1523_v11, %v1686_v23  ;;  %v3178_v12 = vunpack.c.l.b16 %v2686_v17  ;;  %v2371_v0 = vadd.f32 %v8644_v59, %v2370_v51  ;;  %v4011_v9 = vadd.f32 %v4010_v28, %v3842_v49  ;;  %v2539_v39 = vpop.f32.mrf.mxu2  ;;  %v6661_v17 = vld [vmem:[%s10089_s6 + $0x98] sm:$0xf0]  ;;  %v4012_v28 = vpop.f32.mrf.mxu0 }
 0x38a   : > { %2762 = vst.msk [vmem:[#allocation2 + $0xdc] sm:$0xf] %vm2702_vm6, %v2687_v58  ;;  %v3179_v4 = vunpack.c.l.b16 %v2687_v58  ;;  %v1966_v54 = vunpack.c.l.b16 %v1751_v36  ;;  %v1967_v11 = vunpack.c.h.b16 %v1751_v36  ;;  %v1491_v51 = vrot.slane %v7125_v16, 1 }
 0x38b   : > { %3865 = vmatmul.bf16.gmra.mxu3 %v3520_v5  ;;  %v1964_v1 = vunpack.c.l.b16 %v1750_v21  ;;  %v2372_v41 = vpop.f32.mrf.mxu1  ;;  %v1965_v26 = vunpack.c.h.b16 %v1750_v21  ;;  %v1459_v24 = vrot.slane %v7124_v56, 1  ;;  %v2540_v23 = vadd.f32 %v2539_v39, %v2371_v0 }
 0x38c   : > { %v3218_v35 = vpack.c.b16 %v3179_v4, %v3178_v12  ;;  %v8927_v5 = vor.u32 %v6859_v19, %v6661_v17  ;;  %v1357_v20 = vsel %vm1293_vm1, %v1292_v47, %v1260_v3  ;;  %v4134_v45 = vmax.f32 %v4011_v9, 0.0 }
 0x38d   : > { %v3843_v49 = vpop.f32.mrf.mxu3  ;;  %v2032_v58 = vpack.c.b16 %v1966_v54, %v1964_v1  ;;  %v2624_v13 = vmax.f32 %v2540_v23, 0.0  ;;  %v2033_v36 = vpack.c.b16 %v1967_v11, %v1965_v26  ;;  %v1556_v16 = vsel %vm1492_vm2, %v1491_v51, %v1459_v24 }
 0x38e   : > { %3274 = vrot.lane.b32.xlu2 %v3218_v35, %s7303_s20  ;;  %v3844_v21 = vadd.f32 %v8904_v6, %v3843_v49  ;;  %5452 = vmatpush.bf16.msra.mxu0 %v8927_v5  ;;  %v1325_v54 = vsel %vm1293_vm1, %v1260_v3, %v1292_v47  ;;  %v1424_v0 = vsel %vm971_vm3, 0.0, %v1357_v20  ;;  %v4198_v9 = vpack.c.bf16 %v4134_v45, %v4134_v45  ;;  %v6784_v35 = vld [vmem:[#allocation2 + $0xa0] sm:$0xff] }
 0x38f   : > { %v2688_v56 = vpack.c.bf16 %v2624_v13, %v2624_v13  ;;  %2394 = vmatmul.bf16.gmra.mxu1 %v2032_v58  ;;  %v2373_v1 = vadd.f32 %v8644_v59, %v2372_v41  ;;  %v1524_v39 = vsel %vm1492_vm2, %v1459_v24, %v1491_v51  ;;  %6247 = vmatmul.msk.bf16.gmra.mxu2 %vm1625_vm5, %v2033_v36  ;;  %v1624_v20 = vsel %vm1427_vm4, 0.0, %v1556_v16 }
 0x390   : > { %v4013_v12 = vadd.f32 %v4012_v28, %v3844_v21  ;;  %v1688_v45 = vsel %vm1625_vm5, %v1424_v0, %v8703_v44  ;;  %v1689_v41 = vsel %vm1625_vm5, %v1325_v54, %v8705_v38  ;;  %v4486_v17 = vunpack.c.l.b16 %v4198_v9 }
 0x391   : > { %v6821_v4 = vld [vmem:[#allocation2 + $0xd8] sm:$0xff]  ;;  %2763 = vst.msk [vmem:[#allocation2 + $0xe0] sm:$0xf] %vm2702_vm6, %v2688_v56  ;;  %v2541_v26 = vpop.f32.mrf.mxu2  ;;  %v4015_v11 = vpop.f32.mrf.mxu0  ;;  %v1752_v28 = vpack.c.bf16 %v1524_v39, %v1688_v45  ;;  %v1753_v49 = vpack.c.bf16 %v1624_v20, %v1689_v41 }
 0x392   : > { %v4135_v19 = vmax.f32 %v4013_v12, 0.0  ;;  %6576 = vmatmul.msk.bf16.gmra.mxu0 %vm1625_vm5, %v6821_v4  ;;  %v2542_v47 = vadd.f32 %v2541_v26, %v2373_v1  ;;  %v3180_v12 = vunpack.c.l.b16 %v2688_v56 }
 0x393   : > { %v2375_v13 = vpop.f32.mrf.mxu1  ;;  %v1968_v1 = vunpack.c.l.b16 %v1752_v28 }
 0x394   : > { %v4199_v3 = vpack.c.bf16 %v4135_v19, %v4135_v19  ;;  %v2625_v24 = vmax.f32 %v2542_v47, 0.0  ;;  %v2376_v0 = vadd.f32 %v8644_v59, %v2375_v13  ;;  %v1970_v19 = vunpack.c.l.b16 %v1753_v49  ;;  %v6643_v13 = vld [vmem:[%s10089_s6 + $0x68] sm:$0xf] }
 0x395   : > { %v3846_v2 = vpop.f32.mrf.mxu3  ;;  %v1971_v47 = vunpack.c.h.b16 %v1753_v49 }
 0x396   : > { %v4487_v51 = vunpack.c.l.b16 %v4199_v3  ;;  %v3847_v23 = vadd.f32 %v8904_v6, %v3846_v2  ;;  %v2689_v63 = vpack.c.bf16 %v2625_v24, %v2625_v24  ;;  %v1969_v3 = vunpack.c.h.b16 %v1752_v28 }
 0x398   : > { %v4016_v58 = vadd.f32 %v4015_v11, %v3847_v23  ;;  %v8953_v36 = vpack.c.b16 %v4487_v51, %v4486_v17  ;;  %2764 = vst.msk [vmem:[#allocation2 + $0xe4] sm:$0xf] %vm2702_vm6, %v2689_v63  ;;  %v3181_v54 = vunpack.c.l.b16 %v2689_v63  ;;  %v6857_v11 = vld [vmem:[%s10089_s6 + $0x74] sm:$0xf0]  ;;  %v2034_v17 = vpack.c.b16 %v1970_v19, %v1968_v1  ;;  %v6785_v19 = vld [vmem:[#allocation2 + $0xa8] sm:$0xff] }
 0x399   : > { %v3263_v21 = vpop.permute.xlu1 %3262  ;;  %v2544_v4 = vpop.f32.mrf.mxu2  ;;  %v6644_v51 = vor.u32 %v6857_v11, %v6643_v13  ;;  %v2035_v28 = vpack.c.b16 %v1971_v47, %v1969_v3 }
 0x39a   : > { %v3524_v16 = vsel %vm1625_vm5, %v6784_v35, %v3263_v21  ;;  %v2545_v39 = vadd.f32 %v2544_v4, %v2376_v0  ;;  %v3219_v26 = vpack.c.b16 %v3181_v54, %v3180_v12  ;;  %v4136_v45 = vmax.f32 %v4016_v58, 0.0  ;;  %v4017_v2 = vpop.f32.mrf.mxu0 }
 0x39b   : > { %3870 = vmatmul.bf16.gmra.mxu3 %v3524_v16  ;;  %v2377_v9 = vpop.f32.mrf.mxu1 }
 0x39c   : > { %v2626_v41 = vmax.f32 %v2545_v39, 0.0  ;;  %3276 = vrot.lane.b32.xlu0 %v3219_v26, %s7303_s20  ;;  %5284 = vmatpush.bf16.msra.mxu3 %v6644_v51  ;;  %v4200_v49 = vpack.c.bf16 %v4136_v45, %v4136_v45  ;;  %v2378_v63 = vadd.f32 %v8644_v59, %v2377_v9 }
 0x39d   : > { %v3848_v20 = vpop.f32.mrf.mxu3 }
 0x39e   : > { %v3849_v56 = vadd.f32 %v8904_v6, %v3848_v20  ;;  %v2690_v24 = vpack.c.bf16 %v2626_v41, %v2626_v41  ;;  %v4488_v0 = vunpack.c.l.b16 %v4200_v49 }
 0x39f   : > { %v6822_v35 = vld [vmem:[#allocation2 + $0xe0] sm:$0xff]  ;;  %2399 = vmatmul.bf16.gmra.mxu1 %v2034_v17  ;;  %6248 = vmatmul.msk.bf16.gmra.mxu2 %vm1625_vm5, %v2035_v28 }
 0x3a0   : > { %v4018_v23 = vadd.f32 %v4017_v2, %v3849_v56  ;;  %2765 = vst.msk [vmem:[#allocation2 + $0xe8] sm:$0xf] %vm2702_vm6, %v2690_v24  ;;  %v3182_v9 = vunpack.c.l.b16 %v2690_v24  ;;  %v6635_v24 = vld [vmem:[%s10089_s6 + $0x60] sm:$0xf] }
 0x3a1   : > { %v2546_v21 = vpop.f32.mrf.mxu2 }
 0x3a2   : > { %v4137_v58 = vmax.f32 %v4018_v23, 0.0  ;;  %6577 = vmatmul.msk.bf16.gmra.mxu0 %vm1625_vm5, %v6822_v35  ;;  %v2547_v12 = vadd.f32 %v2546_v21, %v2378_v63  ;;  %v8976_v51 = vpop.f32.mrf.mxu0  ;;  %v6856_v35 = vld [vmem:[%s10089_s6 + $0x6c] sm:$0xf0] }
 0x3a3   : > { %v2380_v54 = vpop.f32.mrf.mxu1  ;;  %v6636_v49 = vor.u32 %v6856_v35, %v6635_v24 }
 0x3a4   : > { %v4201_v16 = vpack.c.bf16 %v4137_v58, %v4137_v58  ;;  %v2627_v1 = vmax.f32 %v2547_v12, 0.0  ;;  %v2381_v45 = vadd.f32 %v8644_v59, %v2380_v54  ;;  %v6786_v12 = vld [vmem:[#allocation2 + $0xb0] sm:$0xff] }
 0x3a5   : > { %4946 = vmatpush.bf16.msra.mxu2 %v6636_v49 }
 0x3a6   : > { %v4489_v4 = vunpack.c.l.b16 %v4201_v16  ;;  %v2691_v39 = vpack.c.bf16 %v2627_v1, %v2627_v1 }
 0x3a8   : > { %v8970_v20 = vpack.c.b16 %v4489_v4, %v4488_v0  ;;  %2766 = vst.msk [vmem:[#allocation2 + $0xec] sm:$0xf] %vm2702_vm6, %v2691_v39  ;;  %v3183_v47 = vunpack.c.l.b16 %v2691_v39  ;;  %v6854_v0 = vld [vmem:[%s10089_s6 + $0x64] sm:$0xf]  ;;  %v6637_v4 = vld [vmem:[%s10089_s6 + $0x70] sm:$0xf0] }
 0x3a9   : > { %v3265_v26 = vpop.permute.xlu0 %3264  ;;  %v2549_v41 = vpop.f32.mrf.mxu2  ;;  %v6640_v39 = vor.u32 %v6854_v0, %v6637_v4 }
 0x3aa   : > { %v3528_v3 = vsel %vm1625_vm5, %v6785_v19, %v3265_v26  ;;  %v2550_v56 = vadd.f32 %v2549_v41, %v2381_v45  ;;  %v3220_v13 = vpack.c.b16 %v3183_v47, %v3182_v9  ;;  %v8995_v26 = vpop.f32.mrf.mxu0  ;;  %v6855_v45 = vld [vmem:[%s10089_s6 + $0x6c] sm:$0xf]  ;;  %v6645_v41 = vld [vmem:[%s10089_s6 + $0x78] sm:$0xf0] }
 0x3ab   : > { %3875 = vmatmul.bf16.gmra.mxu3 %v3528_v3  ;;  %v2382_v2 = vpop.f32.mrf.mxu1  ;;  %5115 = vmatpush.bf16.msra.mxu1 %v6640_v39 }
 0x3ac   : > { %v2628_v11 = vmax.f32 %v2550_v56, 0.0  ;;  %3278 = vrot.lane.b32.xlu1 %v3220_v13, %s7303_s20  ;;  %v2383_v28 = vadd.f32 %v8644_v59, %v2382_v2  ;;  %v9005_v56 = vor.u32 %v6855_v45, %v6645_v41 }
 0x3ae   : > { %v2692_v17 = vpack.c.bf16 %v2628_v11, %v2628_v11  ;;  %v6787_v11 = vld [vmem:[#allocation2 + $0xb8] sm:$0xff]  ;;  %5453 = vmatpush.bf16.msra.mxu0 %v9005_v56 }
 0x3af   : > { %v6823_v23 = vld [vmem:[#allocation2 + $0xe8] sm:$0xff] }
 0x3b0   : > { %2767 = vst.msk [vmem:[#allocation2 + $0xf0] sm:$0xf] %vm2702_vm6, %v2692_v17  ;;  %v3184_v1 = vunpack.c.l.b16 %v2692_v17 }
 0x3b1   : > { %v2551_v63 = vpop.f32.mrf.mxu2 }
 0x3b2   : > { %6578 = vmatmul.msk.bf16.gmra.mxu0 %vm1625_vm5, %v6823_v23  ;;  %v2552_v58 = vadd.f32 %v2551_v63, %v2383_v28  ;;  %v4025_v47 = vpop.f32.mrf.mxu0  ;;  %v3269_v13 = vpop.permute.xlu2 %3268  ;;  %v9013_v28 = vld [vmem:[#allocation8] ss:$0 sm:$0xff]  ;;  %v6788_v63 = vld [vmem:[#allocation2 + $0xc0] sm:$0xff] }
 0x3b3   : > { %v3536_v2 = vsel %vm1625_vm5, %v6787_v11, %v3269_v13 }
 0x3b4   : > { %v2629_v21 = vmax.f32 %v2552_v58, 0.0 }
 0x3b6   : > { %v2693_v16 = vpack.c.bf16 %v2629_v21, %v2629_v21 }
 0x3b8   : > { %2768 = vst.msk [vmem:[#allocation2 + $0xf4] sm:$0xf] %vm2702_vm6, %v2693_v16  ;;  %v3185_v59 = vunpack.c.l.b16 %v2693_v16  ;;  %v6627_v16 = vld [vmem:[%s10089_s6 + $0x48] sm:$0xf] }
 0x3b9   : > { %v3267_v54 = vpop.permute.xlu1 %3266 }
 0x3ba   : > { %v3532_v19 = vsel %vm1625_vm5, %v6786_v12, %v3267_v54  ;;  %v3221_v3 = vpack.c.b16 %v3185_v59, %v3184_v1  ;;  %v4027_v17 = vpop.f32.mrf.mxu0  ;;  %v6853_v12 = vld [vmem:[%s10089_s6 + $0x54] sm:$0xf0] }
 0x3bb   : > { %3880 = vmatmul.bf16.gmra.mxu3 %v3532_v19  ;;  %v6628_v4 = vor.u32 %v6853_v12, %v6627_v16  ;;  %v6852_v16 = vld [vmem:[%s10089_s6 + $0x4c] sm:$0xf0]  ;;  %v6789_v12 = vld [vmem:[#allocation2 + $0xc8] sm:$0xff] }
 0x3bc   : > { %3280 = vrot.lane.b32.xlu2 %v3221_v3, %s7303_s20 }
 0x3bd   : > { %5285 = vmatpush.bf16.msra.mxu3 %v6628_v4 }
 0x3bf   : > { %v6824_v9 = vld [vmem:[#allocation2 + $0xf0] sm:$0xff] }
 0x3c2   : > { %6579 = vmatmul.msk.bf16.gmra.mxu0 %vm1625_vm5, %v6824_v9  ;;  %v9009_v24 = vpop.f32.mrf.mxu0 }
 0x3c6   : > { %v9011_v35 = vpop.f32.mrf.mxu3 }
 0x3ca   : > { %v4032_v19 = vpop.f32.mrf.mxu0 }
 0x3cb   : > { %3885 = vmatmul.bf16.gmra.mxu3 %v3536_v2 }
 0x3ce   : > { %v9023_v3 = vpop.f32.mrf.mxu3 }
 0x3d2   : > { %v9027_v2 = vpop.f32.mrf.mxu0 }
 0x3d4   : > { %v2385_v23 = vpop.f32.mrf.mxu1 }
 0x3d5   : > { %v2386_v49 = vadd.f32 %v9013_v28, %v2385_v23 }
 0x3d9   : > { %v3271_v58 = vpop.permute.xlu0 %3270 }
 0x3da   : > { %v2554_v21 = vpop.f32.mrf.mxu2  ;;  %v3540_v0 = vsel %vm1625_vm5, %v6788_v63, %v3271_v58 }
 0x3db   : > { %v2555_v54 = vadd.f32 %v2554_v21, %v2386_v49  ;;  %3890 = vmatmul.bf16.gmra.mxu3 %v3540_v0  ;;  %v6619_v21 = vld [vmem:[%s10089_s6 + $0x40] sm:$0xf] }
 0x3dc   : > { %v2387_v59 = vpop.f32.mrf.mxu1  ;;  %v6620_v0 = vor.u32 %v6852_v16, %v6619_v21 }
 0x3dd   : > { %v2630_v1 = vmax.f32 %v2555_v54, 0.0  ;;  %v2388_v9 = vadd.f32 %v9013_v28, %v2387_v59 }
 0x3de   : > { %4947 = vmatpush.bf16.msra.mxu2 %v6620_v0 }
 0x3df   : > { %v2694_v39 = vpack.c.bf16 %v2630_v1, %v2630_v1 }
 0x3e1   : > { %2769 = vst.msk [vmem:[#allocation2 + $0xf8] sm:$0xf] %vm2702_vm6, %v2694_v39  ;;  %v3186_v23 = vunpack.c.l.b16 %v2694_v39 }
 0x3e2   : > { %v2556_v45 = vpop.f32.mrf.mxu2 }
 0x3e3   : > { %v2557_v41 = vadd.f32 %v2556_v45, %v2388_v9 }
 0x3e5   : > { %v2631_v13 = vmax.f32 %v2557_v41, 0.0 }
 0x3e7   : > { %v2695_v11 = vpack.c.bf16 %v2631_v13, %v2631_v13  ;;  %v6850_v13 = vld [vmem:[%s10089_s6 + $0x44] sm:$0xf] }
 0x3e9   : > { %2770 = vst.msk [vmem:[#allocation2 + $0xfc] sm:$0xf] %vm2702_vm6, %v2695_v11  ;;  %v3187_v49 = vunpack.c.l.b16 %v2695_v11  ;;  %v6621_v11 = vld [vmem:[%s10089_s6 + $0x50] sm:$0xf0] }
 0x3eb   : > { %v3222_v54 = vpack.c.b16 %v3187_v49, %v3186_v23  ;;  %v9047_v23 = vpop.f32.mrf.mxu0  ;;  %v6624_v49 = vor.u32 %v6850_v13, %v6621_v11 }
 0x3ed   : > { %3282 = vrot.lane.b32.xlu0 %v3222_v54, %s7303_s20  ;;  %5116 = vmatpush.bf16.msra.mxu1 %v6624_v49 }
 0x3ee   : > { %v3856_v63 = vpop.f32.mrf.mxu3 }
 0x3ef   : > { %v3857_v58 = vadd.f32 %v8904_v6, %v3856_v63 }
 0x3f0   : > { %v3273_v4 = vpop.permute.xlu1 %3272  ;;  %v6825_v39 = vld [vmem:[#allocation2 + $0xf8] sm:$0xff] }
 0x3f1   : > { %v3544_v1 = vsel %vm1625_vm5, %v6789_v12, %v3273_v4  ;;  %v4026_v59 = vadd.f32 %v4025_v47, %v3857_v58  ;;  %6580 = vmatmul.msk.bf16.gmra.mxu0 %vm1625_vm5, %v6825_v39  ;;  %v3275_v12 = vpop.permute.xlu2 %3274 }
 0x3f2   : > { %3895 = vmatmul.bf16.gmra.mxu3 %v3544_v1 }
 0x3f3   : > { %v4140_v45 = vmax.f32 %v4026_v59, 0.0  ;;  %v6790_v59 = vld [vmem:[#allocation2 + $0xd0] sm:$0xff] }
 0x3f4   : > { %v3548_v38 = vsel %vm1625_vm5, %v6790_v59, %v3275_v12 }
 0x3f5   : > { %v4204_v47 = vpack.c.bf16 %v4140_v45, %v4140_v45 }
 0x3f6   : > { %v3858_v9 = vpop.f32.mrf.mxu3 }
 0x3f7   : > { %v3859_v41 = vadd.f32 %v8904_v6, %v3858_v9  ;;  %v4492_v54 = vunpack.c.l.b16 %v4204_v47  ;;  %v9052_v9 = vpop.f32.mrf.mxu0  ;;  %v6851_v47 = vld [vmem:[%s10089_s6 + $0x4c] sm:$0xf] }
 0x3f9   : > { %v4028_v63 = vadd.f32 %v4027_v17, %v3859_v41 }
 0x3fb   : > { %v4141_v58 = vmax.f32 %v4028_v63, 0.0 }
 0x3fc   : > { %v2390_v4 = vpop.f32.mrf.mxu1 }
 0x3fd   : > { %v4205_v21 = vpack.c.bf16 %v4141_v58, %v4141_v58  ;;  %v2391_v45 = vadd.f32 %v9013_v28, %v2390_v4  ;;  %v6629_v58 = vld [vmem:[%s10089_s6 + $0x58] sm:$0xf0] }
 0x3fe   : > { %v3861_v16 = vpop.f32.mrf.mxu3 }
 0x3ff   : > { %v4493_v0 = vunpack.c.l.b16 %v4205_v21  ;;  %v3862_v1 = vadd.f32 %v8904_v6, %v3861_v16 }
 0x401   : > { %v9050_v39 = vpack.c.b16 %v4493_v0, %v4492_v54  ;;  %v4031_v17 = vadd.f32 %v9009_v24, %v3862_v1  ;;  %v9067_v0 = vpop.f32.mrf.mxu0 }
 0x402   : > { %3900 = vmatmul.bf16.gmra.mxu3 %v3548_v38  ;;  %v2559_v11 = vpop.f32.mrf.mxu2  ;;  %v9064_v38 = vor.u32 %v6851_v47, %v6629_v58  ;;  %v6791_v47 = vld [vmem:[#allocation2 + $0xd8] sm:$0xff] }
 0x403   : > { %v4142_v13 = vmax.f32 %v4031_v17, 0.0  ;;  %v2560_v21 = vadd.f32 %v2559_v11, %v2391_v45 }
 0x404   : > { %v2392_v49 = vpop.f32.mrf.mxu1  ;;  %5454 = vmatpush.bf16.msra.mxu0 %v9064_v38 }
 0x405   : > { %v2632_v16 = vmax.f32 %v2560_v21, 0.0  ;;  %v4206_v12 = vpack.c.bf16 %v4142_v13, %v4142_v13  ;;  %v2393_v59 = vadd.f32 %v9013_v28, %v2392_v49 }
 0x406   : > { %v3863_v41 = vpop.f32.mrf.mxu3 }
 0x407   : > { %v3864_v63 = vadd.f32 %v8904_v6, %v3863_v41  ;;  %v2696_v4 = vpack.c.bf16 %v2632_v16, %v2632_v16  ;;  %v4494_v41 = vunpack.c.l.b16 %v4206_v12  ;;  %v3799_v16 = vadd.f32 %v8904_v6, %v8617_v60 }
 0x409   : > { %v4033_v24 = vadd.f32 %v4032_v19, %v3864_v63  ;;  %2771 = vst.msk [vmem:[#allocation2 + $0x100] sm:$0xf] %vm2702_vm6, %v2696_v4 }
 0x40a   : > { %v2561_v45 = vpop.f32.mrf.mxu2 }
 0x40b   : > { %v4143_v54 = vmax.f32 %v4033_v24, 0.0  ;;  %v2562_v63 = vadd.f32 %v2561_v45, %v2393_v59  ;;  %v3188_v59 = vunpack.c.l.b16 %v2696_v4  ;;  %v3968_v45 = vadd.f32 %v8504_v57, %v3799_v16 }
 0x40c   : > { %v2395_v11 = vpop.f32.mrf.mxu1  ;;  %v3814_v57 = vadd.f32 %v8904_v6, %v8751_v22  ;;  %v6611_v22 = vld [vmem:[%s10089_s6 + $0x28] sm:$0xf] }
 0x40d   : > { %v4207_v1 = vpack.c.bf16 %v4143_v54, %v4143_v54  ;;  %v2633_v21 = vmax.f32 %v2562_v63, 0.0  ;;  %v3797_v54 = vadd.f32 %v8904_v6, %v8574_v55 }
 0x40e   : > { %v3866_v17 = vpop.f32.mrf.mxu3  ;;  %v3277_v58 = vpop.permute.xlu0 %3276 }
 0x40f   : > { %v4495_v44 = vunpack.c.l.b16 %v4207_v1  ;;  %v3867_v19 = vadd.f32 %v8904_v6, %v3866_v17  ;;  %v3552_v24 = vsel %vm1625_vm5, %v6791_v47, %v3277_v58  ;;  %v2697_v12 = vpack.c.bf16 %v2633_v21, %v2633_v21  ;;  %v9080_v1 = vpop.f32.mrf.mxu0 }
 0x410   : > { %v2396_v17 = vadd.f32 %v9013_v28, %v2395_v11  ;;  %v3966_v55 = vadd.f32 %v8496_v62, %v3797_v54 }
 0x411   : > { %v9072_v13 = vpack.c.b16 %v4495_v44, %v4494_v41  ;;  %v4036_v49 = vadd.f32 %v9027_v2, %v3867_v19  ;;  %2772 = vst.msk [vmem:[#allocation2 + $0x104] sm:$0xf] %vm2702_vm6, %v2697_v12  ;;  %v3189_v44 = vunpack.c.l.b16 %v2697_v12 }
 0x412   : > { %3905 = vmatmul.bf16.gmra.mxu3 %v3552_v24  ;;  %v2564_v60 = vpop.f32.mrf.mxu2  ;;  %v4117_v24 = vmax.f32 %v3968_v45, 0.0 }
 0x413   : > { %v4144_v63 = vmax.f32 %v4036_v49, 0.0  ;;  %v2565_v19 = vadd.f32 %v2564_v60, %v2396_v17  ;;  %v3223_v58 = vpack.c.b16 %v3189_v44, %v3188_v59  ;;  %v4116_v49 = vmax.f32 %v3966_v55, 0.0 }
 0x414   : > { %v2397_v47 = vpop.f32.mrf.mxu1  ;;  %v4181_v54 = vpack.c.bf16 %v4117_v24, %v4117_v24  ;;  %v3983_v60 = vadd.f32 %v8701_v8, %v3814_v57 }
 0x415   : > { %v2634_v4 = vmax.f32 %v2565_v19, 0.0  ;;  %3284 = vrot.lane.b32.xlu1 %v3223_v58, %s7303_s20  ;;  %v4208_v12 = vpack.c.bf16 %v4144_v63, %v4144_v63  ;;  %v2398_v62 = vadd.f32 %v9013_v28, %v2397_v47  ;;  %v6792_v19 = vld [vmem:[#allocation2 + $0xe0] sm:$0xff]  ;;  %v4180_v55 = vpack.c.bf16 %v4116_v49, %v4116_v49 }
 0x416   : > { %v3868_v41 = vpop.f32.mrf.mxu3  ;;  %v4469_v8 = vunpack.c.l.b16 %v4181_v54  ;;  %v4123_v57 = vmax.f32 %v3983_v60, 0.0 }
 0x417   : > { %v3869_v2 = vadd.f32 %v8904_v6, %v3868_v41  ;;  %v2698_v16 = vpack.c.bf16 %v2634_v4, %v2634_v4  ;;  %v3812_v41 = vadd.f32 %v8904_v6, %v8736_v50  ;;  %v4496_v44 = vunpack.c.l.b16 %v4208_v12  ;;  %v6849_v50 = vld [vmem:[%s10089_s6 + $0x34] sm:$0xf0] }
 0x418   : > { %v6826_v59 = vld [vmem:[#allocation2 + $0x100] sm:$0xff]  ;;  %v6612_v58 = vor.u32 %v6849_v50, %v6611_v22  ;;  %v4187_v60 = vpack.c.bf16 %v4123_v57, %v4123_v57 }
 0x419   : > { %v4038_v21 = vadd.f32 %v9047_v23, %v3869_v2  ;;  %2773 = vst.msk [vmem:[#allocation2 + $0x108] sm:$0xf] %vm2702_vm6, %v2698_v16  ;;  %6581 = vmatmul.msk.bf16.gmra.mxu0 %vm1625_vm5, %v6826_v59  ;;  %v9105_v2 = vpop.f32.mrf.mxu0  ;;  %v3829_v59 = vadd.f32 %v8904_v6, %v8828_v29  ;;  %v3802_v29 = vadd.f32 %v8904_v6, %v8638_v10 }
 0x41a   : > { %v2566_v63 = vpop.f32.mrf.mxu2  ;;  %5286 = vmatpush.bf16.msra.mxu3 %v6612_v58 }
 0x41b   : > { %v4145_v11 = vmax.f32 %v4038_v21, 0.0  ;;  %v2567_v47 = vadd.f32 %v2566_v63, %v2398_v62  ;;  %v3981_v21 = vadd.f32 %v8668_v14, %v3812_v41  ;;  %v4468_v62 = vunpack.c.l.b16 %v4180_v55 }
 0x41c   : > { %v2400_v24 = vpop.f32.mrf.mxu1  ;;  %v3804_v14 = vadd.f32 %v8904_v6, %v8661_v15  ;;  %v3998_v15 = vadd.f32 %v8800_v46, %v3829_v59  ;;  %v3971_v10 = vadd.f32 %v8532_v33, %v3802_v29  ;;  %v3794_v46 = vadd.f32 %v8904_v6, %v8546_v31  ;;  %v6848_v29 = vld [vmem:[%s10089_s6 + $0x2c] sm:$0xf0] }
 0x41d   : > { %v4209_v17 = vpack.c.bf16 %v4145_v11, %v4145_v11  ;;  %v2635_v11 = vmax.f32 %v2567_v47, 0.0  ;;  %4558 = vrot.lane.b32.xlu1 %v8499_v32, %s7303_s20  ;;  %v4122_v41 = vmax.f32 %v3981_v21, 0.0  ;;  %v2401_v54 = vadd.f32 %v9013_v28, %v2400_v24 }
 0x41e   : > { %v9095_v23 = vpop.f32.mrf.mxu3  ;;  %v3279_v4 = vpop.permute.xlu1 %3278  ;;  %v4529_v50 = vpack.c.b16 %v4469_v8, %v4468_v62  ;;  %v4475_v24 = vunpack.c.l.b16 %v4187_v60  ;;  %v3819_v8 = vadd.f32 %v8904_v6, %v8778_v18  ;;  %v4118_v31 = vmax.f32 %v3971_v10, 0.0 }
 0x41f   : > { %v4497_v45 = vunpack.c.l.b16 %v4209_v17  ;;  %v3556_v17 = vsel %vm1625_vm5, %v6792_v19, %v3279_v4  ;;  %v2699_v49 = vpack.c.bf16 %v2635_v11, %v2635_v11  ;;  %v4129_v11 = vmax.f32 %v3998_v15, 0.0 }
 0x421   : > { %v9108_v12 = vpack.c.b16 %v4497_v45, %v4496_v44  ;;  %v3827_v44 = vadd.f32 %v8904_v6, %v8820_v30  ;;  %v3190_v45 = vunpack.c.l.b16 %v2698_v16  ;;  %2774 = vst.msk [vmem:[#allocation2 + $0x10c] sm:$0xf] %vm2702_vm6, %v2699_v49  ;;  %v3191_v32 = vunpack.c.l.b16 %v2699_v49  ;;  %v9128_v55 = vpop.f32.mrf.mxu0 }
 0x422   : > { %3910 = vmatmul.bf16.gmra.mxu3 %v3556_v17  ;;  %v2569_v22 = vpop.f32.mrf.mxu2  ;;  %v3973_v30 = vadd.f32 %v8562_v25, %v3804_v14  ;;  %v4186_v16 = vpack.c.bf16 %v4122_v41, %v4122_v41  ;;  %v3792_v25 = vadd.f32 %v8904_v6, %v8521_v27  ;;  %v3817_v14 = vadd.f32 %v8904_v6, %v8758_v43  ;;  %v3281_v41 = vpop.permute.xlu2 %3280 }
 0x423   : > { %v2570_v47 = vadd.f32 %v2569_v22, %v2401_v54  ;;  %v3224_v19 = vpack.c.b16 %v3191_v32, %v3190_v45  ;;  %v3996_v58 = vadd.f32 %v8784_v42, %v3827_v44  ;;  %v3963_v27 = vadd.f32 %v8468_v40, %v3794_v46  ;;  %v6793_v32 = vld [vmem:[#allocation2 + $0xe8] sm:$0xff] }
 0x424   : > { %v2402_v4 = vpop.f32.mrf.mxu1  ;;  %v4119_v42 = vmax.f32 %v3973_v30, 0.0  ;;  %v4474_v59 = vunpack.c.l.b16 %v4186_v16  ;;  %v4193_v18 = vpack.c.bf16 %v4129_v11, %v4129_v11  ;;  %v3961_v43 = vadd.f32 %v8443_v34, %v3792_v25 }
 0x425   : > { %v2636_v21 = vmax.f32 %v2570_v47, 0.0  ;;  %3286 = vrot.lane.b32.xlu2 %v3224_v19, %s7303_s20  ;;  %4564 = vrot.lane.b32.xlu1 %v4529_v50, %s7303_s20  ;;  %v4128_v49 = vmax.f32 %v3996_v58, 0.0  ;;  %v2403_v33 = vadd.f32 %v9013_v28, %v2402_v4  ;;  %v6603_v28 = vld [vmem:[%s10089_s6 + $0x20] sm:$0xf]  ;;  %v3988_v50 = vadd.f32 %v8746_v37, %v3819_v8 }
 0x426   : > { %v9121_v63 = vpop.f32.mrf.mxu3  ;;  %v4532_v54 = vpack.c.b16 %v4475_v24, %v4474_v59  ;;  %v4183_v22 = vpack.c.bf16 %v4119_v42, %v4119_v42  ;;  %v6604_v60 = vor.u32 %v6848_v29, %v6603_v28  ;;  %v3560_v47 = vsel %vm1625_vm5, %v6793_v32, %v3281_v41 }
 0x427   : > { %v2700_v17 = vpack.c.bf16 %v2636_v21, %v2636_v21  ;;  %v4192_v15 = vpack.c.bf16 %v4128_v49, %v4128_v49  ;;  %v4182_v19 = vpack.c.bf16 %v4118_v31, %v4118_v31  ;;  %v3986_v30 = vadd.f32 %v8724_v48, %v3817_v14 }
 0x428   : > { %v6827_v57 = vld [vmem:[#allocation2 + $0x108] sm:$0xff]  ;;  %4948 = vmatpush.bf16.msra.mxu2 %v6604_v60  ;;  %v4115_v16 = vmax.f32 %v3963_v27, 0.0  ;;  %v3809_v34 = vadd.f32 %v8904_v6, %v8708_v53  ;;  %v4481_v37 = vunpack.c.l.b16 %v4193_v18  ;;  %v4114_v10 = vmax.f32 %v3961_v43, 0.0  ;;  %v10246_v43 = vld [vmem:[#allocation85_spill] sm:$0xff] }
 0x429   : > { %2775 = vst.msk [vmem:[#allocation2 + $0x110] sm:$0xf] %vm2702_vm6, %v2700_v17  ;;  %6582 = vmatmul.msk.bf16.gmra.mxu0 %vm1625_vm5, %v6827_v57  ;;  %v9162_v58 = vpop.f32.mrf.mxu0  ;;  %v4471_v4 = vunpack.c.l.b16 %v4183_v22  ;;  %v4125_v46 = vmax.f32 %v3988_v50, 0.0  ;;  %v3834_v24 = vadd.f32 %v8904_v6, %v8847_v7  ;;  %v4480_v48 = vunpack.c.l.b16 %v4192_v15  ;;  %v10242_v57 = vld [vmem:[#allocation88_spill] sm:$0xff]  ;;  %v10247_v50 = vld [vmem:[#allocation86_spill] sm:$0xff] }
 0x42a   : > { %v2571_v44 = vpop.f32.mrf.mxu2  ;;  %v3192_v11 = vunpack.c.l.b16 %v2700_v17  ;;  %v4470_v53 = vunpack.c.l.b16 %v4182_v19  ;;  %v4124_v8 = vmax.f32 %v3986_v30, 0.0  ;;  %v3832_v59 = vadd.f32 %v8904_v6, %v10242_v57  ;;  %v6605_v17 = vld [vmem:[%s10089_s6 + $0x30] sm:$0xf0]  ;;  %v10248_v30 = vld [vmem:[#allocation83_spill] sm:$0xff] }
 0x42b   : > { %v2572_v45 = vadd.f32 %v2571_v44, %v2403_v33  ;;  %v4179_v49 = vpack.c.bf16 %v4115_v16, %v4115_v16  ;;  %v10243_v33 = vld [vmem:[#allocation75_spill] sm:$0xff]  ;;  %v4535_v7 = vpack.c.b16 %v4481_v37, %v4480_v48  ;;  %v4189_v41 = vpack.c.bf16 %v4125_v46, %v4125_v46  ;;  %v10250_v57 = vld [vmem:[#allocation81_spill] sm:$0xff] }
 0x42c   : > { %v3978_v31 = vadd.f32 %v10243_v33, %v3809_v34  ;;  %v10244_v44 = vld [vmem:[#allocation87_spill] sm:$0xff]  ;;  %v4530_v18 = vpack.c.b16 %v4471_v4, %v4470_v53  ;;  %v4178_v32 = vpack.c.bf16 %v4114_v10, %v4114_v10  ;;  %v4188_v29 = vpack.c.bf16 %v4124_v8, %v4124_v8 }
 0x42d   : > { %v2637_v40 = vmax.f32 %v2572_v45, 0.0  ;;  %4570 = vrot.lane.b32.xlu1 %v4532_v54, %s7303_s20  ;;  %4560 = vrot.lane.b32.xlu2 %v8559_v61, %s7303_s20  ;;  %v3807_v61 = vadd.f32 %v8904_v6, %v8686_v52  ;;  %v6846_v52 = vld [vmem:[%s10089_s6 + $0x24] sm:$0xf]  ;;  %v4003_v27 = vadd.f32 %v10244_v44, %v3834_v24  ;;  %v10245_v54 = vld [vmem:[#allocation72_spill] sm:$0xff]  ;;  %v3824_v22 = vadd.f32 %v8904_v6, %v10246_v43 }
 0x42e   : > { %v9141_v62 = vpop.f32.mrf.mxu3  ;;  %v6608_v45 = vor.u32 %v6846_v52, %v6605_v17  ;;  %v4001_v60 = vadd.f32 %v10247_v50, %v3832_v59  ;;  %v4467_v15 = vunpack.c.l.b16 %v4179_v49  ;;  %v4477_v19 = vunpack.c.l.b16 %v4189_v41  ;;  %v10251_v17 = vld [vmem:[#allocation92_spill] sm:$0xff] }
 0x42f   : > { %v2701_v21 = vpack.c.bf16 %v2637_v40, %v2637_v40  ;;  %v3976_v28 = vadd.f32 %v10245_v54, %v3807_v61  ;;  %v4121_v40 = vmax.f32 %v3978_v31, 0.0  ;;  %v3822_v16 = vadd.f32 %v8904_v6, %v10248_v30  ;;  %v10249_v61 = vld [vmem:[#allocation82_spill] sm:$0xff] }
 0x430   : > { %5117 = vmatpush.bf16.msra.mxu1 %v6608_v45  ;;  %v4131_v34 = vmax.f32 %v4003_v27, 0.0  ;;  %v3872_v46 = vadd.f32 %v8904_v6, %v9095_v23  ;;  %v4476_v24 = vunpack.c.l.b16 %v4188_v29  ;;  %v3993_v48 = vadd.f32 %v10249_v61, %v3824_v22  ;;  %v10252_v45 = vld [vmem:[#allocation90_spill] sm:$0xff]  ;;  %v10253_v29 = vld [vmem:[#allocation91_spill] sm:$0xff] }
 0x431   : > { %2776 = vst.msk [vmem:[#allocation2 + $0x114] sm:$0xf] %vm2702_vm6, %v2701_v21  ;;  %v3193_v25 = vunpack.c.l.b16 %v2701_v21  ;;  %v4466_v21 = vunpack.c.l.b16 %v4178_v32  ;;  %v4120_v10 = vmax.f32 %v3976_v28, 0.0  ;;  %v9192_v4 = vpop.f32.mrf.mxu0  ;;  %v3991_v59 = vadd.f32 %v10250_v57, %v3822_v16 }
 0x432   : > { %3915 = vmatmul.bf16.gmra.mxu3 %v3560_v47  ;;  %v3874_v47 = vadd.f32 %v8904_v6, %v9121_v63  ;;  %v4195_v49 = vpack.c.bf16 %v4131_v34, %v4131_v34  ;;  %v4533_v33 = vpack.c.b16 %v4477_v19, %v4476_v24  ;;  %v4127_v23 = vmax.f32 %v3993_v48, 0.0  ;;  %v6847_v24 = vld [vmem:[%s10089_s6 + $0x2c] sm:$0xf] }
 0x433   : > { %v3225_v14 = vpack.c.b16 %v3193_v25, %v3192_v11  ;;  %v4130_v11 = vmax.f32 %v4001_v60, 0.0  ;;  %v4185_v25 = vpack.c.bf16 %v4121_v40, %v4121_v40  ;;  %v4528_v8 = vpack.c.b16 %v4467_v15, %v4466_v21 }
 0x434   : > { %v4043_v53 = vadd.f32 %v9067_v0, %v3874_v47  ;;  %v4184_v31 = vpack.c.bf16 %v4120_v10, %v4120_v10  ;;  %v3839_v0 = vadd.f32 %v8904_v6, %v10251_v17  ;;  %v4126_v44 = vmax.f32 %v3991_v59, 0.0  ;;  %v10254_v47 = vld [vmem:[#allocation89_spill] sm:$0xff] }
 0x435   : > { %3288 = vrot.lane.b32.xlu0 %v3225_v14, %s7303_s20  ;;  %4576 = vrot.lane.b32.xlu1 %v4535_v7, %s7303_s20  ;;  %v4041_v14 = vadd.f32 %v9052_v9, %v3872_v46  ;;  %v4194_v7 = vpack.c.bf16 %v4130_v11, %v4130_v11  ;;  %v4473_v52 = vunpack.c.l.b16 %v4185_v25  ;;  %v4483_v27 = vunpack.c.l.b16 %v4195_v49 }
 0x436   : > { %v9169_v42 = vpop.f32.mrf.mxu3  ;;  %4566 = vrot.lane.b32.xlu2 %v4530_v18, %s7303_s20  ;;  %v4147_v41 = vmax.f32 %v4043_v53, 0.0  ;;  %v4472_v18 = vunpack.c.l.b16 %v4184_v31  ;;  %v3837_v9 = vadd.f32 %v8904_v6, %v10252_v45  ;;  %v4191_v54 = vpack.c.bf16 %v4127_v23, %v4127_v23 }
 0x437   : > { %v4146_v32 = vmax.f32 %v4041_v14, 0.0  ;;  %v4008_v43 = vadd.f32 %v10253_v29, %v3839_v0  ;;  %v4190_v15 = vpack.c.bf16 %v4126_v44, %v4126_v44  ;;  %v3879_v46 = vadd.f32 %v8904_v6, %v9169_v42 }
 0x438   : > { %v6828_v37 = vld [vmem:[#allocation2 + $0x110] sm:$0xff]  ;;  %v4211_v50 = vpack.c.bf16 %v4147_v41, %v4147_v41  ;;  %v4531_v60 = vpack.c.b16 %v4473_v52, %v4472_v18  ;;  %v4006_v19 = vadd.f32 %v10254_v47, %v3837_v9  ;;  %v4479_v16 = vunpack.c.l.b16 %v4191_v54 }
 0x439   : > { %6583 = vmatmul.msk.bf16.gmra.mxu0 %vm1625_vm5, %v6828_v37  ;;  %v4057_v22 = vpop.f32.mrf.mxu0  ;;  %v4210_v30 = vpack.c.bf16 %v4146_v32, %v4146_v32  ;;  %v4133_v34 = vmax.f32 %v4008_v43, 0.0  ;;  %v3854_v37 = vadd.f32 %v8904_v6, %v9023_v3  ;;  %v4478_v10 = vunpack.c.l.b16 %v4190_v15 }
 0x43a   : > { %v4499_v21 = vunpack.c.l.b16 %v4211_v50  ;;  %v4132_v61 = vmax.f32 %v4006_v19, 0.0  ;;  %v3852_v48 = vadd.f32 %v8904_v6, %v9011_v35  ;;  %v3877_v3 = vadd.f32 %v8904_v6, %v9141_v62 }
 0x43b   : > { %v4498_v11 = vunpack.c.l.b16 %v4210_v30  ;;  %v4534_v53 = vpack.c.b16 %v4479_v16, %v4478_v10  ;;  %v4023_v57 = vadd.f32 %v8995_v26, %v3854_v37 }
 0x43c   : > { %v4196_v31 = vpack.c.bf16 %v4132_v61, %v4132_v61  ;;  %v4021_v35 = vadd.f32 %v8976_v51, %v3852_v48  ;;  %v4046_v62 = vadd.f32 %v9080_v1, %v3877_v3 }
 0x43d   : > { %4582 = vrot.lane.b32.xlu1 %v8953_v36, %s7303_s20  ;;  %4562 = vrot.lane.b32.xlu0 %v4528_v8, %s7303_s20  ;;  %v4482_v36 = vunpack.c.l.b16 %v4194_v7  ;;  %v4197_v8 = vpack.c.bf16 %v4133_v34, %v4133_v34  ;;  %v4544_v59 = vpack.c.b16 %v4499_v21, %v4498_v11  ;;  %v4139_v23 = vmax.f32 %v4023_v57, 0.0  ;;  %v6794_v34 = vld [vmem:[#allocation2 + $0xf0] sm:$0xff] }
 0x43e   : > { %v9198_v63 = vpop.f32.mrf.mxu3  ;;  %4572 = vrot.lane.b32.xlu2 %v4533_v33, %s7303_s20  ;;  %v4048_v33 = vadd.f32 %v9105_v2, %v3879_v46  ;;  %v4484_v52 = vunpack.c.l.b16 %v4196_v31  ;;  %v4138_v2 = vmax.f32 %v4021_v35, 0.0  ;;  %v4148_v17 = vmax.f32 %v4046_v62, 0.0  ;;  %v6829_v31 = vld [vmem:[#allocation2 + $0x118] sm:$0xff]  ;;  %v10256_v35 = vld [vmem:[#allocation76_spill] sm:$0xff] }
 0x43f   : > { %v4536_v40 = vpack.c.b16 %v4483_v27, %v4482_v36  ;;  %v4485_v26 = vunpack.c.l.b16 %v4197_v8  ;;  %v4203_v51 = vpack.c.bf16 %v4139_v23, %v4139_v23  ;;  %v9244_v27 = vld [vmem:[#allocation8 + $0x1] ss:$0 sm:$0xff] }
 0x440   : > { %v4149_v7 = vmax.f32 %v4048_v33, 0.0  ;;  %v4202_v45 = vpack.c.bf16 %v4138_v2, %v4138_v2  ;;  %v4212_v9 = vpack.c.bf16 %v4148_v17, %v4148_v17 }
 0x441   : > { %v4060_v14 = vpop.f32.mrf.mxu0  ;;  %v4537_v44 = vpack.c.b16 %v4485_v26, %v4484_v52 }
 0x442   : > { %v4213_v1 = vpack.c.bf16 %v4149_v7, %v4149_v7  ;;  %v4490_v50 = vunpack.c.l.b16 %v4202_v45 }
 0x444   : > { %v4501_v43 = vunpack.c.l.b16 %v4213_v1 }
 0x445   : > { %4588 = vrot.lane.b32.xlu1 %v9050_v39, %s7303_s20  ;;  %4568 = vrot.lane.b32.xlu0 %v4531_v60, %s7303_s20  ;;  %v6613_v39 = vld [vmem:[%s10089_s6 + $0x38] sm:$0xf0]  ;;  %v3882_v60 = vadd.f32 %v9244_v27, %v9198_v63 }
 0x446   : > { %v3883_v28 = vpop.f32.mrf.mxu3  ;;  %4578 = vrot.lane.b32.xlu2 %v4536_v40, %s7303_s20  ;;  %v9229_v25 = vor.u32 %v6847_v24, %v6613_v39  ;;  %v4500_v40 = vunpack.c.l.b16 %v4212_v9  ;;  %v6845_v39 = vld [vmem:[%s10089_s6 + $0x14] sm:$0xf0] }
 0x447   : > { %v3884_v54 = vadd.f32 %v9244_v27, %v3883_v28 }
 0x448   : > { %5455 = vmatpush.bf16.msra.mxu0 %v9229_v25  ;;  %v4545_v16 = vpack.c.b16 %v4501_v43, %v4500_v40 }
 0x449   : > { %v4062_v32 = vpop.f32.mrf.mxu0  ;;  %v4053_v47 = vadd.f32 %v9162_v58, %v3884_v54  ;;  %6584 = vmatmul.msk.bf16.gmra.mxu0 %vm1625_vm5, %v6829_v31 }
 0x44b   : > { %v4151_v37 = vmax.f32 %v4053_v47, 0.0 }
 0x44d   : > { %4594 = vrot.lane.b32.xlu1 %v4544_v59, %s7303_s20  ;;  %4574 = vrot.lane.b32.xlu0 %v4534_v53, %s7303_s20  ;;  %v4215_v61 = vpack.c.bf16 %v4151_v37, %v4151_v37  ;;  %v10255_v53 = vld [vmem:[#allocation69_spill] sm:$0xff] }
 0x44e   : > { %v3886_v42 = vpop.f32.mrf.mxu3  ;;  %4584 = vrot.lane.b32.xlu2 %v8970_v20, %s7303_s20  ;;  %v10259_v37 = vld [vmem:[#allocation13_spill] sm:$0xff] }
 0x44f   : > { %v3887_v49 = vadd.f32 %v8904_v6, %v3886_v42  ;;  %v4503_v42 = vunpack.c.l.b16 %v4215_v61 }
 0x451   : > { %v4056_v6 = vadd.f32 %v9192_v4, %v3887_v49  ;;  %v4491_v4 = vunpack.c.l.b16 %v4203_v51  ;;  %v4065_v46 = vpop.f32.mrf.mxu0  ;;  %v6587_v51 = vld [vmem:[%s10089_s6] sm:$0xf] }
 0x453   : > { %v4152_v41 = vmax.f32 %v4056_v6, 0.0  ;;  %v4540_v30 = vpack.c.b16 %v4491_v4, %v4490_v50  ;;  %v10257_v6 = vld [vmem:[#allocation84_spill] sm:$0xff]  ;;  %v6842_v4 = vld [vmem:[%s10089_s6 + $0x4] sm:$0xf] }
 0x455   : > { %4580 = vrot.lane.b32.xlu0 %v4537_v44, %s7303_s20  ;;  %v4216_v36 = vpack.c.bf16 %v4152_v41, %v4152_v41  ;;  %v6844_v41 = vld [vmem:[%s10089_s6 + $0xc] sm:$0xf0] }
 0x456   : > { %v3888_v0 = vpop.f32.mrf.mxu3  ;;  %4590 = vrot.lane.b32.xlu2 %v9072_v13, %s7303_s20  ;;  %v4051_v13 = vadd.f32 %v9128_v55, %v3882_v60  ;;  %v6595_v55 = vld [vmem:[%s10089_s6 + $0x8] sm:$0xf]  ;;  %v6588_v44 = vor.u32 %v6844_v41, %v6587_v51 }
 0x457   : > { %v3889_v18 = vadd.f32 %v9244_v27, %v3888_v0  ;;  %v6596_v48 = vor.u32 %v6845_v39, %v6595_v55 }
 0x458   : > { %v4150_v24 = vmax.f32 %v4051_v13, 0.0  ;;  %4949 = vmatpush.bf16.msra.mxu2 %v6588_v44 }
 0x459   : > { %v4058_v20 = vadd.f32 %v4057_v22, %v3889_v18  ;;  %v4504_v22 = vunpack.c.l.b16 %v4216_v36  ;;  %5287 = vmatpush.bf16.msra.mxu3 %v6596_v48  ;;  %v4067_v62 = vpop.f32.mrf.mxu0 }
 0x45a   : > { %v4214_v3 = vpack.c.bf16 %v4150_v24, %v4150_v24 }
 0x45b   : > { %v4153_v29 = vmax.f32 %v4058_v20, 0.0 }
 0x45c   : > { %v4502_v49 = vunpack.c.l.b16 %v4214_v3 }
 0x45d   : > { %v4217_v15 = vpack.c.bf16 %v4153_v29, %v4153_v29  ;;  %4586 = vrot.lane.b32.xlu0 %v4540_v30, %s7303_s20  ;;  %6882 = vmatpush.bf16.msrb.mxu3 %v10255_v53  ;;  %v10258_v30 = vld [vmem:[#allocation14_spill] sm:$0xff] }
 0x45e   : > { %4596 = vrot.lane.b32.xlu2 %v4545_v16, %s7303_s20  ;;  %v3891_v21 = vpop.f32.mrf.mxu3  ;;  %v4546_v26 = vpack.c.b16 %v4503_v42, %v4502_v49  ;;  %v905_v16 = vpack.c.bf16 %v10258_v30, %v10258_v30 }
 0x45f   : > { %v4505_v19 = vunpack.c.l.b16 %v4217_v15  ;;  %v3283_v10 = vpop.permute.xlu0 %3282  ;;  %v3892_v63 = vadd.f32 %v9244_v27, %v3891_v21 }
 0x460   : > { %v3564_v58 = vsel %vm1625_vm5, %v6794_v34, %v3283_v10 }
 0x461   : > { %v4547_v28 = vpack.c.b16 %v4505_v19, %v4504_v22  ;;  %3920 = vmatmul.bf16.gmra.mxu3 %v3564_v58  ;;  %v4061_v11 = vadd.f32 %v4060_v14, %v3892_v63  ;;  %v4070_v18 = vpop.f32.mrf.mxu0  ;;  %v4303_v58 = vunpack.c.l.b16 %v905_v16 }
 0x462   : > { %6883 = vmatpush.bf16.msrb.mxu3 %v10256_v35 }
 0x463   : > { %4600 = vrot.lane.b32.xlu1 %v4547_v28, %s7303_s20  ;;  %v4154_v57 = vmax.f32 %v4061_v11, 0.0  ;;  %v6795_v28 = vld [vmem:[#allocation2 + $0xf8] sm:$0xff] }
 0x465   : > { %4592 = vrot.lane.b32.xlu0 %v9108_v12, %s7303_s20  ;;  %v4218_v14 = vpack.c.bf16 %v4154_v57, %v4154_v57 }
 0x466   : > { %v3893_v8 = vpop.f32.mrf.mxu3  ;;  %6884 = vmatpush.bf16.msrb.mxu3 %v10257_v6 }
 0x467   : > { %v3894_v59 = vadd.f32 %v9244_v27, %v3893_v8  ;;  %v4506_v7 = vunpack.c.l.b16 %v4218_v14 }
 0x469   : > { %v4063_v33 = vadd.f32 %v4062_v32, %v3894_v59  ;;  %v6843_v32 = vld [vmem:[%s10089_s6 + $0xc] sm:$0xf]  ;;  %v4072_v60 = vpop.f32.mrf.mxu0 }
 0x46a   : > { %6885 = vmatpush.bf16.msrb.mxu3 %v8927_v5  ;;  %v6589_v5 = vld [vmem:[%s10089_s6 + $0x10] sm:$0xf0] }
 0x46b   : > { %v4155_v23 = vmax.f32 %v4063_v33, 0.0  ;;  %v6592_v54 = vor.u32 %v6842_v4, %v6589_v5 }
 0x46d   : > { %4598 = vrot.lane.b32.xlu0 %v4546_v26, %s7303_s20  ;;  %v4219_v12 = vpack.c.bf16 %v4155_v23, %v4155_v23  ;;  %5118 = vmatpush.bf16.msra.mxu1 %v6592_v54  ;;  %v6796_v23 = vld [vmem:[#allocation2 + $0x100] sm:$0xff] }
 0x46e   : > { %6886 = vmatpush.bf16.msrb.mxu3 %v9005_v56  ;;  %v6597_v56 = vld [vmem:[%s10089_s6 + $0x18] sm:$0xf0] }
 0x46f   : > { %v4507_v52 = vunpack.c.l.b16 %v4219_v12  ;;  %v6600_v29 = vor.u32 %v6843_v32, %v6597_v56  ;;  %v10261_v12 = vld [vmem:[#allocation15_spill] sm:$0xff] }
 0x470   : > { %v906_v6 = vpack.c.bf16 %v10261_v12, %v10261_v12 }
 0x471   : > { %v4548_v0 = vpack.c.b16 %v4507_v52, %v4506_v7  ;;  %5456 = vmatpush.bf16.msra.mxu0 %v6600_v29  ;;  %v4075_v10 = vpop.f32.mrf.mxu0 }
 0x472   : > { %6887 = vmatpush.bf16.msrb.mxu3 %v9064_v38  ;;  %v4304_v51 = vunpack.c.l.b16 %v906_v6 }
 0x473   : > { %4602 = vrot.lane.b32.xlu2 %v4548_v0, %s7303_s20 }
 0x475   : > { %v3896_v2 = vpop.f32.mrf.mxu3 }
 0x476   : > { %v3897_v17 = vadd.f32 %v9244_v27, %v3896_v2  ;;  %6888 = vmatpush.bf16.msrb.mxu3 %v9229_v25  ;;  %v904_v25 = vpack.c.bf16 %v10259_v37, %v10259_v37 }
 0x478   : > { %v4066_v1 = vadd.f32 %v4065_v46, %v3897_v17  ;;  %v4302_v55 = vunpack.c.l.b16 %v904_v25 }
 0x479   : > { %v4077_v33 = vpop.f32.mrf.mxu0 }
 0x47a   : > { %v4156_v45 = vmax.f32 %v4066_v1, 0.0  ;;  %6889 = vmatpush.bf16.msrb.mxu3 %v6600_v29  ;;  %v4366_v11 = vpack.c.b16 %v4303_v58, %v4302_v55  ;;  %v10262_v29 = vld [vmem:[#allocation17_spill] sm:$0xff] }
 0x47c   : > { %v4220_v43 = vpack.c.bf16 %v4156_v45, %v4156_v45 }
 0x47d   : > { %v3898_v20 = vpop.f32.mrf.mxu3 }
 0x47e   : > { %v3899_v9 = vadd.f32 %v9244_v27, %v3898_v20  ;;  %v4508_v47 = vunpack.c.l.b16 %v4220_v43  ;;  %v908_v43 = vpack.c.bf16 %v10262_v29, %v10262_v29  ;;  %v10269_v29 = vld [vmem:[#allocation24_spill] sm:$0xff] }
 0x47f   : > { %v3287_v31 = vpop.permute.xlu2 %3286 }
 0x480   : > { %v4068_v36 = vadd.f32 %v4067_v62, %v3899_v9  ;;  %v10260_v62 = vld [vmem:[#allocation16_spill] sm:$0xff]  ;;  %v3572_v7 = vsel %vm1625_vm5, %v6796_v23, %v3287_v31  ;;  %v4306_v30 = vunpack.c.l.b16 %v908_v43  ;;  %v915_v43 = vpack.c.bf16 %v10269_v29, %v10269_v29  ;;  %v10276_v29 = vld [vmem:[#allocation27_spill] sm:$0xff] }
 0x481   : > { %v907_v26 = vpack.c.bf16 %v10260_v62, %v10260_v62  ;;  %v4080_v44 = vpop.f32.mrf.mxu0 }
 0x482   : > { %v4157_v50 = vmax.f32 %v4068_v36, 0.0 }
 0x483   : > { %v4305_v2 = vunpack.c.l.b16 %v907_v26 }
 0x484   : > { %v4221_v15 = vpack.c.bf16 %v4157_v50, %v4157_v50  ;;  %v10263_v50 = vld [vmem:[#allocation18_spill] sm:$0xff] }
 0x485   : > { %v3901_v40 = vpop.f32.mrf.mxu3  ;;  %v4367_v1 = vpack.c.b16 %v4305_v2, %v4304_v51  ;;  %v10266_v51 = vld [vmem:[#allocation21_spill] sm:$0xff] }
 0x486   : > { %v4509_v22 = vunpack.c.l.b16 %v4221_v15  ;;  %v3902_v38 = vadd.f32 %v9244_v27, %v3901_v40  ;;  %v6797_v40 = vld [vmem:[#allocation2 + $0x108] sm:$0xff] }
 0x487   : > { %v3285_v34 = vpop.permute.xlu1 %3284 }
 0x488   : > { %v4549_v19 = vpack.c.b16 %v4509_v22, %v4508_v47  ;;  %v4071_v13 = vadd.f32 %v4070_v18, %v3902_v38  ;;  %v3568_v21 = vsel %vm1625_vm5, %v6795_v28, %v3285_v34  ;;  %v4561_v18 = vpop.permute.xlu2 %4560 }
 0x489   : > { %3925 = vmatmul.bf16.gmra.mxu3 %v3568_v21  ;;  %v9322_v9 = vsel %vm1625_vm5, %v4367_v1, %v4561_v18  ;;  %v4082_v47 = vpop.f32.mrf.mxu0 }
 0x48a   : > { %4604 = vrot.lane.b32.xlu0 %v4549_v19, %s7303_s20  ;;  %v4158_v46 = vmax.f32 %v4071_v13, 0.0 }
 0x48c   : > { %v4222_v61 = vpack.c.bf16 %v4158_v46, %v4158_v46 }
 0x48d   : > { %v3903_v63 = vpop.f32.mrf.mxu3 }
 0x48e   : > { %v3904_v24 = vadd.f32 %v9244_v27, %v3903_v63  ;;  %v4510_v57 = vunpack.c.l.b16 %v4222_v61 }
 0x48f   : > { %v4559_v3 = vpop.permute.xlu1 %4558 }
 0x490   : > { %v4073_v39 = vadd.f32 %v4072_v60, %v3904_v24  ;;  %v9308_v42 = vsel %vm1625_vm5, %v4366_v11, %v4559_v3  ;;  %v909_v60 = vpack.c.bf16 %v10263_v50, %v10263_v50  ;;  %v10264_v11 = vld [vmem:[#allocation19_spill] sm:$0xff]  ;;  %v4313_v50 = vunpack.c.l.b16 %v915_v43 }
 0x491   : > { %4950 = vmatmul.bf16.vlgmr.msra.gmra.mxu2 %v9308_v42  ;;  %5119 = vmatmul.bf16.vlgmr.msra.gmra.mxu1 %v9308_v42  ;;  %v910_v3 = vpack.c.bf16 %v10264_v11, %v10264_v11  ;;  %v922_v43 = vpack.c.bf16 %v10276_v29, %v10276_v29 }
 0x492   : > { %v4159_v48 = vmax.f32 %v4073_v39, 0.0  ;;  %5457 = vmatmul.bf16.vlgmr.msra.gmra.mxu0 %v9308_v42  ;;  %v4307_v16 = vunpack.c.l.b16 %v909_v60 }
 0x494   : > { %v4223_v53 = vpack.c.bf16 %v4159_v48, %v4159_v48  ;;  %v4368_v21 = vpack.c.b16 %v4307_v16, %v4306_v30  ;;  %v10271_v16 = vld [vmem:[#allocation26_spill] sm:$0xff] }
 0x495   : > { %v3906_v8 = vpop.f32.mrf.mxu3 }
 0x496   : > { %v4511_v59 = vunpack.c.l.b16 %v4223_v53  ;;  %v3907_v49 = vadd.f32 %v9244_v27, %v3906_v8  ;;  %v10265_v53 = vld [vmem:[#allocation20_spill] sm:$0xff] }
 0x497   : > { %v911_v8 = vpack.c.bf16 %v10265_v53, %v10265_v53 }
 0x498   : > { %v4550_v35 = vpack.c.b16 %v4511_v59, %v4510_v57  ;;  %v4076_v14 = vadd.f32 %v4075_v10, %v3907_v49  ;;  %v4085_v10 = vpop.f32.mrf.mxu0 }
 0x499   : > { %3930 = vmatmul.bf16.gmra.mxu3 %v3572_v7  ;;  %v4309_v31 = vunpack.c.l.b16 %v911_v8  ;;  %v10272_v8 = vld [vmem:[#allocation31_spill] sm:$0xff] }
 0x49a   : > { %4606 = vrot.lane.b32.xlu1 %v4550_v35, %s7303_s20  ;;  %v4160_v17 = vmax.f32 %v4076_v14, 0.0  ;;  %v4565_v14 = vpop.permute.xlu1 %4564 }
 0x49c   : > { %v4224_v45 = vpack.c.bf16 %v4160_v17, %v4160_v17 }
 0x49d   : > { %v3908_v52 = vpop.f32.mrf.mxu3 }
 0x49e   : > { %v3909_v0 = vadd.f32 %v9244_v27, %v3908_v52  ;;  %v4512_v32 = vunpack.c.l.b16 %v4224_v45 }
 0x4a0   : > { %v4078_v41 = vadd.f32 %v4077_v33, %v3909_v0  ;;  %v4087_v59 = vpop.f32.mrf.mxu0  ;;  %v4308_v33 = vunpack.c.l.b16 %v910_v3 }
 0x4a1   : > { %4955 = vmatmul.bf16.gmra.mxu2 %v9322_v9  ;;  %5124 = vmatmul.bf16.gmra.mxu1 %v9322_v9 }
 0x4a2   : > { %v4161_v20 = vmax.f32 %v4078_v41, 0.0  ;;  %5462 = vmatmul.bf16.gmra.mxu0 %v9322_v9  ;;  %v4369_v23 = vpack.c.b16 %v4309_v31, %v4308_v33  ;;  %v912_v41 = vpack.c.bf16 %v10266_v51, %v10266_v51 }
 0x4a4   : > { %v4225_v4 = vpack.c.bf16 %v4161_v20, %v4161_v20  ;;  %v4636_v7 = vsel %vm1625_vm5, %v4369_v23, %v4565_v14  ;;  %v4310_v1 = vunpack.c.l.b16 %v912_v41 }
 0x4a5   : > { %v3911_v5 = vpop.f32.mrf.mxu3 }
 0x4a6   : > { %v4513_v54 = vunpack.c.l.b16 %v4225_v4  ;;  %v3912_v56 = vadd.f32 %v9244_v27, %v3911_v5  ;;  %v4567_v4 = vpop.permute.xlu2 %4566 }
 0x4a7   : > { %v3289_v22 = vpop.permute.xlu0 %3288 }
 0x4a8   : > { %v4551_v36 = vpack.c.b16 %v4513_v54, %v4512_v32  ;;  %v4081_v15 = vadd.f32 %v4080_v44, %v3912_v56  ;;  %v3576_v38 = vsel %vm1625_vm5, %v6797_v40, %v3289_v22  ;;  %v4090_v2 = vpop.f32.mrf.mxu0  ;;  %v10267_v44 = vld [vmem:[#allocation22_spill] sm:$0xff]  ;;  %v10268_v56 = vld [vmem:[#allocation23_spill] sm:$0xff] }
 0x4a9   : > { %3935 = vmatmul.bf16.gmra.mxu3 %v3576_v38  ;;  %v913_v18 = vpack.c.bf16 %v10267_v44, %v10267_v44 }
 0x4aa   : > { %4608 = vrot.lane.b32.xlu2 %v4551_v36, %s7303_s20  ;;  %v4162_v13 = vmax.f32 %v4081_v15, 0.0  ;;  %v914_v36 = vpack.c.bf16 %v10268_v56, %v10268_v56 }
 0x4ab   : > { %v4311_v45 = vunpack.c.l.b16 %v913_v18 }
 0x4ac   : > { %v4226_v37 = vpack.c.bf16 %v4162_v13, %v4162_v13  ;;  %v917_v13 = vpack.c.bf16 %v10271_v16, %v10271_v16 }
 0x4ad   : > { %v3913_v19 = vpop.f32.mrf.mxu3  ;;  %v4370_v5 = vpack.c.b16 %v4311_v45, %v4310_v1 }
 0x4ae   : > { %v3914_v28 = vadd.f32 %v9244_v27, %v3913_v19  ;;  %v4514_v55 = vunpack.c.l.b16 %v4226_v37  ;;  %v10270_v19 = vld [vmem:[#allocation25_spill] sm:$0xff] }
 0x4af   : > { %v4563_v63 = vpop.permute.xlu0 %4562  ;;  %v4640_v32 = vsel %vm1625_vm5, %v4370_v5, %v4567_v4  ;;  %v916_v30 = vpack.c.bf16 %v10270_v19, %v10270_v19 }
 0x4b0   : > { %v4083_v34 = vadd.f32 %v4082_v47, %v3914_v28  ;;  %v4632_v46 = vsel %vm1625_vm5, %v4368_v21, %v4563_v63  ;;  %v4092_v20 = vpop.f32.mrf.mxu0 }
 0x4b1   : > { %4960 = vmatmul.bf16.gmra.mxu2 %v4632_v46  ;;  %5129 = vmatmul.bf16.gmra.mxu1 %v4632_v46  ;;  %v4314_v37 = vunpack.c.l.b16 %v916_v30 }
 0x4b2   : > { %v4163_v25 = vmax.f32 %v4083_v34, 0.0  ;;  %5467 = vmatmul.bf16.gmra.mxu0 %v4632_v46 }
 0x4b4   : > { %v4227_v58 = vpack.c.bf16 %v4163_v25, %v4163_v25  ;;  %v4315_v25 = vunpack.c.l.b16 %v917_v13 }
 0x4b5   : > { %v3916_v24 = vpop.f32.mrf.mxu3 }
 0x4b6   : > { %v4515_v39 = vunpack.c.l.b16 %v4227_v58  ;;  %v3917_v61 = vadd.f32 %v9244_v27, %v3916_v24 }
 0x4b7   : > { %v4569_v60 = vpop.permute.xlu0 %4568 }
 0x4b8   : > { %v4552_v48 = vpack.c.b16 %v4515_v39, %v4514_v55  ;;  %v4086_v57 = vadd.f32 %v4085_v10, %v3917_v61  ;;  %v9352_v54 = vpop.f32.mrf.mxu0  ;;  %v4571_v10 = vpop.permute.xlu1 %4570 }
 0x4b9   : > { %5288 = vmatmul.bf16.vlgmr.msra.gmra.mxu3 %v9308_v42 }
 0x4ba   : > { %4610 = vrot.lane.b32.xlu0 %v4552_v48, %s7303_s20  ;;  %v4164_v35 = vmax.f32 %v4086_v57, 0.0  ;;  %v918_v57 = vpack.c.bf16 %v10272_v8, %v10272_v8  ;;  %v10278_v8 = vld [vmem:[#allocation33_spill] sm:$0xff] }
 0x4bc   : > { %v4228_v12 = vpack.c.bf16 %v4164_v35, %v4164_v35  ;;  %v4316_v31 = vunpack.c.l.b16 %v918_v57  ;;  %v924_v57 = vpack.c.bf16 %v10278_v8, %v10278_v8  ;;  %v10285_v8 = vld [vmem:[#allocation30_spill] sm:$0xff] }
 0x4bd   : > { %v3918_v49 = vpop.f32.mrf.mxu3 }
 0x4be   : > { %v3919_v62 = vadd.f32 %v9244_v27, %v3918_v49  ;;  %v4516_v17 = vunpack.c.l.b16 %v4228_v12 }
 0x4bf   : > { %v4575_v51 = vpop.permute.xlu0 %4574 }
 0x4c0   : > { %v4088_v26 = vadd.f32 %v4087_v59, %v3919_v62  ;;  %v9358_v40 = vpop.f32.mrf.mxu0  ;;  %v10273_v59 = vld [vmem:[#allocation32_spill] sm:$0xff] }
 0x4c1   : > { %4965 = vmatmul.bf16.gmra.mxu2 %v4636_v7  ;;  %5134 = vmatmul.bf16.gmra.mxu1 %v4636_v7  ;;  %v919_v49 = vpack.c.bf16 %v10273_v59, %v10273_v59  ;;  %v10279_v59 = vld [vmem:[#allocation34_spill] sm:$0xff] }
 0x4c2   : > { %v4165_v6 = vmax.f32 %v4088_v26, 0.0  ;;  %5472 = vmatmul.bf16.gmra.mxu0 %v4636_v7  ;;  %v4573_v26 = vpop.permute.xlu2 %4572 }
 0x4c3   : > { %v4317_v35 = vunpack.c.l.b16 %v919_v49 }
 0x4c4   : > { %v4229_v52 = vpack.c.bf16 %v4165_v6, %v4165_v6  ;;  %v10274_v6 = vld [vmem:[#allocation35_spill] sm:$0xff] }
 0x4c5   : > { %v4373_v14 = vpack.c.b16 %v4317_v35, %v4316_v31 }
 0x4c6   : > { %v4517_v0 = vunpack.c.l.b16 %v4229_v52  ;;  %v10275_v52 = vld [vmem:[#allocation36_spill] sm:$0xff] }
 0x4c7   : > { %v9380_v23 = vsel %vm1625_vm5, %v4373_v14, %v4573_v26  ;;  %v4322_v14 = vunpack.c.l.b16 %v924_v57  ;;  %v929_v57 = vpack.c.bf16 %v10285_v8, %v10285_v8  ;;  %v10291_v8 = vld [vmem:[#allocation44_spill] sm:$0xff] }
 0x4c8   : > { %v4553_v42 = vpack.c.b16 %v4517_v0, %v4516_v17  ;;  %v9366_v28 = vpop.f32.mrf.mxu0 }
 0x4c9   : > { %5293 = vmatmul.bf16.gmra.mxu3 %v9322_v9  ;;  %v4312_v9 = vunpack.c.l.b16 %v914_v36 }
 0x4ca   : > { %4612 = vrot.lane.b32.xlu1 %v4553_v42, %s7303_s20 }
 0x4cb   : > { %v4371_v15 = vpack.c.b16 %v4313_v50, %v4312_v9  ;;  %v10277_v9 = vld [vmem:[#allocation28_spill] sm:$0xff] }
 0x4cd   : > { %v4644_v47 = vsel %vm1625_vm5, %v4371_v15, %v4569_v60 }
 0x4d0   : > { %v9370_v48 = vpop.f32.mrf.mxu0 }
 0x4d1   : > { %4970 = vmatmul.bf16.gmra.mxu2 %v4640_v32  ;;  %5139 = vmatmul.bf16.gmra.mxu1 %v4640_v32 }
 0x4d2   : > { %5477 = vmatmul.bf16.gmra.mxu0 %v4640_v32 }
 0x4d8   : > { %v9377_v62 = vpop.f32.mrf.mxu0 }
 0x4d9   : > { %5298 = vmatmul.bf16.gmra.mxu3 %v4632_v46  ;;  %v4372_v46 = vpack.c.b16 %v4315_v25, %v4314_v37 }
 0x4db   : > { %v4648_v55 = vsel %vm1625_vm5, %v4372_v46, %v4571_v10 }
 0x4e0   : > { %v9385_v12 = vpop.f32.mrf.mxu0 }
 0x4e1   : > { %4975 = vmatmul.bf16.gmra.mxu2 %v4644_v47  ;;  %5144 = vmatmul.bf16.gmra.mxu1 %v4644_v47 }
 0x4e2   : > { %5482 = vmatmul.bf16.gmra.mxu0 %v4644_v47 }
 0x4e4   : > { %v3921_v22 = vpop.f32.mrf.mxu3 }
 0x4e5   : > { %v3922_v38 = vadd.f32 %v9244_v27, %v3921_v22 }
 0x4e7   : > { %v4091_v34 = vadd.f32 %v4090_v2, %v3922_v38  ;;  %v921_v2 = vpack.c.bf16 %v10275_v52, %v10275_v52  ;;  %v4320_v38 = vunpack.c.l.b16 %v922_v43  ;;  %v10280_v43 = vld [vmem:[#allocation37_spill] sm:$0xff] }
 0x4e9   : > { %5303 = vmatmul.bf16.gmra.mxu3 %v4636_v7  ;;  %v4166_v63 = vmax.f32 %v4091_v34, 0.0  ;;  %v920_v7 = vpack.c.bf16 %v10274_v6, %v10274_v6  ;;  %v4319_v0 = vunpack.c.l.b16 %v921_v2  ;;  %v4577_v34 = vpop.permute.xlu1 %4576 }
 0x4eb   : > { %v4230_v39 = vpack.c.bf16 %v4166_v63, %v4166_v63  ;;  %v4318_v17 = vunpack.c.l.b16 %v920_v7 }
 0x4ec   : > { %v3923_v21 = vpop.f32.mrf.mxu3 }
 0x4ed   : > { %v3924_v58 = vadd.f32 %v9244_v27, %v3923_v21  ;;  %v4518_v3 = vunpack.c.l.b16 %v4230_v39  ;;  %v4374_v44 = vpack.c.b16 %v4319_v0, %v4318_v17  ;;  %v4579_v17 = vpop.permute.xlu2 %4578 }
 0x4ef   : > { %v4093_v24 = vadd.f32 %v4092_v20, %v3924_v58  ;;  %v9396_v45 = vsel %vm1625_vm5, %v4374_v44, %v4575_v51 }
 0x4f1   : > { %v4167_v61 = vmax.f32 %v4093_v24, 0.0  ;;  %4980 = vmatmul.bf16.gmra.mxu2 %v4648_v55  ;;  %5149 = vmatmul.bf16.gmra.mxu1 %v4648_v55 }
 0x4f2   : > { %5487 = vmatmul.bf16.gmra.mxu0 %v4648_v55 }
 0x4f3   : > { %v4231_v11 = vpack.c.bf16 %v4167_v61, %v4167_v61 }
 0x4f5   : > { %v4519_v53 = vunpack.c.l.b16 %v4231_v11 }
 0x4f7   : > { %v4554_v33 = vpack.c.b16 %v4519_v53, %v4518_v3 }
 0x4f9   : > { %4614 = vrot.lane.b32.xlu2 %v4554_v33, %s7303_s20  ;;  %5308 = vmatmul.bf16.gmra.mxu3 %v4640_v32 }
 0x501   : > { %4985 = vmatmul.bf16.gmra.mxu2 %v9380_v23  ;;  %5154 = vmatmul.bf16.gmra.mxu1 %v9380_v23 }
 0x502   : > { %5492 = vmatmul.bf16.gmra.mxu0 %v9380_v23 }
 0x509   : > { %5313 = vmatmul.bf16.gmra.mxu3 %v4644_v47 }
 0x50c   : > { %v3926_v42 = vpop.f32.mrf.mxu3 }
 0x50d   : > { %v3927_v41 = vadd.f32 %v9244_v27, %v3926_v42 }
 0x50e   : > { %v5120_v18 = vpop.f32.mrf.mxu1 }
 0x50f   : > { %v9393_v1 = vpop.f32.mrf.mxu0  ;;  %v4096_v20 = vadd.f32 %v9352_v54, %v3927_v41  ;;  %v923_v54 = vpack.c.bf16 %v10277_v9, %v10277_v9  ;;  %v926_v9 = vpack.c.bf16 %v10280_v43, %v10280_v43 }
 0x511   : > { %4990 = vmatmul.bf16.gmra.mxu2 %v9396_v45  ;;  %5159 = vmatmul.bf16.gmra.mxu1 %v9396_v45  ;;  %v4168_v32 = vmax.f32 %v4096_v20, 0.0  ;;  %v4321_v19 = vunpack.c.l.b16 %v923_v54  ;;  %v10281_v54 = vld [vmem:[#allocation38_spill] sm:$0xff] }
 0x512   : > { %5497 = vmatmul.bf16.gmra.mxu0 %v9396_v45 }
 0x513   : > { %v4232_v47 = vpack.c.bf16 %v4168_v32, %v4168_v32  ;;  %v4375_v10 = vpack.c.b16 %v4321_v19, %v4320_v38  ;;  %v4324_v19 = vunpack.c.l.b16 %v926_v9 }
 0x514   : > { %v3928_v4 = vpop.f32.mrf.mxu3  ;;  %v4951_v5 = vpop.f32.mrf.mxu2 }
 0x515   : > { %v3929_v56 = vadd.f32 %v9244_v27, %v3928_v4  ;;  %v5618_v36 = vpack.c.bf16 %v5120_v18, %v4951_v5  ;;  %v4520_v37 = vunpack.c.l.b16 %v4232_v47  ;;  %v9420_v24 = vsel %vm1625_vm5, %v4375_v10, %v4577_v34  ;;  %v4581_v34 = vpop.permute.xlu0 %4580 }
 0x516   : > { %v5122_v50 = vpop.f32.mrf.mxu1 }
 0x517   : > { %v4098_v60 = vadd.f32 %v9358_v40, %v3929_v56  ;;  %5746 = vst [vmem:[%s9410_s21] sm:$0xff] %v5618_v36  ;;  %v9413_v15 = vpop.f32.mrf.mxu0 }
 0x519   : > { %v4169_v22 = vmax.f32 %v4098_v60, 0.0  ;;  %5318 = vmatmul.bf16.gmra.mxu3 %v4648_v55 }
 0x51b   : > { %v4233_v30 = vpack.c.bf16 %v4169_v22, %v4169_v22 }
 0x51c   : > { %v3931_v16 = vpop.f32.mrf.mxu3  ;;  %v4953_v13 = vpop.f32.mrf.mxu2 }
 0x51d   : > { %v4521_v25 = vunpack.c.l.b16 %v4233_v30  ;;  %v3932_v40 = vadd.f32 %v9244_v27, %v3931_v16  ;;  %v5620_v21 = vpack.c.bf16 %v5122_v50, %v4953_v13 }
 0x51e   : > { %v5125_v63 = vpop.f32.mrf.mxu1 }
 0x51f   : > { %5751 = vst [vmem:[%s9410_s21 + $0x10] sm:$0xff] %v5620_v21  ;;  %v9417_v58 = vpop.f32.mrf.mxu0  ;;  %v4555_v46 = vpack.c.b16 %v4521_v25, %v4520_v37  ;;  %v4101_v55 = vadd.f32 %v9366_v28, %v3932_v40  ;;  %v925_v28 = vpack.c.bf16 %v10279_v59, %v10279_v59 }
 0x521   : > { %4616 = vrot.lane.b32.xlu0 %v4555_v46, %s7303_s20  ;;  %4995 = vmatmul.bf16.gmra.mxu2 %v9420_v24  ;;  %v4170_v11 = vmax.f32 %v4101_v55, 0.0  ;;  %v4323_v6 = vunpack.c.l.b16 %v925_v28 }
 0x522   : > { %5164 = vmatmul.bf16.gmra.mxu1 %v9420_v24  ;;  %5502 = vmatmul.bf16.gmra.mxu0 %v9420_v24 }
 0x523   : > { %v4234_v35 = vpack.c.bf16 %v4170_v11, %v4170_v11 }
 0x524   : > { %v3933_v39 = vpop.f32.mrf.mxu3  ;;  %v4956_v61 = vpop.f32.mrf.mxu2 }
 0x525   : > { %v3934_v3 = vadd.f32 %v9244_v27, %v3933_v39  ;;  %v5622_v53 = vpack.c.bf16 %v5125_v63, %v4956_v61  ;;  %v4522_v0 = vunpack.c.l.b16 %v4234_v35 }
 0x526   : > { %v5127_v49 = vpop.f32.mrf.mxu1 }
 0x527   : > { %v4103_v33 = vadd.f32 %v9370_v48, %v3934_v3  ;;  %5753 = vst [vmem:[%s9410_s21 + $0x20] sm:$0xff] %v5622_v53  ;;  %v9434_v31 = vpop.f32.mrf.mxu0  ;;  %v4376_v48 = vpack.c.b16 %v4323_v6, %v4322_v14  ;;  %v10284_v3 = vld [vmem:[#allocation29_spill] sm:$0xff] }
 0x528   : > { %v928_v53 = vpack.c.bf16 %v10284_v3, %v10284_v3  ;;  %v10290_v3 = vld [vmem:[#allocation43_spill] sm:$0xff] }
 0x529   : > { %v4171_v26 = vmax.f32 %v4103_v33, 0.0  ;;  %5323 = vmatmul.bf16.gmra.mxu3 %v9380_v23  ;;  %v9442_v23 = vsel %vm1625_vm5, %v4376_v48, %v4579_v17  ;;  %v4327_v33 = vunpack.c.l.b16 %v929_v57  ;;  %v10287_v48 = vld [vmem:[#allocation40_spill] sm:$0xff]  ;;  %v935_v57 = vpack.c.bf16 %v10291_v8, %v10291_v8  ;;  %v10297_v8 = vld [vmem:[#allocation50_spill] sm:$0xff] }
 0x52b   : > { %v4235_v7 = vpack.c.bf16 %v4171_v26, %v4171_v26  ;;  %v4583_v26 = vpop.permute.xlu1 %4582 }
 0x52c   : > { %v3936_v52 = vpop.f32.mrf.mxu3  ;;  %v4958_v2 = vpop.f32.mrf.mxu2 }
 0x52d   : > { %v4523_v42 = vunpack.c.l.b16 %v4235_v7  ;;  %v3937_v51 = vadd.f32 %v9244_v27, %v3936_v52  ;;  %v5624_v41 = vpack.c.bf16 %v5127_v49, %v4958_v2  ;;  %v4326_v49 = vunpack.c.l.b16 %v928_v53 }
 0x52e   : > { %v5130_v44 = vpop.f32.mrf.mxu1  ;;  %v934_v53 = vpack.c.bf16 %v10290_v3, %v10290_v3  ;;  %v10296_v3 = vld [vmem:[#allocation49_spill] sm:$0xff] }
 0x52f   : > { %5755 = vst [vmem:[%s9410_s21 + $0x30] sm:$0xff] %v5624_v41  ;;  %v9439_v18 = vpop.f32.mrf.mxu0  ;;  %v4556_v20 = vpack.c.b16 %v4523_v42, %v4522_v0  ;;  %v4106_v4 = vadd.f32 %v9377_v62, %v3937_v51  ;;  %v927_v62 = vpack.c.bf16 %v10281_v54, %v10281_v54  ;;  %v4378_v7 = vpack.c.b16 %v4327_v33, %v4326_v49  ;;  %v10286_v51 = vld [vmem:[#allocation39_spill] sm:$0xff] }
 0x530   : > { %v930_v41 = vpack.c.bf16 %v10286_v51, %v10286_v51  ;;  %v4332_v33 = vunpack.c.l.b16 %v934_v53  ;;  %v10292_v51 = vld [vmem:[#allocation45_spill] sm:$0xff]  ;;  %v940_v53 = vpack.c.bf16 %v10296_v3, %v10296_v3  ;;  %v10302_v3 = vld [vmem:[#allocation55_spill] sm:$0xff] }
 0x531   : > { %4618 = vrot.lane.b32.xlu1 %v4556_v20, %s7303_s20  ;;  %5000 = vmatmul.bf16.gmra.mxu2 %v9442_v23  ;;  %v4172_v56 = vmax.f32 %v4106_v4, 0.0  ;;  %v9494_v17 = vsel %vm1625_vm5, %v4378_v7, %v4583_v26 }
 0x532   : > { %5169 = vmatmul.bf16.gmra.mxu1 %v9442_v23  ;;  %5507 = vmatmul.bf16.gmra.mxu0 %v9442_v23 }
 0x533   : > { %v4236_v22 = vpack.c.bf16 %v4172_v56, %v4172_v56  ;;  %v4589_v26 = vpop.permute.xlu1 %4588 }
 0x534   : > { %v3938_v5 = vpop.f32.mrf.mxu3  ;;  %v4961_v32 = vpop.f32.mrf.mxu2 }
 0x535   : > { %v3939_v36 = vadd.f32 %v9244_v27, %v3938_v5  ;;  %v5626_v29 = vpack.c.bf16 %v5130_v44, %v4961_v32  ;;  %v4325_v27 = vunpack.c.l.b16 %v927_v62  ;;  %v4524_v37 = vunpack.c.l.b16 %v4236_v22 }
 0x536   : > { %v5132_v50 = vpop.f32.mrf.mxu1  ;;  %v931_v44 = vpack.c.bf16 %v10287_v48, %v10287_v48  ;;  %v4328_v5 = vunpack.c.l.b16 %v930_v41  ;;  %v936_v41 = vpack.c.bf16 %v10292_v51, %v10292_v51  ;;  %v10293_v48 = vld [vmem:[#allocation46_spill] sm:$0xff]  ;;  %v10298_v51 = vld [vmem:[#allocation51_spill] sm:$0xff] }
 0x537   : > { %v4108_v60 = vadd.f32 %v9385_v12, %v3939_v36  ;;  %5757 = vst [vmem:[%s9410_s21 + $0x40] sm:$0xff] %v5626_v29  ;;  %v9456_v47 = vpop.f32.mrf.mxu0  ;;  %v4585_v36 = vpop.permute.xlu2 %4584 }
 0x538   : > { %v4329_v32 = vunpack.c.l.b16 %v931_v44  ;;  %v937_v44 = vpack.c.bf16 %v10293_v48, %v10293_v48  ;;  %v10299_v48 = vld [vmem:[#allocation52_spill] sm:$0xff] }
 0x539   : > { %v4173_v38 = vmax.f32 %v4108_v60, 0.0  ;;  %5328 = vmatmul.bf16.gmra.mxu3 %v9396_v45  ;;  %v4377_v45 = vpack.c.b16 %v4325_v27, %v4324_v19  ;;  %v10289_v27 = vld [vmem:[#allocation42_spill] sm:$0xff] }
 0x53a   : > { %v4379_v9 = vpack.c.b16 %v4329_v32, %v4328_v5  ;;  %v4334_v32 = vunpack.c.l.b16 %v936_v41  ;;  %v942_v41 = vpack.c.bf16 %v10298_v51, %v10298_v51  ;;  %v10304_v51 = vld [vmem:[#allocation57_spill] sm:$0xff] }
 0x53b   : > { %v4237_v30 = vpack.c.bf16 %v4173_v38, %v4173_v38  ;;  %v9468_v55 = vsel %vm1625_vm5, %v4377_v45, %v4581_v34  ;;  %v10288_v38 = vld [vmem:[#allocation41_spill] sm:$0xff] }
 0x53c   : > { %v4963_v16 = vpop.f32.mrf.mxu2  ;;  %v5289_v13 = vpop.f32.mrf.mxu3  ;;  %v932_v19 = vpack.c.bf16 %v10288_v38, %v10288_v38  ;;  %v10294_v38 = vld [vmem:[#allocation47_spill] sm:$0xff] }
 0x53d   : > { %v4525_v25 = vunpack.c.l.b16 %v4237_v30  ;;  %v5628_v12 = vpack.c.bf16 %v5132_v50, %v4963_v16  ;;  %v5619_v40 = vpack.c.bf16 %v9393_v1, %v5289_v13  ;;  %v9519_v50 = vsel %vm1625_vm5, %v4379_v9, %v4585_v36 }
 0x53e   : > { %v5135_v10 = vpop.f32.mrf.mxu1  ;;  %v933_v30 = vpack.c.bf16 %v10289_v27, %v10289_v27  ;;  %v4330_v34 = vunpack.c.l.b16 %v932_v19  ;;  %v938_v19 = vpack.c.bf16 %v10294_v38, %v10294_v38  ;;  %v10295_v27 = vld [vmem:[#allocation48_spill] sm:$0xff]  ;;  %v10300_v38 = vld [vmem:[#allocation53_spill] sm:$0xff] }
 0x53f   : > { %5759 = vst [vmem:[%s9410_s21 + $0x50] sm:$0xff] %v5628_v12  ;;  %v9465_v63 = vpop.f32.mrf.mxu0  ;;  %v4557_v46 = vpack.c.b16 %v4525_v25, %v4524_v37  ;;  %v4587_v12 = vpop.permute.xlu0 %4586 }
 0x540   : > { %5750 = vst.msk [vmem:[%s9410_s21 + $0x8] sm:$0xff] %vm9460_vm9, %v5619_v40  ;;  %v4331_v37 = vunpack.c.l.b16 %v933_v30  ;;  %v4591_v36 = vpop.permute.xlu2 %4590  ;;  %v939_v30 = vpack.c.bf16 %v10295_v27, %v10295_v27  ;;  %v10301_v27 = vld [vmem:[#allocation54_spill] sm:$0xff] }
 0x541   : > { %4620 = vrot.lane.b32.xlu2 %v4557_v46, %s7303_s20  ;;  %5005 = vmatmul.bf16.gmra.mxu2 %v9468_v55  ;;  %s6875_s20 = sshll.u32 %s7368_s28, 10  ;;  %s5878_s28 = scalar_lea.sflag [#allocation5], %s318_s18 }
 0x542   : > { %5174 = vmatmul.bf16.gmra.mxu1 %v9468_v55  ;;  %5512 = vmatmul.bf16.gmra.mxu0 %v9468_v55  ;;  %s5890_s8 = scalar_lea.hbm %s10090_s7, %s6875_s20 }
 0x543   : > { %s5893_s22 = sshll.u32 %s5890_s8, 4  ;;  %s5894_s22 = int_to_ptr.hbm [resolvable:$true] %s5893_s22 }
 0x544   : > { %v4966_v1 = vpop.f32.mrf.mxu2  ;;  %v5291_v39 = vpop.f32.mrf.mxu3  ;;  %s7240_s14 = sshra.s32 %s5894_s22, 4  ;;  %s7241_s14 = int_to_ptr.hbm [resolvable:$true] %s7240_s14 }
 0x545   : > { %v5630_v61 = vpack.c.bf16 %v5135_v10, %v4966_v1  ;;  %v5621_v11 = vpack.c.bf16 %v9413_v15, %v5291_v39  ;;  %v4380_v10 = vpack.c.b16 %v4331_v37, %v4330_v34  ;;  %v4336_v37 = vunpack.c.l.b16 %v938_v19  ;;  %s7242_s15 = scalar_lea.hbm %s7241_s14, 1024  ;;  %p7247_p3 = scmp.lt.s32.totalorder %s7241_s14, %s10090_s7 }
 0x546   : > { %v5137_v59 = vpop.f32.mrf.mxu1  ;;  %v944_v19 = vpack.c.bf16 %v10300_v38, %v10300_v38  ;;  %v10306_v38 = vld [vmem:[#allocation59_spill] sm:$0xff]  ;;  %p7243_p0 = scmp.ne.s32.totalorder %s7241_s14, %s7242_s15  ;;  %p7248_p4 = scmp.lt.s32.totalorder %s7246_s16, %s7242_s15 }
 0x547   : > { %5761 = vst [vmem:[%s9410_s21 + $0x60] sm:$0xff] %v5630_v61  ;;  %v9483_v28 = vpop.f32.mrf.mxu0  ;;  %v9544_v39 = vsel %vm1625_vm5, %v4380_v10, %v4587_v12  ;;  %v4593_v12 = vpop.permute.xlu0 %4592 }
 0x548   : > { %5752 = vst.msk [vmem:[%s9410_s21 + $0x18] sm:$0xff] %vm9460_vm9, %v5621_v11  ;;  %p7244_p1 = pnand %p7243_p0, %p7385_p5  ;;  %p7249_p7 = por %p7248_p4, %p7247_p3 }
 0x549   : > { %5333 = vmatmul.bf16.gmra.mxu3 %v9420_v24 }
 0x54a   : > { %p7245_p2 = pneg %p7244_p1 }
 0x54c   : > { %v4968_v15 = vpop.f32.mrf.mxu2  ;;  %v5294_v35 = vpop.f32.mrf.mxu3  ;;  %p7250_p8 = pnand %p7249_p7, %p7245_p2 }
 0x54d   : > { %v5632_v14 = vpack.c.bf16 %v5137_v59, %v4968_v15  ;;  %v5623_v6 = vpack.c.bf16 %v9417_v58, %v5294_v35  ;;  %v4333_v15 = vunpack.c.l.b16 %v935_v57  ;;  %v941_v57 = vpack.c.bf16 %v10297_v8, %v10297_v8  ;;  %v10303_v8 = vld [vmem:[#allocation56_spill] sm:$0xff] }
 0x54e   : > { %v5140_v52 = vpop.f32.mrf.mxu1 }
 0x54f   : > { %5763 = vst [vmem:[%s9410_s21 + $0x70] sm:$0xff] %v5632_v14  ;;  %v9491_v2 = vpop.f32.mrf.mxu0  ;;  %v4381_v7 = vpack.c.b16 %v4333_v15, %v4332_v33  ;;  %v4338_v15 = vunpack.c.l.b16 %v940_v53  ;;  %v946_v53 = vpack.c.bf16 %v10302_v3, %v10302_v3  ;;  %v10308_v3 = vld [vmem:[#allocation61_spill] sm:$0xff] }
 0x550   : > { %5754 = vst.msk [vmem:[%s9410_s21 + $0x28] sm:$0xff] %vm9460_vm9, %v5623_v6 }
 0x551   : > { %5010 = vmatmul.bf16.gmra.mxu2 %v9494_v17 }
 0x552   : > { %5179 = vmatmul.bf16.gmra.mxu1 %v9494_v17  ;;  %5517 = vmatmul.bf16.gmra.mxu0 %v9494_v17 }
 0x554   : > { %v4971_v58 = vpop.f32.mrf.mxu2  ;;  %v5296_v24 = vpop.f32.mrf.mxu3 }
 0x555   : > { %v5634_v0 = vpack.c.bf16 %v5140_v52, %v4971_v58  ;;  %v5625_v42 = vpack.c.bf16 %v9434_v31, %v5296_v24  ;;  %v9569_v24 = vsel %vm1625_vm5, %v4381_v7, %v4589_v26  ;;  %v4595_v26 = vpop.permute.xlu1 %4594 }
 0x556   : > { %v5142_v20 = vpop.f32.mrf.mxu1 }
 0x557   : > { %5765 = vst [vmem:[%s9410_s21 + $0x80] sm:$0xff] %v5634_v0  ;;  %v9508_v4 = vpop.f32.mrf.mxu0 }
 0x558   : > { %5756 = vst.msk [vmem:[%s9410_s21 + $0x38] sm:$0xff] %vm9460_vm9, %v5625_v42 }
 0x559   : > { %5338 = vmatmul.bf16.gmra.mxu3 %v9442_v23 }
 0x55c   : > { %v4973_v31 = vpop.f32.mrf.mxu2  ;;  %v5299_v56 = vpop.f32.mrf.mxu3 }
 0x55d   : > { %v5636_v29 = vpack.c.bf16 %v5142_v20, %v4973_v31  ;;  %v5627_v43 = vpack.c.bf16 %v9439_v18, %v5299_v56  ;;  %v4335_v31 = vunpack.c.l.b16 %v937_v44  ;;  %v943_v44 = vpack.c.bf16 %v10299_v48, %v10299_v48  ;;  %v10305_v48 = vld [vmem:[#allocation58_spill] sm:$0xff] }
 0x55e   : > { %v5145_v54 = vpop.f32.mrf.mxu1 }
 0x55f   : > { %5767 = vst [vmem:[%s9410_s21 + $0x90] sm:$0xff] %v5636_v29  ;;  %v9516_v62 = vpop.f32.mrf.mxu0  ;;  %v4382_v9 = vpack.c.b16 %v4335_v31, %v4334_v32  ;;  %v4340_v31 = vunpack.c.l.b16 %v942_v41  ;;  %v948_v41 = vpack.c.bf16 %v10304_v51, %v10304_v51  ;;  %v10310_v51 = vld [vmem:[#allocation63_spill] sm:$0xff] }
 0x560   : > { %5758 = vst.msk [vmem:[%s9410_s21 + $0x48] sm:$0xff] %vm9460_vm9, %v5627_v43 }
 0x561   : > { %5015 = vmatmul.bf16.gmra.mxu2 %v9519_v50 }
 0x562   : > { %5184 = vmatmul.bf16.gmra.mxu1 %v9519_v50  ;;  %5522 = vmatmul.bf16.gmra.mxu0 %v9519_v50 }
 0x564   : > { %v4976_v18 = vpop.f32.mrf.mxu2  ;;  %v5301_v23 = vpop.f32.mrf.mxu3 }
 0x565   : > { %v5638_v60 = vpack.c.bf16 %v5145_v54, %v4976_v18  ;;  %v5629_v22 = vpack.c.bf16 %v9456_v47, %v5301_v23  ;;  %v9594_v23 = vsel %vm1625_vm5, %v4382_v9, %v4591_v36  ;;  %v4597_v36 = vpop.permute.xlu2 %4596 }
 0x566   : > { %v5147_v16 = vpop.f32.mrf.mxu1 }
 0x567   : > { %5769 = vst [vmem:[%s9410_s21 + $0xa0] sm:$0xff] %v5638_v60  ;;  %v9533_v13 = vpop.f32.mrf.mxu0 }
 0x568   : > { %5760 = vst.msk [vmem:[%s9410_s21 + $0x58] sm:$0xff] %vm9460_vm9, %v5629_v22 }
 0x569   : > { %5343 = vmatmul.bf16.gmra.mxu3 %v9468_v55 }
 0x56c   : > { %v4978_v47 = vpop.f32.mrf.mxu2  ;;  %v5304_v25 = vpop.f32.mrf.mxu3 }
 0x56d   : > { %v5640_v40 = vpack.c.bf16 %v5147_v16, %v4978_v47  ;;  %v5631_v45 = vpack.c.bf16 %v9465_v63, %v5304_v25  ;;  %v4337_v47 = vunpack.c.l.b16 %v939_v30  ;;  %v945_v30 = vpack.c.bf16 %v10301_v27, %v10301_v27  ;;  %v10307_v27 = vld [vmem:[#allocation60_spill] sm:$0xff] }
 0x56e   : > { %v5150_v46 = vpop.f32.mrf.mxu1 }
 0x56f   : > { %5771 = vst [vmem:[%s9410_s21 + $0xb0] sm:$0xff] %v5640_v40  ;;  %v9541_v1 = vpop.f32.mrf.mxu0  ;;  %v4383_v10 = vpack.c.b16 %v4337_v47, %v4336_v37  ;;  %v4342_v47 = vunpack.c.l.b16 %v944_v19  ;;  %v950_v19 = vpack.c.bf16 %v10306_v38, %v10306_v38  ;;  %v10312_v38 = vld [vmem:[#allocation65_spill] sm:$0xff] }
 0x570   : > { %5762 = vst.msk [vmem:[%s9410_s21 + $0x68] sm:$0xff] %vm9460_vm9, %v5631_v45 }
 0x571   : > { %5020 = vmatmul.bf16.gmra.mxu2 %v9544_v39 }
 0x572   : > { %5189 = vmatmul.bf16.gmra.mxu1 %v9544_v39  ;;  %5527 = vmatmul.bf16.gmra.mxu0 %v9544_v39 }
 0x574   : > { %v4981_v63 = vpop.f32.mrf.mxu2  ;;  %v5306_v55 = vpop.f32.mrf.mxu3 }
 0x575   : > { %v5642_v61 = vpack.c.bf16 %v5150_v46, %v4981_v63  ;;  %v5633_v11 = vpack.c.bf16 %v9483_v28, %v5306_v55  ;;  %v9619_v55 = vsel %vm1625_vm5, %v4383_v10, %v4593_v12  ;;  %v4599_v12 = vpop.permute.xlu0 %4598 }
 0x576   : > { %v5152_v59 = vpop.f32.mrf.mxu1 }
 0x577   : > { %5773 = vst [vmem:[%s9410_s21 + $0xc0] sm:$0xff] %v5642_v61  ;;  %v9558_v49 = vpop.f32.mrf.mxu0 }
 0x578   : > { %5764 = vst.msk [vmem:[%s9410_s21 + $0x78] sm:$0xff] %vm9460_vm9, %v5633_v11 }
 0x579   : > { %5348 = vmatmul.bf16.gmra.mxu3 %v9494_v17 }
 0x57c   : > { %v4983_v28 = vpop.f32.mrf.mxu2  ;;  %v5309_v35 = vpop.f32.mrf.mxu3 }
 0x57d   : > { %v5644_v14 = vpack.c.bf16 %v5152_v59, %v4983_v28  ;;  %v5635_v6 = vpack.c.bf16 %v9491_v2, %v5309_v35  ;;  %v4339_v28 = vunpack.c.l.b16 %v941_v57  ;;  %v947_v57 = vpack.c.bf16 %v10303_v8, %v10303_v8  ;;  %v10309_v8 = vld [vmem:[#allocation62_spill] sm:$0xff] }
 0x57e   : > { %v5155_v52 = vpop.f32.mrf.mxu1 }
 0x57f   : > { %5775 = vst [vmem:[%s9410_s21 + $0xd0] sm:$0xff] %v5644_v14  ;;  %v9566_v58 = vpop.f32.mrf.mxu0  ;;  %v4384_v7 = vpack.c.b16 %v4339_v28, %v4338_v15  ;;  %v4344_v28 = vunpack.c.l.b16 %v946_v53  ;;  %v952_v53 = vpack.c.bf16 %v10308_v3, %v10308_v3  ;;  %v10314_v3 = vld [vmem:[#allocation67_spill] sm:$0xff] }
 0x580   : > { %5766 = vst.msk [vmem:[%s9410_s21 + $0x88] sm:$0xff] %vm9460_vm9, %v5635_v6 }
 0x581   : > { %5025 = vmatmul.bf16.gmra.mxu2 %v9569_v24 }
 0x582   : > { %5194 = vmatmul.bf16.gmra.mxu1 %v9569_v24  ;;  %5532 = vmatmul.bf16.gmra.mxu0 %v9569_v24 }
 0x584   : > { %v4986_v2 = vpop.f32.mrf.mxu2  ;;  %v5311_v17 = vpop.f32.mrf.mxu3 }
 0x585   : > { %v5646_v0 = vpack.c.bf16 %v5155_v52, %v4986_v2  ;;  %v5637_v42 = vpack.c.bf16 %v9508_v4, %v5311_v17  ;;  %v9644_v17 = vsel %vm1625_vm5, %v4384_v7, %v4595_v26  ;;  %v4601_v26 = vpop.permute.xlu1 %4600 }
 0x586   : > { %v5157_v20 = vpop.f32.mrf.mxu1 }
 0x587   : > { %5777 = vst [vmem:[%s9410_s21 + $0xe0] sm:$0xff] %v5646_v0  ;;  %v9583_v5 = vpop.f32.mrf.mxu0 }
 0x588   : > { %5768 = vst.msk [vmem:[%s9410_s21 + $0x98] sm:$0xff] %vm9460_vm9, %v5637_v42 }
 0x589   : > { %5353 = vmatmul.bf16.gmra.mxu3 %v9519_v50 }
 0x58c   : > { %v4988_v4 = vpop.f32.mrf.mxu2  ;;  %v5314_v56 = vpop.f32.mrf.mxu3 }
 0x58d   : > { %v5648_v29 = vpack.c.bf16 %v5157_v20, %v4988_v4  ;;  %v5639_v43 = vpack.c.bf16 %v9516_v62, %v5314_v56  ;;  %v4341_v4 = vunpack.c.l.b16 %v943_v44  ;;  %v949_v44 = vpack.c.bf16 %v10305_v48, %v10305_v48  ;;  %v10311_v48 = vld [vmem:[#allocation64_spill] sm:$0xff] }
 0x58e   : > { %v5160_v54 = vpop.f32.mrf.mxu1 }
 0x58f   : > { %5779 = vst [vmem:[%s9410_s21 + $0xf0] sm:$0xff] %v5648_v29  ;;  %v9591_v18 = vpop.f32.mrf.mxu0  ;;  %v4385_v9 = vpack.c.b16 %v4341_v4, %v4340_v31  ;;  %v4346_v4 = vunpack.c.l.b16 %v948_v41  ;;  %v954_v41 = vpack.c.bf16 %v10310_v51, %v10310_v51  ;;  %v10316_v51 = vld [vmem:[#allocation70_spill] sm:$0xff] }
 0x590   : > { %5770 = vst.msk [vmem:[%s9410_s21 + $0xa8] sm:$0xff] %vm9460_vm9, %v5639_v43 }
 0x591   : > { %5030 = vmatmul.bf16.gmra.mxu2 %v9594_v23 }
 0x592   : > { %5199 = vmatmul.bf16.gmra.mxu1 %v9594_v23  ;;  %5537 = vmatmul.bf16.gmra.mxu0 %v9594_v23 }
 0x594   : > { %v4991_v62 = vpop.f32.mrf.mxu2  ;;  %v5316_v50 = vpop.f32.mrf.mxu3 }
 0x595   : > { %v5650_v60 = vpack.c.bf16 %v5160_v54, %v4991_v62  ;;  %v5641_v22 = vpack.c.bf16 %v9533_v13, %v5316_v50  ;;  %v9669_v50 = vsel %vm1625_vm5, %v4385_v9, %v4597_v36  ;;  %v4603_v36 = vpop.permute.xlu2 %4602 }
 0x596   : > { %v5162_v16 = vpop.f32.mrf.mxu1 }
 0x597   : > { %5781 = vst [vmem:[%s9410_s21 + $0x100] sm:$0xff] %v5650_v60  ;;  %v9608_v34 = vpop.f32.mrf.mxu0 }
 0x598   : > { %5772 = vst.msk [vmem:[%s9410_s21 + $0xb8] sm:$0xff] %vm9460_vm9, %v5641_v22 }
 0x599   : > { %5358 = vmatmul.bf16.gmra.mxu3 %v9544_v39 }
 0x59c   : > { %v4993_v13 = vpop.f32.mrf.mxu2  ;;  %v5319_v25 = vpop.f32.mrf.mxu3 }
 0x59d   : > { %v5652_v40 = vpack.c.bf16 %v5162_v16, %v4993_v13  ;;  %v5643_v45 = vpack.c.bf16 %v9541_v1, %v5319_v25  ;;  %v4343_v13 = vunpack.c.l.b16 %v945_v30  ;;  %v951_v30 = vpack.c.bf16 %v10307_v27, %v10307_v27  ;;  %v10313_v27 = vld [vmem:[#allocation66_spill] sm:$0xff] }
 0x59f   : > { %5783 = vst [vmem:[%s9410_s21 + $0x110] sm:$0xff] %v5652_v40  ;;  %v5165_v46 = vpop.f32.mrf.mxu1  ;;  %v9616_v63 = vpop.f32.mrf.mxu0  ;;  %v4386_v10 = vpack.c.b16 %v4343_v13, %v4342_v47  ;;  %v4348_v13 = vunpack.c.l.b16 %v950_v19  ;;  %v956_v19 = vpack.c.bf16 %v10312_v38, %v10312_v38  ;;  %v10318_v38 = vld [vmem:[#allocation73_spill] sm:$0xff] }
 0x5a0   : > { %5774 = vst.msk [vmem:[%s9410_s21 + $0xc8] sm:$0xff] %vm9460_vm9, %v5643_v45 }
 0x5a1   : > { %5035 = vmatmul.bf16.gmra.mxu2 %v9619_v55 }
 0x5a2   : > { %5204 = vmatmul.bf16.gmra.mxu1 %v9619_v55  ;;  %5542 = vmatmul.bf16.gmra.mxu0 %v9619_v55 }
 0x5a4   : > { %v4996_v1 = vpop.f32.mrf.mxu2  ;;  %v5321_v39 = vpop.f32.mrf.mxu3 }
 0x5a5   : > { %v5654_v61 = vpack.c.bf16 %v5165_v46, %v4996_v1  ;;  %v5645_v11 = vpack.c.bf16 %v9558_v49, %v5321_v39  ;;  %v9694_v39 = vsel %vm1625_vm5, %v4386_v10, %v4599_v12  ;;  %v4605_v12 = vpop.permute.xlu0 %4604 }
 0x5a7   : > { %5785 = vst [vmem:[%s9410_s21 + $0x120] sm:$0xff] %v5654_v61  ;;  %v5167_v59 = vpop.f32.mrf.mxu1  ;;  %v9633_v33 = vpop.f32.mrf.mxu0 }
 0x5a8   : > { %5776 = vst.msk [vmem:[%s9410_s21 + $0xd8] sm:$0xff] %vm9460_vm9, %v5645_v11 }
 0x5a9   : > { %5363 = vmatmul.bf16.gmra.mxu3 %v9569_v24 }
 0x5ac   : > { %v4998_v49 = vpop.f32.mrf.mxu2  ;;  %v5324_v35 = vpop.f32.mrf.mxu3 }
 0x5ad   : > { %v5656_v14 = vpack.c.bf16 %v5167_v59, %v4998_v49  ;;  %v5647_v6 = vpack.c.bf16 %v9566_v58, %v5324_v35  ;;  %v4345_v49 = vunpack.c.l.b16 %v947_v57  ;;  %v953_v57 = vpack.c.bf16 %v10309_v8, %v10309_v8  ;;  %v10315_v8 = vld [vmem:[#allocation68_spill] sm:$0xff] }
 0x5af   : > { %5787 = vst [vmem:[%s9410_s21 + $0x130] sm:$0xff] %v5656_v14  ;;  %v5170_v52 = vpop.f32.mrf.mxu1  ;;  %v9641_v2 = vpop.f32.mrf.mxu0  ;;  %v4387_v7 = vpack.c.b16 %v4345_v49, %v4344_v28  ;;  %v4350_v49 = vunpack.c.l.b16 %v952_v53  ;;  %v958_v53 = vpack.c.bf16 %v10314_v3, %v10314_v3  ;;  %v10320_v3 = vld [vmem:[#allocation77_spill] sm:$0xff] }
 0x5b0   : > { %5778 = vst.msk [vmem:[%s9410_s21 + $0xe8] sm:$0xff] %vm9460_vm9, %v5647_v6 }
 0x5b1   : > { %5040 = vmatmul.bf16.gmra.mxu2 %v9644_v17 }
 0x5b2   : > { %5209 = vmatmul.bf16.gmra.mxu1 %v9644_v17  ;;  %5547 = vmatmul.bf16.gmra.mxu0 %v9644_v17 }
 0x5b4   : > { %v5001_v58 = vpop.f32.mrf.mxu2  ;;  %v5326_v24 = vpop.f32.mrf.mxu3 }
 0x5b5   : > { %v5658_v0 = vpack.c.bf16 %v5170_v52, %v5001_v58  ;;  %v5649_v42 = vpack.c.bf16 %v9583_v5, %v5326_v24  ;;  %v9719_v24 = vsel %vm1625_vm5, %v4387_v7, %v4601_v26  ;;  %v4607_v26 = vpop.permute.xlu1 %4606 }
 0x5b7   : > { %5789 = vst [vmem:[%s9410_s21 + $0x140] sm:$0xff] %v5658_v0  ;;  %v5172_v20 = vpop.f32.mrf.mxu1  ;;  %v9658_v32 = vpop.f32.mrf.mxu0 }
 0x5b8   : > { %5780 = vst.msk [vmem:[%s9410_s21 + $0xf8] sm:$0xff] %vm9460_vm9, %v5649_v42 }
 0x5b9   : > { %5368 = vmatmul.bf16.gmra.mxu3 %v9594_v23 }
 0x5bc   : > { %v5003_v5 = vpop.f32.mrf.mxu2  ;;  %v5329_v56 = vpop.f32.mrf.mxu3 }
 0x5bd   : > { %v5660_v29 = vpack.c.bf16 %v5172_v20, %v5003_v5  ;;  %v5651_v43 = vpack.c.bf16 %v9591_v18, %v5329_v56  ;;  %v4347_v5 = vunpack.c.l.b16 %v949_v44  ;;  %v955_v44 = vpack.c.bf16 %v10311_v48, %v10311_v48  ;;  %v10317_v48 = vld [vmem:[#allocation71_spill] sm:$0xff] }
 0x5bf   : > { %5791 = vst [vmem:[%s9410_s21 + $0x150] sm:$0xff] %v5660_v29  ;;  %v5175_v54 = vpop.f32.mrf.mxu1  ;;  %v9666_v62 = vpop.f32.mrf.mxu0  ;;  %v4388_v9 = vpack.c.b16 %v4347_v5, %v4346_v4  ;;  %v4352_v5 = vunpack.c.l.b16 %v954_v41  ;;  %v960_v41 = vpack.c.bf16 %v10316_v51, %v10316_v51 }
 0x5c0   : > { %5782 = vst.msk [vmem:[%s9410_s21 + $0x108] sm:$0xff] %vm9460_vm9, %v5651_v43 }
 0x5c1   : > { %5045 = vmatmul.bf16.gmra.mxu2 %v9669_v50 }
 0x5c2   : > { %5214 = vmatmul.bf16.gmra.mxu1 %v9669_v50  ;;  %5552 = vmatmul.bf16.gmra.mxu0 %v9669_v50 }
 0x5c4   : > { %v5006_v18 = vpop.f32.mrf.mxu2  ;;  %v5331_v23 = vpop.f32.mrf.mxu3 }
 0x5c5   : > { %v5662_v60 = vpack.c.bf16 %v5175_v54, %v5006_v18  ;;  %v5653_v22 = vpack.c.bf16 %v9608_v34, %v5331_v23  ;;  %v9744_v23 = vsel %vm1625_vm5, %v4388_v9, %v4603_v36  ;;  %v4609_v36 = vpop.permute.xlu2 %4608 }
 0x5c7   : > { %5793 = vst [vmem:[%s9410_s21 + $0x160] sm:$0xff] %v5662_v60  ;;  %v5177_v16 = vpop.f32.mrf.mxu1  ;;  %v9683_v37 = vpop.f32.mrf.mxu0 }
 0x5c8   : > { %5784 = vst.msk [vmem:[%s9410_s21 + $0x118] sm:$0xff] %vm9460_vm9, %v5653_v22 }
 0x5c9   : > { %5373 = vmatmul.bf16.gmra.mxu3 %v9619_v55 }
 0x5cc   : > { %v5008_v34 = vpop.f32.mrf.mxu2  ;;  %v5334_v25 = vpop.f32.mrf.mxu3 }
 0x5cd   : > { %v5664_v40 = vpack.c.bf16 %v5177_v16, %v5008_v34  ;;  %v5655_v45 = vpack.c.bf16 %v9616_v63, %v5334_v25  ;;  %v4349_v34 = vunpack.c.l.b16 %v951_v30  ;;  %v957_v30 = vpack.c.bf16 %v10313_v27, %v10313_v27  ;;  %v10319_v27 = vld [vmem:[#allocation74_spill] sm:$0xff] }
 0x5cf   : > { %5795 = vst [vmem:[%s9410_s21 + $0x170] sm:$0xff] %v5664_v40  ;;  %v5180_v46 = vpop.f32.mrf.mxu1  ;;  %v9691_v1 = vpop.f32.mrf.mxu0  ;;  %v4389_v10 = vpack.c.b16 %v4349_v34, %v4348_v13  ;;  %v4354_v34 = vunpack.c.l.b16 %v956_v19  ;;  %v962_v19 = vpack.c.bf16 %v10318_v38, %v10318_v38 }
 0x5d0   : > { %5786 = vst.msk [vmem:[%s9410_s21 + $0x128] sm:$0xff] %vm9460_vm9, %v5655_v45 }
 0x5d1   : > { %5050 = vmatmul.bf16.gmra.mxu2 %v9694_v39 }
 0x5d2   : > { %5219 = vmatmul.bf16.gmra.mxu1 %v9694_v39  ;;  %5557 = vmatmul.bf16.gmra.mxu0 %v9694_v39 }
 0x5d4   : > { %v5011_v63 = vpop.f32.mrf.mxu2  ;;  %v5336_v55 = vpop.f32.mrf.mxu3 }
 0x5d5   : > { %v5666_v61 = vpack.c.bf16 %v5180_v46, %v5011_v63  ;;  %v5657_v11 = vpack.c.bf16 %v9633_v33, %v5336_v55  ;;  %v9769_v55 = vsel %vm1625_vm5, %v4389_v10, %v4605_v12  ;;  %v4611_v12 = vpop.permute.xlu0 %4610 }
 0x5d7   : > { %5797 = vst [vmem:[%s9410_s21 + $0x180] sm:$0xff] %v5666_v61  ;;  %v5182_v59 = vpop.f32.mrf.mxu1  ;;  %v9708_v15 = vpop.f32.mrf.mxu0 }
 0x5d8   : > { %5788 = vst.msk [vmem:[%s9410_s21 + $0x138] sm:$0xff] %vm9460_vm9, %v5657_v11 }
 0x5d9   : > { %5378 = vmatmul.bf16.gmra.mxu3 %v9644_v17 }
 0x5dc   : > { %v5013_v33 = vpop.f32.mrf.mxu2  ;;  %v5339_v35 = vpop.f32.mrf.mxu3 }
 0x5dd   : > { %v5668_v14 = vpack.c.bf16 %v5182_v59, %v5013_v33  ;;  %v5659_v6 = vpack.c.bf16 %v9641_v2, %v5339_v35  ;;  %v4351_v33 = vunpack.c.l.b16 %v953_v57  ;;  %v959_v57 = vpack.c.bf16 %v10315_v8, %v10315_v8  ;;  %v10321_v8 = vld [vmem:[#allocation78_spill] sm:$0xff] }
 0x5df   : > { %5799 = vst [vmem:[%s9410_s21 + $0x190] sm:$0xff] %v5668_v14  ;;  %v5185_v52 = vpop.f32.mrf.mxu1  ;;  %v9716_v58 = vpop.f32.mrf.mxu0  ;;  %v4390_v7 = vpack.c.b16 %v4351_v33, %v4350_v49  ;;  %v4356_v33 = vunpack.c.l.b16 %v958_v53  ;;  %v964_v53 = vpack.c.bf16 %v10320_v3, %v10320_v3 }
 0x5e0   : > { %5790 = vst.msk [vmem:[%s9410_s21 + $0x148] sm:$0xff] %vm9460_vm9, %v5659_v6 }
 0x5e1   : > { %5055 = vmatmul.bf16.gmra.mxu2 %v9719_v24 }
 0x5e2   : > { %5224 = vmatmul.bf16.gmra.mxu1 %v9719_v24  ;;  %5562 = vmatmul.bf16.gmra.mxu0 %v9719_v24 }
 0x5e4   : > { %v5016_v2 = vpop.f32.mrf.mxu2  ;;  %v5341_v17 = vpop.f32.mrf.mxu3 }
 0x5e5   : > { %v5670_v0 = vpack.c.bf16 %v5185_v52, %v5016_v2  ;;  %v5661_v42 = vpack.c.bf16 %v9658_v32, %v5341_v17  ;;  %v9794_v17 = vsel %vm1625_vm5, %v4390_v7, %v4607_v26  ;;  %v4613_v26 = vpop.permute.xlu1 %4612 }
 0x5e7   : > { %5801 = vst [vmem:[%s9410_s21 + $0x1a0] sm:$0xff] %v5670_v0  ;;  %v5187_v20 = vpop.f32.mrf.mxu1  ;;  %v9733_v31 = vpop.f32.mrf.mxu0 }
 0x5e8   : > { %5792 = vst.msk [vmem:[%s9410_s21 + $0x158] sm:$0xff] %vm9460_vm9, %v5661_v42 }
 0x5e9   : > { %5383 = vmatmul.bf16.gmra.mxu3 %v9669_v50 }
 0x5ec   : > { %v5018_v32 = vpop.f32.mrf.mxu2  ;;  %v5344_v56 = vpop.f32.mrf.mxu3 }
 0x5ed   : > { %v5672_v29 = vpack.c.bf16 %v5187_v20, %v5018_v32  ;;  %v5663_v43 = vpack.c.bf16 %v9666_v62, %v5344_v56  ;;  %v4353_v32 = vunpack.c.l.b16 %v955_v44  ;;  %v961_v44 = vpack.c.bf16 %v10317_v48, %v10317_v48 }
 0x5ef   : > { %5803 = vst [vmem:[%s9410_s21 + $0x1b0] sm:$0xff] %v5672_v29  ;;  %v5190_v54 = vpop.f32.mrf.mxu1  ;;  %v9741_v18 = vpop.f32.mrf.mxu0  ;;  %v4391_v9 = vpack.c.b16 %v4353_v32, %v4352_v5  ;;  %v4358_v32 = vunpack.c.l.b16 %v960_v41  ;;  %v10323_v41 = vld [vmem:[#allocation80_spill] sm:$0xff] }
 0x5f0   : > { %5794 = vst.msk [vmem:[%s9410_s21 + $0x168] sm:$0xff] %vm9460_vm9, %v5663_v43  ;;  %v967_v48 = vpack.c.bf16 %v10323_v41, %v10323_v41 }
 0x5f1   : > { %5060 = vmatmul.bf16.gmra.mxu2 %v9744_v23 }
 0x5f2   : > { %5229 = vmatmul.bf16.gmra.mxu1 %v9744_v23  ;;  %5567 = vmatmul.bf16.gmra.mxu0 %v9744_v23 }
 0x5f4   : > { %v5021_v62 = vpop.f32.mrf.mxu2  ;;  %v5346_v50 = vpop.f32.mrf.mxu3 }
 0x5f5   : > { %v5674_v60 = vpack.c.bf16 %v5190_v54, %v5021_v62  ;;  %v5665_v22 = vpack.c.bf16 %v9683_v37, %v5346_v50  ;;  %v9819_v50 = vsel %vm1625_vm5, %v4391_v9, %v4609_v36  ;;  %v4615_v36 = vpop.permute.xlu2 %4614 }
 0x5f7   : > { %5805 = vst [vmem:[%s9410_s21 + $0x1c0] sm:$0xff] %v5674_v60  ;;  %v5192_v16 = vpop.f32.mrf.mxu1  ;;  %v9758_v47 = vpop.f32.mrf.mxu0 }
 0x5f8   : > { %5796 = vst.msk [vmem:[%s9410_s21 + $0x178] sm:$0xff] %vm9460_vm9, %v5665_v22 }
 0x5f9   : > { %5388 = vmatmul.bf16.gmra.mxu3 %v9694_v39 }
 0x5fc   : > { %v5023_v37 = vpop.f32.mrf.mxu2  ;;  %v5349_v25 = vpop.f32.mrf.mxu3 }
 0x5fd   : > { %v5676_v40 = vpack.c.bf16 %v5192_v16, %v5023_v37  ;;  %v5667_v45 = vpack.c.bf16 %v9691_v1, %v5349_v25  ;;  %v4355_v37 = vunpack.c.l.b16 %v957_v30  ;;  %v963_v30 = vpack.c.bf16 %v10319_v27, %v10319_v27 }
 0x5ff   : > { %5807 = vst [vmem:[%s9410_s21 + $0x1d0] sm:$0xff] %v5676_v40  ;;  %v5195_v46 = vpop.f32.mrf.mxu1  ;;  %v9766_v63 = vpop.f32.mrf.mxu0  ;;  %v4392_v10 = vpack.c.b16 %v4355_v37, %v4354_v34  ;;  %v4360_v34 = vunpack.c.l.b16 %v962_v19  ;;  %v4361_v37 = vunpack.c.l.b16 %v963_v30 }
 0x600   : > { %5798 = vst.msk [vmem:[%s9410_s21 + $0x188] sm:$0xff] %vm9460_vm9, %v5667_v45 }
 0x601   : > { %5065 = vmatmul.bf16.gmra.mxu2 %v9769_v55 }
 0x602   : > { %5234 = vmatmul.bf16.gmra.mxu1 %v9769_v55  ;;  %5572 = vmatmul.bf16.gmra.mxu0 %v9769_v55 }
 0x604   : > { %v5026_v1 = vpop.f32.mrf.mxu2  ;;  %v5351_v39 = vpop.f32.mrf.mxu3 }
 0x605   : > { %v5678_v61 = vpack.c.bf16 %v5195_v46, %v5026_v1  ;;  %v5669_v11 = vpack.c.bf16 %v9708_v15, %v5351_v39  ;;  %v9844_v39 = vsel %vm1625_vm5, %v4392_v10, %v4611_v12  ;;  %v4617_v12 = vpop.permute.xlu0 %4616  ;;  %v4395_v10 = vpack.c.b16 %v4361_v37, %v4360_v34 }
 0x607   : > { %5809 = vst [vmem:[%s9410_s21 + $0x1e0] sm:$0xff] %v5678_v61  ;;  %v5197_v59 = vpop.f32.mrf.mxu1  ;;  %v9783_v28 = vpop.f32.mrf.mxu0 }
 0x608   : > { %5800 = vst.msk [vmem:[%s9410_s21 + $0x198] sm:$0xff] %vm9460_vm9, %v5669_v11 }
 0x609   : > { %5393 = vmatmul.bf16.gmra.mxu3 %v9719_v24 }
 0x60c   : > { %v5028_v15 = vpop.f32.mrf.mxu2  ;;  %v5354_v35 = vpop.f32.mrf.mxu3 }
 0x60d   : > { %v5680_v14 = vpack.c.bf16 %v5197_v59, %v5028_v15  ;;  %v5671_v6 = vpack.c.bf16 %v9716_v58, %v5354_v35  ;;  %v4357_v15 = vunpack.c.l.b16 %v959_v57  ;;  %v965_v57 = vpack.c.bf16 %v10321_v8, %v10321_v8 }
 0x60f   : > { %5811 = vst [vmem:[%s9410_s21 + $0x1f0] sm:$0xff] %v5680_v14  ;;  %v5200_v52 = vpop.f32.mrf.mxu1  ;;  %v9791_v2 = vpop.f32.mrf.mxu0  ;;  %v4393_v7 = vpack.c.b16 %v4357_v15, %v4356_v33  ;;  %v4362_v33 = vunpack.c.l.b16 %v964_v53  ;;  %v4363_v15 = vunpack.c.l.b16 %v965_v57 }
 0x610   : > { %5802 = vst.msk [vmem:[%s9410_s21 + $0x1a8] sm:$0xff] %vm9460_vm9, %v5671_v6 }
 0x611   : > { %5070 = vmatmul.bf16.gmra.mxu2 %v9794_v17 }
 0x612   : > { %5239 = vmatmul.bf16.gmra.mxu1 %v9794_v17  ;;  %5577 = vmatmul.bf16.gmra.mxu0 %v9794_v17 }
 0x614   : > { %v5031_v58 = vpop.f32.mrf.mxu2  ;;  %v5356_v24 = vpop.f32.mrf.mxu3 }
 0x615   : > { %v5682_v0 = vpack.c.bf16 %v5200_v52, %v5031_v58  ;;  %v5673_v42 = vpack.c.bf16 %v9733_v31, %v5356_v24  ;;  %v9869_v24 = vsel %vm1625_vm5, %v4393_v7, %v4613_v26 }
 0x617   : > { %5813 = vst [vmem:[%s9410_s21 + $0x200] sm:$0xff] %v5682_v0  ;;  %v5202_v20 = vpop.f32.mrf.mxu1  ;;  %v9808_v4 = vpop.f32.mrf.mxu0 }
 0x618   : > { %5804 = vst.msk [vmem:[%s9410_s21 + $0x1b8] sm:$0xff] %vm9460_vm9, %v5673_v42 }
 0x619   : > { %5398 = vmatmul.bf16.gmra.mxu3 %v9744_v23 }
 0x61c   : > { %v5033_v31 = vpop.f32.mrf.mxu2  ;;  %v5359_v56 = vpop.f32.mrf.mxu3 }
 0x61d   : > { %v5684_v29 = vpack.c.bf16 %v5202_v20, %v5033_v31  ;;  %v5675_v43 = vpack.c.bf16 %v9741_v18, %v5359_v56  ;;  %v4359_v31 = vunpack.c.l.b16 %v961_v44 }
 0x61f   : > { %5815 = vst [vmem:[%s9410_s21 + $0x210] sm:$0xff] %v5684_v29  ;;  %v5205_v54 = vpop.f32.mrf.mxu1  ;;  %v9816_v62 = vpop.f32.mrf.mxu0  ;;  %v4394_v9 = vpack.c.b16 %v4359_v31, %v4358_v32  ;;  %v4365_v31 = vunpack.c.l.b16 %v967_v48 }
 0x620   : > { %5806 = vst.msk [vmem:[%s9410_s21 + $0x1c8] sm:$0xff] %vm9460_vm9, %v5675_v43 }
 0x621   : > { %5075 = vmatmul.bf16.gmra.mxu2 %v9819_v50 }
 0x622   : > { %5244 = vmatmul.bf16.gmra.mxu1 %v9819_v50  ;;  %5582 = vmatmul.bf16.gmra.mxu0 %v9819_v50 }
 0x624   : > { %v5036_v18 = vpop.f32.mrf.mxu2  ;;  %v5361_v23 = vpop.f32.mrf.mxu3 }
 0x625   : > { %v5686_v60 = vpack.c.bf16 %v5205_v54, %v5036_v18  ;;  %v5677_v22 = vpack.c.bf16 %v9758_v47, %v5361_v23  ;;  %v9892_v18 = vsel %vm1625_vm5, %v4394_v9, %v4615_v36 }
 0x627   : > { %5817 = vst [vmem:[%s9410_s21 + $0x220] sm:$0xff] %v5686_v60  ;;  %v5207_v16 = vpop.f32.mrf.mxu1  ;;  %v9833_v13 = vpop.f32.mrf.mxu0 }
 0x628   : > { %5808 = vst.msk [vmem:[%s9410_s21 + $0x1d8] sm:$0xff] %vm9460_vm9, %v5677_v22 }
 0x629   : > { %5403 = vmatmul.bf16.gmra.mxu3 %v9769_v55 }
 0x62c   : > { %v5038_v47 = vpop.f32.mrf.mxu2  ;;  %v5364_v25 = vpop.f32.mrf.mxu3 }
 0x62d   : > { %v5688_v40 = vpack.c.bf16 %v5207_v16, %v5038_v47  ;;  %v5679_v45 = vpack.c.bf16 %v9766_v63, %v5364_v25 }
 0x62f   : > { %5819 = vst [vmem:[%s9410_s21 + $0x230] sm:$0xff] %v5688_v40  ;;  %v5210_v46 = vpop.f32.mrf.mxu1  ;;  %v9841_v1 = vpop.f32.mrf.mxu0 }
 0x630   : > { %5810 = vst.msk [vmem:[%s9410_s21 + $0x1e8] sm:$0xff] %vm9460_vm9, %v5679_v45 }
 0x631   : > { %5080 = vmatmul.bf16.gmra.mxu2 %v9844_v39 }
 0x632   : > { %5249 = vmatmul.bf16.gmra.mxu1 %v9844_v39  ;;  %5587 = vmatmul.bf16.gmra.mxu0 %v9844_v39 }
 0x634   : > { %v5041_v63 = vpop.f32.mrf.mxu2  ;;  %v5366_v55 = vpop.f32.mrf.mxu3 }
 0x635   : > { %v5690_v61 = vpack.c.bf16 %v5210_v46, %v5041_v63  ;;  %v5681_v11 = vpack.c.bf16 %v9783_v28, %v5366_v55  ;;  %v9917_v63 = vsel %vm1625_vm5, %v4395_v10, %v4617_v12 }
 0x637   : > { %5821 = vst [vmem:[%s9410_s21 + $0x240] sm:$0xff] %v5690_v61  ;;  %v5212_v59 = vpop.f32.mrf.mxu1  ;;  %v9858_v49 = vpop.f32.mrf.mxu0 }
 0x638   : > { %5812 = vst.msk [vmem:[%s9410_s21 + $0x1f8] sm:$0xff] %vm9460_vm9, %v5681_v11 }
 0x639   : > { %5408 = vmatmul.bf16.gmra.mxu3 %v9794_v17 }
 0x63c   : > { %v5043_v28 = vpop.f32.mrf.mxu2  ;;  %v5369_v35 = vpop.f32.mrf.mxu3 }
 0x63d   : > { %v5692_v14 = vpack.c.bf16 %v5212_v59, %v5043_v28  ;;  %v5683_v6 = vpack.c.bf16 %v9791_v2, %v5369_v35 }
 0x63f   : > { %5823 = vst [vmem:[%s9410_s21 + $0x250] sm:$0xff] %v5692_v14  ;;  %v5215_v52 = vpop.f32.mrf.mxu1  ;;  %v9866_v58 = vpop.f32.mrf.mxu0 }
 0x640   : > { %5814 = vst.msk [vmem:[%s9410_s21 + $0x208] sm:$0xff] %vm9460_vm9, %v5683_v6  ;;  %v4396_v6 = vpack.c.b16 %v4363_v15, %v4362_v33 }
 0x641   : > { %5085 = vmatmul.bf16.gmra.mxu2 %v9869_v24 }
 0x642   : > { %5254 = vmatmul.bf16.gmra.mxu1 %v9869_v24  ;;  %5592 = vmatmul.bf16.gmra.mxu0 %v9869_v24 }
 0x644   : > { %v5046_v2 = vpop.f32.mrf.mxu2  ;;  %v5371_v17 = vpop.f32.mrf.mxu3 }
 0x645   : > { %v5694_v0 = vpack.c.bf16 %v5215_v52, %v5046_v2  ;;  %v5685_v42 = vpack.c.bf16 %v9808_v4, %v5371_v17 }
 0x647   : > { %5825 = vst [vmem:[%s9410_s21 + $0x260] sm:$0xff] %v5694_v0  ;;  %v5217_v20 = vpop.f32.mrf.mxu1  ;;  %v9883_v5 = vpop.f32.mrf.mxu0 }
 0x648   : > { %5816 = vst.msk [vmem:[%s9410_s21 + $0x218] sm:$0xff] %vm9460_vm9, %v5685_v42 }
 0x649   : > { %5413 = vmatmul.bf16.gmra.mxu3 %v9819_v50 }
 0x64c   : > { %v5048_v4 = vpop.f32.mrf.mxu2  ;;  %v5374_v56 = vpop.f32.mrf.mxu3 }
 0x64d   : > { %v5696_v29 = vpack.c.bf16 %v5217_v20, %v5048_v4  ;;  %v5687_v43 = vpack.c.bf16 %v9816_v62, %v5374_v56  ;;  %v4621_v56 = vpop.permute.xlu2 %4620 }
 0x64f   : > { %5827 = vst [vmem:[%s9410_s21 + $0x270] sm:$0xff] %v5696_v29  ;;  %v5220_v54 = vpop.f32.mrf.mxu1  ;;  %v9897_v50 = vpop.f32.mrf.mxu0 }
 0x650   : > { %5818 = vst.msk [vmem:[%s9410_s21 + $0x228] sm:$0xff] %vm9460_vm9, %v5687_v43 }
 0x651   : > { %5090 = vmatmul.bf16.gmra.mxu2 %v9892_v18 }
 0x652   : > { %5259 = vmatmul.bf16.gmra.mxu1 %v9892_v18  ;;  %5597 = vmatmul.bf16.gmra.mxu0 %v9892_v18 }
 0x654   : > { %v5051_v62 = vpop.f32.mrf.mxu2  ;;  %v5376_v23 = vpop.f32.mrf.mxu3 }
 0x655   : > { %v5698_v60 = vpack.c.bf16 %v5220_v54, %v5051_v62  ;;  %v5689_v22 = vpack.c.bf16 %v9833_v13, %v5376_v23 }
 0x657   : > { %5829 = vst [vmem:[%s9410_s21 + $0x280] sm:$0xff] %v5698_v60  ;;  %v5222_v16 = vpop.f32.mrf.mxu1  ;;  %v9912_v47 = vpop.f32.mrf.mxu0 }
 0x658   : > { %5820 = vst.msk [vmem:[%s9410_s21 + $0x238] sm:$0xff] %vm9460_vm9, %v5689_v22 }
 0x659   : > { %5418 = vmatmul.bf16.gmra.mxu3 %v9844_v39 }
 0x65c   : > { %v5053_v13 = vpop.f32.mrf.mxu2  ;;  %v5379_v25 = vpop.f32.mrf.mxu3 }
 0x65d   : > { %v5700_v40 = vpack.c.bf16 %v5222_v16, %v5053_v13  ;;  %v5691_v45 = vpack.c.bf16 %v9841_v1, %v5379_v25 }
 0x65f   : > { %5831 = vst [vmem:[%s9410_s21 + $0x290] sm:$0xff] %v5700_v40  ;;  %v5225_v46 = vpop.f32.mrf.mxu1  ;;  %v9925_v1 = vpop.f32.mrf.mxu0 }
 0x660   : > { %5822 = vst.msk [vmem:[%s9410_s21 + $0x248] sm:$0xff] %vm9460_vm9, %v5691_v45 }
 0x661   : > { %5095 = vmatmul.bf16.gmra.mxu2 %v9917_v63 }
 0x662   : > { %5264 = vmatmul.bf16.gmra.mxu1 %v9917_v63  ;;  %5602 = vmatmul.bf16.gmra.mxu0 %v9917_v63 }
 0x664   : > { %v5056_v39 = vpop.f32.mrf.mxu2  ;;  %v5381_v55 = vpop.f32.mrf.mxu3 }
 0x665   : > { %v5702_v61 = vpack.c.bf16 %v5225_v46, %v5056_v39  ;;  %v5693_v11 = vpack.c.bf16 %v9858_v49, %v5381_v55  ;;  %v4619_v49 = vpop.permute.xlu1 %4618 }
 0x666   : > { %v4744_v2 = vsel %vm1625_vm5, %v4396_v6, %v4619_v49 }
 0x667   : > { %5833 = vst [vmem:[%s9410_s21 + $0x2a0] sm:$0xff] %v5702_v61  ;;  %v5227_v59 = vpop.f32.mrf.mxu1  ;;  %v5565_v7 = vpop.f32.mrf.mxu0 }
 0x668   : > { %5824 = vst.msk [vmem:[%s9410_s21 + $0x258] sm:$0xff] %vm9460_vm9, %v5693_v11 }
 0x669   : > { %5423 = vmatmul.bf16.gmra.mxu3 %v9869_v24 }
 0x66c   : > { %v5058_v28 = vpop.f32.mrf.mxu2  ;;  %v5384_v35 = vpop.f32.mrf.mxu3 }
 0x66d   : > { %v5704_v26 = vpack.c.bf16 %v5227_v59, %v5058_v28  ;;  %v5695_v14 = vpack.c.bf16 %v9866_v58, %v5384_v35  ;;  %v10322_v58 = vld [vmem:[#allocation79_spill] sm:$0xff] }
 0x66e   : > { %v966_v51 = vpack.c.bf16 %v10322_v58, %v10322_v58 }
 0x66f   : > { %5835 = vst [vmem:[%s9410_s21 + $0x2b0] sm:$0xff] %v5704_v26  ;;  %v5230_v52 = vpop.f32.mrf.mxu1  ;;  %v5568_v20 = vpop.f32.mrf.mxu0 }
 0x670   : > { %5826 = vst.msk [vmem:[%s9410_s21 + $0x268] sm:$0xff] %vm9460_vm9, %v5695_v14  ;;  %v4364_v32 = vunpack.c.l.b16 %v966_v51 }
 0x671   : > { %5100 = vmatmul.bf16.gmra.mxu2 %v4744_v2 }
 0x672   : > { %5269 = vmatmul.bf16.gmra.mxu1 %v4744_v2  ;;  %5607 = vmatmul.bf16.gmra.mxu0 %v4744_v2  ;;  %v4397_v43 = vpack.c.b16 %v4365_v31, %v4364_v32 }
 0x674   : > { %v5061_v24 = vpop.f32.mrf.mxu2  ;;  %v5386_v17 = vpop.f32.mrf.mxu3  ;;  %v4748_v54 = vsel %vm1625_vm5, %v4397_v43, %v4621_v56 }
 0x675   : > { %v5706_v0 = vpack.c.bf16 %v5230_v52, %v5061_v24  ;;  %v5697_v42 = vpack.c.bf16 %v9883_v5, %v5386_v17 }
 0x677   : > { %5837 = vst [vmem:[%s9410_s21 + $0x2c0] sm:$0xff] %v5706_v0  ;;  %v5232_v44 = vpop.f32.mrf.mxu1 }
 0x678   : > { %5828 = vst.msk [vmem:[%s9410_s21 + $0x278] sm:$0xff] %vm9460_vm9, %v5697_v42 }
 0x679   : > { %5428 = vmatmul.bf16.gmra.mxu3 %v9892_v18  ;;  %v5570_v18 = vpop.f32.mrf.mxu0 }
 0x67c   : > { %v5063_v4 = vpop.f32.mrf.mxu2  ;;  %v5389_v5 = vpop.f32.mrf.mxu3 }
 0x67d   : > { %v5708_v36 = vpack.c.bf16 %v5232_v44, %v5063_v4  ;;  %v5699_v29 = vpack.c.bf16 %v9897_v50, %v5389_v5 }
 0x67f   : > { %5839 = vst [vmem:[%s9410_s21 + $0x2d0] sm:$0xff] %v5708_v36  ;;  %v5235_v9 = vpop.f32.mrf.mxu1 }
 0x680   : > { %5830 = vst.msk [vmem:[%s9410_s21 + $0x288] sm:$0xff] %vm9460_vm9, %v5699_v29 }
 0x681   : > { %5105 = vmatmul.bf16.gmra.mxu2 %v4748_v54  ;;  %v5573_v27 = vpop.f32.mrf.mxu0 }
 0x682   : > { %5274 = vmatmul.bf16.gmra.mxu1 %v4748_v54 }
 0x684   : > { %v5066_v62 = vpop.f32.mrf.mxu2  ;;  %v5391_v23 = vpop.f32.mrf.mxu3 }
 0x685   : > { %v5710_v60 = vpack.c.bf16 %v5235_v9, %v5066_v62  ;;  %v5701_v22 = vpack.c.bf16 %v9912_v47, %v5391_v23 }
 0x687   : > { %5841 = vst [vmem:[%s9410_s21 + $0x2e0] sm:$0xff] %v5710_v60  ;;  %v5237_v50 = vpop.f32.mrf.mxu1 }
 0x688   : > { %5832 = vst.msk [vmem:[%s9410_s21 + $0x298] sm:$0xff] %vm9460_vm9, %v5701_v22 }
 0x689   : > { %5433 = vmatmul.bf16.gmra.mxu3 %v9917_v63  ;;  %v5575_v12 = vpop.f32.mrf.mxu0 }
 0x68c   : > { %v5068_v38 = vpop.f32.mrf.mxu2  ;;  %v5394_v19 = vpop.f32.mrf.mxu3 }
 0x68d   : > { %v5712_v30 = vpack.c.bf16 %v5237_v50, %v5068_v38  ;;  %v5703_v16 = vpack.c.bf16 %v9925_v1, %v5394_v19 }
 0x68f   : > { %5843 = vst [vmem:[%s9410_s21 + $0x2f0] sm:$0xff] %v5712_v30  ;;  %v5240_v34 = vpop.f32.mrf.mxu1 }
 0x690   : > { %5834 = vst.msk [vmem:[%s9410_s21 + $0x2a8] sm:$0xff] %vm9460_vm9, %v5703_v16 }
 0x691   : > { %v5578_v55 = vpop.f32.mrf.mxu0 }
 0x694   : > { %v5071_v37 = vpop.f32.mrf.mxu2  ;;  %v5396_v47 = vpop.f32.mrf.mxu3 }
 0x695   : > { %v5714_v13 = vpack.c.bf16 %v5240_v34, %v5071_v37  ;;  %v5705_v25 = vpack.c.bf16 %v5565_v7, %v5396_v47 }
 0x697   : > { %5845 = vst [vmem:[%s9410_s21 + $0x300] sm:$0xff] %v5714_v13  ;;  %v5242_v40 = vpop.f32.mrf.mxu1 }
 0x698   : > { %5836 = vst.msk [vmem:[%s9410_s21 + $0x2b8] sm:$0xff] %vm9460_vm9, %v5705_v25 }
 0x699   : > { %5438 = vmatmul.bf16.gmra.mxu3 %v4744_v2  ;;  %v5580_v8 = vpop.f32.mrf.mxu0 }
 0x69c   : > { %v5073_v45 = vpop.f32.mrf.mxu2  ;;  %v5399_v10 = vpop.f32.mrf.mxu3 }
 0x69d   : > { %v5716_v46 = vpack.c.bf16 %v5242_v40, %v5073_v45  ;;  %v5707_v63 = vpack.c.bf16 %v5568_v20, %v5399_v10 }
 0x69f   : > { %5847 = vst [vmem:[%s9410_s21 + $0x310] sm:$0xff] %v5716_v46  ;;  %v5245_v39 = vpop.f32.mrf.mxu1 }
 0x6a0   : > { %5838 = vst.msk [vmem:[%s9410_s21 + $0x2c8] sm:$0xff] %vm9460_vm9, %v5707_v63 }
 0x6a1   : > { %v5583_v26 = vpop.f32.mrf.mxu0 }
 0x6a4   : > { %v5076_v1 = vpop.f32.mrf.mxu2  ;;  %v5401_v61 = vpop.f32.mrf.mxu3 }
 0x6a5   : > { %v5718_v11 = vpack.c.bf16 %v5245_v39, %v5076_v1  ;;  %v5709_v3 = vpack.c.bf16 %v5570_v18, %v5401_v61 }
 0x6a7   : > { %5849 = vst [vmem:[%s9410_s21 + $0x320] sm:$0xff] %v5718_v11  ;;  %v5247_v53 = vpop.f32.mrf.mxu1 }
 0x6a8   : > { %5840 = vst.msk [vmem:[%s9410_s21 + $0x2d8] sm:$0xff] %vm9460_vm9, %v5709_v3 }
 0x6a9   : > { %5443 = vmatmul.bf16.gmra.mxu3 %v4748_v54  ;;  %v5585_v0 = vpop.f32.mrf.mxu0 }
 0x6ac   : > { %v5078_v57 = vpop.f32.mrf.mxu2  ;;  %v5404_v59 = vpop.f32.mrf.mxu3 }
 0x6ad   : > { %v5720_v33 = vpack.c.bf16 %v5247_v53, %v5078_v57  ;;  %v5711_v15 = vpack.c.bf16 %v5573_v27, %v5404_v59 }
 0x6af   : > { %5851 = vst [vmem:[%s9410_s21 + $0x330] sm:$0xff] %v5720_v33  ;;  %v5250_v28 = vpop.f32.mrf.mxu1 }
 0x6b0   : > { %5842 = vst.msk [vmem:[%s9410_s21 + $0x2e8] sm:$0xff] %vm9460_vm9, %v5711_v15 }
 0x6b1   : > { %v5588_v20 = vpop.f32.mrf.mxu0 }
 0x6b4   : > { %v5081_v35 = vpop.f32.mrf.mxu2  ;;  %v5406_v49 = vpop.f32.mrf.mxu3 }
 0x6b5   : > { %v5722_v14 = vpack.c.bf16 %v5250_v28, %v5081_v35  ;;  %v5713_v6 = vpack.c.bf16 %v5575_v12, %v5406_v49 }
 0x6b7   : > { %5853 = vst [vmem:[%s9410_s21 + $0x340] sm:$0xff] %v5722_v14  ;;  %v5252_v7 = vpop.f32.mrf.mxu1 }
 0x6b8   : > { %5844 = vst.msk [vmem:[%s9410_s21 + $0x2f8] sm:$0xff] %vm9460_vm9, %v5713_v6 }
 0x6b9   : > { %5612 = vmatmul.bf16.vlgmr.msrb.gmra.mxu3 %v4748_v54  ;;  %v5590_v36 = vpop.f32.mrf.mxu0 }
 0x6bc   : > { %v5083_v52 = vpop.f32.mrf.mxu2  ;;  %v5409_v2 = vpop.f32.mrf.mxu3 }
 0x6bd   : > { %v5724_v24 = vpack.c.bf16 %v5252_v7, %v5083_v52  ;;  %v5715_v17 = vpack.c.bf16 %v5578_v55, %v5409_v2 }
 0x6bf   : > { %5855 = vst [vmem:[%s9410_s21 + $0x350] sm:$0xff] %v5724_v24  ;;  %v5255_v42 = vpop.f32.mrf.mxu1 }
 0x6c0   : > { %5846 = vst.msk [vmem:[%s9410_s21 + $0x308] sm:$0xff] %vm9460_vm9, %v5715_v17 }
 0x6c1   : > { %v5593_v60 = vpop.f32.mrf.mxu0 }
 0x6c4   : > { %v5086_v58 = vpop.f32.mrf.mxu2  ;;  %v5411_v51 = vpop.f32.mrf.mxu3 }
 0x6c5   : > { %v5726_v41 = vpack.c.bf16 %v5255_v42, %v5086_v58  ;;  %v5717_v48 = vpack.c.bf16 %v5580_v8, %v5411_v51 }
 0x6c7   : > { %5857 = vst [vmem:[%s9410_s21 + $0x360] sm:$0xff] %v5726_v41  ;;  %v5257_v44 = vpop.f32.mrf.mxu1 }
 0x6c8   : > { %5848 = vst.msk [vmem:[%s9410_s21 + $0x318] sm:$0xff] %vm9460_vm9, %v5717_v48 }
 0x6c9   : > { %v5595_v34 = vpop.f32.mrf.mxu0 }
 0x6cc   : > { %v5088_v32 = vpop.f32.mrf.mxu2  ;;  %v5414_v31 = vpop.f32.mrf.mxu3 }
 0x6cd   : > { %v5728_v4 = vpack.c.bf16 %v5257_v44, %v5088_v32  ;;  %v5719_v5 = vpack.c.bf16 %v5583_v26, %v5414_v31 }
 0x6cf   : > { %5859 = vst [vmem:[%s9410_s21 + $0x370] sm:$0xff] %v5728_v4  ;;  %v5260_v56 = vpop.f32.mrf.mxu1 }
 0x6d0   : > { %5850 = vst.msk [vmem:[%s9410_s21 + $0x328] sm:$0xff] %vm9460_vm9, %v5719_v5 }
 0x6d1   : > { %v5598_v45 = vpop.f32.mrf.mxu0 }
 0x6d4   : > { %v5091_v29 = vpop.f32.mrf.mxu2  ;;  %v5416_v43 = vpop.f32.mrf.mxu3 }
 0x6d5   : > { %v5730_v9 = vpack.c.bf16 %v5260_v56, %v5091_v29  ;;  %v5721_v54 = vpack.c.bf16 %v5585_v0, %v5416_v43 }
 0x6d7   : > { %5861 = vst [vmem:[%s9410_s21 + $0x380] sm:$0xff] %v5730_v9  ;;  %v5262_v18 = vpop.f32.mrf.mxu1 }
 0x6d8   : > { %5852 = vst.msk [vmem:[%s9410_s21 + $0x338] sm:$0xff] %vm9460_vm9, %v5721_v54 }
 0x6d9   : > { %v5600_v1 = vpop.f32.mrf.mxu0 }
 0x6dc   : > { %v5093_v62 = vpop.f32.mrf.mxu2  ;;  %v5419_v23 = vpop.f32.mrf.mxu3 }
 0x6dd   : > { %v5732_v22 = vpack.c.bf16 %v5262_v18, %v5093_v62  ;;  %v5723_v50 = vpack.c.bf16 %v5588_v20, %v5419_v23 }
 0x6df   : > { %5863 = vst [vmem:[%s9410_s21 + $0x390] sm:$0xff] %v5732_v22  ;;  %v5265_v38 = vpop.f32.mrf.mxu1 }
 0x6e0   : > { %5854 = vst.msk [vmem:[%s9410_s21 + $0x348] sm:$0xff] %vm9460_vm9, %v5723_v50 }
 0x6e1   : > { %v5603_v28 = vpop.f32.mrf.mxu0 }
 0x6e4   : > { %v5096_v19 = vpop.f32.mrf.mxu2  ;;  %v5421_v27 = vpop.f32.mrf.mxu3 }
 0x6e5   : > { %v5734_v30 = vpack.c.bf16 %v5265_v38, %v5096_v19  ;;  %v5725_v16 = vpack.c.bf16 %v5590_v36, %v5421_v27 }
 0x6e7   : > { %5865 = vst [vmem:[%s9410_s21 + $0x3a0] sm:$0xff] %v5734_v30  ;;  %v5267_v37 = vpop.f32.mrf.mxu1 }
 0x6e8   : > { %5856 = vst.msk [vmem:[%s9410_s21 + $0x358] sm:$0xff] %vm9460_vm9, %v5725_v16 }
 0x6e9   : > { %v5605_v7 = vpop.f32.mrf.mxu0 }
 0x6ec   : > { %v5098_v47 = vpop.f32.mrf.mxu2  ;;  %v5424_v13 = vpop.f32.mrf.mxu3 }
 0x6ed   : > { %v5736_v25 = vpack.c.bf16 %v5267_v37, %v5098_v47  ;;  %v5727_v12 = vpack.c.bf16 %v5593_v60, %v5424_v13 }
 0x6ef   : > { %5867 = vst [vmem:[%s9410_s21 + $0x3b0] sm:$0xff] %v5736_v25  ;;  %v5270_v40 = vpop.f32.mrf.mxu1 }
 0x6f0   : > { %5858 = vst.msk [vmem:[%s9410_s21 + $0x368] sm:$0xff] %vm9460_vm9, %v5727_v12 }
 0x6f1   : > { %v5608_v24 = vpop.f32.mrf.mxu0 }
 0x6f4   : > { %v5101_v10 = vpop.f32.mrf.mxu2  ;;  %v5426_v46 = vpop.f32.mrf.mxu3 }
 0x6f5   : > { %v5738_v63 = vpack.c.bf16 %v5270_v40, %v5101_v10  ;;  %v5729_v39 = vpack.c.bf16 %v5595_v34, %v5426_v46 }
 0x6f7   : > { %5869 = vst [vmem:[%s9410_s21 + $0x3c0] sm:$0xff] %v5738_v63  ;;  %v5272_v55 = vpop.f32.mrf.mxu1 }
 0x6f8   : > { %5860 = vst.msk [vmem:[%s9410_s21 + $0x378] sm:$0xff] %vm9460_vm9, %v5729_v39 }
 0x6f9   : > { %v5610_v42 = vpop.f32.mrf.mxu0 }
 0x6fc   : > { %v5103_v61 = vpop.f32.mrf.mxu2  ;;  %v5429_v11 = vpop.f32.mrf.mxu3 }
 0x6fd   : > { %v5740_v3 = vpack.c.bf16 %v5272_v55, %v5103_v61  ;;  %v5731_v53 = vpack.c.bf16 %v5598_v45, %v5429_v11 }
 0x6ff   : > { %5871 = vst [vmem:[%s9410_s21 + $0x3d0] sm:$0xff] %v5740_v3  ;;  %v5275_v8 = vpop.f32.mrf.mxu1 }
 0x700   : > { %5862 = vst.msk [vmem:[%s9410_s21 + $0x388] sm:$0xff] %vm9460_vm9, %v5731_v53 }
 0x704   : > { %v5106_v57 = vpop.f32.mrf.mxu2  ;;  %v5431_v59 = vpop.f32.mrf.mxu3 }
 0x705   : > { %v5742_v33 = vpack.c.bf16 %v5275_v8, %v5106_v57  ;;  %v5733_v15 = vpack.c.bf16 %v5600_v1, %v5431_v59 }
 0x707   : > { %5873 = vst [vmem:[%s9410_s21 + $0x3e0] sm:$0xff] %v5742_v33  ;;  %v5277_v35 = vpop.f32.mrf.mxu1 }
 0x708   : > { %5864 = vst.msk [vmem:[%s9410_s21 + $0x398] sm:$0xff] %vm9460_vm9, %v5733_v15 }
 0x70c   : > { %v5108_v49 = vpop.f32.mrf.mxu2  ;;  %v5434_v26 = vpop.f32.mrf.mxu3 }
 0x70d   : > { %v5744_v14 = vpack.c.bf16 %v5277_v35, %v5108_v49  ;;  %v5735_v6 = vpack.c.bf16 %v5603_v28, %v5434_v26 }
 0x70f   : > { %5875 = vst [vmem:[%s9410_s21 + $0x3f0] sm:$0xff] %v5744_v14 }
 0x710   : > { %5866 = vst.msk [vmem:[%s9410_s21 + $0x3a8] sm:$0xff] %vm9460_vm9, %v5735_v6 }
 0x714   : > { %v5436_v52 = vpop.f32.mrf.mxu3 }
 0x715   : > { %v5737_v2 = vpack.c.bf16 %v5605_v7, %v5436_v52 }
 0x717   : > { %5868 = vst.msk [vmem:[%s9410_s21 + $0x3b8] sm:$0xff] %vm9460_vm9, %v5737_v2 }
 0x71c   : > { %v5439_v17 = vpop.f32.mrf.mxu3 }
 0x71d   : > { %v5739_v0 = vpack.c.bf16 %v5608_v24, %v5439_v17 }
 0x71f   : > { %5870 = vst.msk [vmem:[%s9410_s21 + $0x3c8] sm:$0xff] %vm9460_vm9, %v5739_v0 }
 0x724   : > { %v5441_v58 = vpop.f32.mrf.mxu3 }
 0x725   : > { %v5741_v51 = vpack.c.bf16 %v5610_v42, %v5441_v58 }
 0x727   : > { %5872 = vst.msk [vmem:[%s9410_s21 + $0x3d8] sm:$0xff] %vm9460_vm9, %v5741_v51 }
 0x72c   : > { %v5444_v41 = vpop.f32.mrf.mxu3 }
 0x734   : > { %v5446_v48 = vpop.f32.mrf.mxu3 }
 0x73c   : > { %v5613_v44 = vpop.f32.mrf.mxu3 }
 0x73d   : > { %v5743_v20 = vpack.c.bf16 %v5613_v44, %v5444_v41 }
 0x73f   : > { %5874 = vst.msk [vmem:[%s9410_s21 + $0x3e8] sm:$0xff] %vm9460_vm9, %v5743_v20 }
 0x744   : > { %v5615_v32 = vpop.f32.mrf.mxu3 }
 0x745   : > { %v5745_v31 = vpack.c.bf16 %v5615_v32, %v5446_v48 }
 0x747   : > { %5876 = vst.msk [vmem:[%s9410_s21 + $0x3f8] sm:$0xff] %vm9460_vm9, %v5745_v31 }
 0x748   : > { %7253 = shalt.err (!%p7250_p8)
}
 0x749   : > { %s7305_s18 = smov 256   ;;  %s7306_s21 = smov 16  }
 0x74a   : > { %6902 = dma.vmem_to_hbm [thread:$0]  (%p7385_p5), %s5892_s9, 16384, %s5894_s22, %s5878_s28, %s7305_s18, %s7305_s18, %s7306_s21  }
 0x74b PF: > { %p6924_p9 = scmp.ge.s32.totalorder %s7296_s27, 2  ;;  %s5908_s23 = sand.u32 1, %s7284_s24  }
 0x74c   : > { %s5909_s29 = scalar_lea.sflag [#allocation5], %s5908_s23 }
 0x74d   : > { %p6915_p10 = pnand %p6924_p9, %p7389_p6 }
 0x74f   : > { %p6916_p11 = pneg %p6915_p10 }
 0x751   : > { %7279 = dma.done.wait (%p6916_p11), %s5909_s29, 16384  }
 0x752   : > { %7281 = vsyncadd (%p6916_p11), %s5909_s29, 4294950912  ;;  %p19_p12 = scmp.ge.s32.totalorder %s7372_s30, 6   ;;  %s10324_s24 = smov %s7288_s25 }
 0x753   : > { %s10325_s25 = smov %s7292_s26  ;;  %s10326_s26 = smov %s7383_s10 }
 0x754   : > { %s10327_s27 = smov %s7372_s30  ;;  %21 = sbr.rel (!%p19_p12) target bundleno = 5 (0x5), region = 99 }
 0x759   :  { %5915 = vsyncpa [#allocation4], 1 }
 0x75a   :  { %5917 = vsyncpa [#allocation4 + $0x1], 1 }
 0x75b   :  { %5918 = vsyncpa [#allocation7], 1 }
 0x75c   :  { %5919 = vsyncpa [#allocation5], 1 }
 0x75d   :  { %5921 = vsyncpa [#allocation5 + $0x1], 1 }

</bundles_post_ra>
